<compile_context>
chip_gen: v6e
topology: v6e:2x2x1
jax: 0.10.0
libtpu: 0.0.40
codegen_flags: <defaults>
</compile_context>

<pallas_src>
import jax
import jax.numpy as jnp
from jax.experimental import pallas as pl
from jax.experimental.pallas import tpu as pltpu

C_PAD = 128  # lane width: pad channels to a full vreg lane dimension


def _make_kernel(H, W, pad_rows):
    """Build the fused BasicBlock kernel for one image per grid step."""
    HW = H * W
    taps = [(dy, dx) for dy in (-1, 0, 1) for dx in (-1, 0, 1)]

    def kernel(x_ref, w1_ref, b1_ref, w2_ref, b2_ref, out_ref, buf):
        # x_ref  : (HW, C_PAD) f32   input activation slab (lane-dense)
        # w*_ref : (9, C_PAD, C_PAD) bf16   per-tap folded conv+BN weights
        # b*_ref : (1, C_PAD) f32    folded BN bias
        # out_ref: (HW, C_PAD) f32   output slab (lane-dense, unmasked stores)
        # buf    : VMEM (HW + 2*pad_rows, C_PAD) f32  flat halo-padded activation
        cp = x_ref.shape[1]
        x = x_ref[...]                                          # (HW, C_PAD) f32, stays resident

        # Column-validity masks (row validity is handled by the zero halo rows in `buf`).
        col = jax.lax.broadcasted_iota(jnp.int32, (HW, 1), 0) % W
        not_left = col > 0            # reading column c-1 is valid
        not_right = col < W - 1       # reading column c+1 is valid

        # Zero ONLY the halo rows (sublane-aligned stores); interior is overwritten below.
        zeros_pad = jnp.zeros((pad_rows, cp), jnp.float32)
        buf[0:pad_rows, :] = zeros_pad
        buf[pad_rows + HW:2 * pad_rows + HW, :] = zeros_pad

        def conv3x3(w_ref, b_ref):
            # 9 accumulating MXU matmuls on shifted views -- no im2col concat.
            acc = None
            for t, (dy, dx) in enumerate(taps):
                start = pad_rows + dy * W + dx                  # static, in [pad_rows-W-1, pad_rows+W+1]
                tap = buf[start:start + HW, :]                  # contiguous shifted slice
                if dx == -1:
                    tap = jnp.where(not_left, tap, 0.0)
                elif dx == 1:
                    tap = jnp.where(not_right, tap, 0.0)
                p = jnp.dot(tap.astype(jnp.bfloat16), w_ref[t],
                            preferred_element_type=jnp.float32)
                acc = p if acc is None else acc + p
            return acc + b_ref[...]                             # f32 epilogue

        # conv1 + bn1 (scale folded) + relu -- never leaves VMEM.
        buf[pad_rows:pad_rows + HW, :] = x                      # aligned interior store
        y1 = jnp.maximum(conv3x3(w1_ref, b1_ref), 0.0)          # (HW, C_PAD) f32

        # conv2 + bn2 + residual + relu (stride=1, downsample=None -> residual is the input).
        buf[pad_rows:pad_rows + HW, :] = y1                     # reuse same scratch, halo still zero
        y2 = conv3x3(w2_ref, b2_ref)

        out_ref[...] = jnp.maximum(y2 + x, 0.0).astype(out_ref.dtype)

    return kernel


def _fold_conv_bn(w, gamma, beta, mean, var, eps=1e-5):
    """Fold inference-mode BN into the conv weights.

    Returns ((9, C_PAD, C_PAD) bf16 per-tap weights, (1, C_PAD) f32 bias), zero-padded in the
    extra channel lanes so padding lanes stay exactly zero through the whole block.
    """
    cout, cin = w.shape[0], w.shape[1]
    scale = gamma / jnp.sqrt(var + eps)                             # (Cout,)
    bias = beta - mean * scale                                      # (Cout,)
    w_hwio = jnp.transpose(w, (2, 3, 1, 0)) * scale[None, None, None, :]   # (3,3,Cin,Cout)
    w_taps = w_hwio.reshape(9, cin, cout)
    w_taps = jnp.pad(w_taps, ((0, 0), (0, C_PAD - cin), (0, C_PAD - cout)))
    bias = jnp.pad(bias, (0, C_PAD - cout))
    return w_taps.astype(jnp.bfloat16), bias[None, :].astype(jnp.float32)


def basic_block_forward(x_nchw, params):
    """BasicBlock forward. x_nchw: [N, Cin, H, W] (PyTorch convention). Returns [N, Cout, H, W]."""
    N, Cin, H, W = x_nchw.shape
    Cout = params["w1"].shape[0]
    assert Cin == Cout, "stride=1 / downsample=None BasicBlock requires inplanes == planes"
    assert Cin <= C_PAD and (H * W) % 8 == 0

    HW = H * W
    pad_rows = ((W + 1 + 7) // 8) * 8        # halo rows above/below, sublane aligned (>= W+1)

    # NCHW -> lane-dense (N*H*W, C_PAD) activation slab (channel zero-padding in the wrapper).
    x_rows = jnp.transpose(x_nchw, (0, 2, 3, 1)).reshape(N * HW, Cin).astype(jnp.float32)
    x_rows = jnp.pad(x_rows, ((0, 0), (0, C_PAD - Cin)))

    w1f, b1 = _fold_conv_bn(params["w1"], params["g1"], params["b1"], params["m1"], params["v1"])
    w2f, b2 = _fold_conv_bn(params["w2"], params["g2"], params["b2"], params["m2"], params["v2"])

    kernel = _make_kernel(H, W, pad_rows)

    out_rows = pl.pallas_call(
        kernel,
        out_shape=jax.ShapeDtypeStruct((N * HW, C_PAD), jnp.float32),
        grid=(N,),
        in_specs=[
            pl.BlockSpec((HW, C_PAD), lambda n: (n, 0)),
            pl.BlockSpec((9, C_PAD, C_PAD), lambda n: (0, 0, 0)),
            pl.BlockSpec((1, C_PAD), lambda n: (0, 0)),
            pl.BlockSpec((9, C_PAD, C_PAD), lambda n: (0, 0, 0)),
            pl.BlockSpec((1, C_PAD), lambda n: (0, 0)),
        ],
        out_specs=pl.BlockSpec((HW, C_PAD), lambda n: (n, 0)),
        scratch_shapes=[
            pltpu.VMEM((HW + 2 * pad_rows, C_PAD), jnp.float32),   # flat halo-padded activation
        ],
        compiler_params=pltpu.CompilerParams(
            dimension_semantics=("parallel",),
            vmem_limit_bytes=32 * 1024 * 1024,
        ),
    )(x_rows, w1f, b1, w2f, b2)

    # Recover the NCHW view the PyTorch spec expects (slice off channel padding).
    out = out_rows[:, :Cout].reshape(N, H, W, Cout)
    return jnp.transpose(out, (0, 3, 1, 2))


def _reference_forward(x_nchw, params):
    """Pure-JAX f32 reference (lax conv) for the correctness check."""
    def conv(x, w):
        return jax.lax.conv_general_dilated(
            x, w, window_strides=(1, 1), padding=((1, 1), (1, 1)),
            dimension_numbers=("NCHW", "OIHW", "NCHW"))

    def bn(x, g, b, m, v, eps=1e-5):
        inv = g / jnp.sqrt(v + eps)
        return x * inv[None, :, None, None] + (b - m * inv)[None, :, None, None]

    out = jax.nn.relu(bn(conv(x_nchw, params["w1"]),
                         params["g1"], params["b1"], params["m1"], params["v1"]))
    out = bn(conv(out, params["w2"]),
             params["g2"], params["b2"], params["m2"], params["v2"])
    return jax.nn.relu(out + x_nchw)


if __name__ == "__main__":
    N, C, H, W = 2, 4, 16, 16   # inplanes = planes = 4, stride = 1, downsample = None
    key = jax.random.PRNGKey(0)
    ks = jax.random.split(key, 11)

    x = jax.random.normal(ks[0], (N, C, H, W), jnp.float32)

    params = {
        "w1": jax.random.normal(ks[1], (C, C, 3, 3), jnp.float32) * 0.1,
        "w2": jax.random.normal(ks[2], (C, C, 3, 3), jnp.float32) * 0.1,
        "g1": jax.random.uniform(ks[3], (C,), jnp.float32, 0.5, 1.5),
        "b1": jax.random.normal(ks[4], (C,), jnp.float32) * 0.1,
        "m1": jax.random.normal(ks[5], (C,), jnp.float32) * 0.1,
        "v1": jax.random.uniform(ks[6], (C,), jnp.float32, 0.5, 1.5),
        "g2": jax.random.uniform(ks[7], (C,), jnp.float32, 0.5, 1.5),
        "b2": jax.random.normal(ks[8], (C,), jnp.float32) * 0.1,
        "m2": jax.random.normal(ks[9], (C,), jnp.float32) * 0.1,
        "v2": jax.random.uniform(ks[10], (C,), jnp.float32, 0.5, 1.5),
    }

    out = jax.block_until_ready(basic_block_forward(x, params))
    ref = jax.block_until_ready(_reference_forward(x, params))

    assert out.shape == (N, C, H, W)
    err = float(jnp.max(jnp.abs(out - ref)))
    # Tolerance sized for bf16 MXU inputs (f32 accumulation / epilogue); f32 reference.
    assert jnp.allclose(out, ref, atol=2e-2, rtol=2e-2), err
    print("KERNEL_OK")
</pallas_src>

<mosaic_0001>
module attributes {stable_mosaic.version = 11 : i64} {
  func.func @kernel(%arg0: i32, %arg1: memref<256x128xf32, #tpu.memory_space<vmem>>, %arg2: memref<9x128x128xbf16, #tpu.memory_space<vmem>>, %arg3: memref<1x128xf32, #tpu.memory_space<vmem>>, %arg4: memref<9x128x128xbf16, #tpu.memory_space<vmem>>, %arg5: memref<1x128xf32, #tpu.memory_space<vmem>>, %arg6: memref<256x128xf32, #tpu.memory_space<vmem>>, %arg7: memref<304x128xf32, #tpu.memory_space<vmem>>) attributes {dimension_semantics = [#tpu.dimension_semantics<parallel>], iteration_bounds = array<i64: 2>, scalar_prefetch = 0 : i64, scratch_operands = 1 : i64, tpu.core_type = #tpu.core_type<tc>, window_params = [{transform_indices = @transform_0, window_bounds = array<i64: 256, 128>}, {pipeline_mode = #tpu.pipeline_mode<synchronous>, transform_indices = @transform_1, window_bounds = array<i64: 9, 128, 128>}, {pipeline_mode = #tpu.pipeline_mode<synchronous>, transform_indices = @transform_2, window_bounds = array<i64: 1, 128>}, {pipeline_mode = #tpu.pipeline_mode<synchronous>, transform_indices = @transform_3, window_bounds = array<i64: 9, 128, 128>}, {pipeline_mode = #tpu.pipeline_mode<synchronous>, transform_indices = @transform_4, window_bounds = array<i64: 1, 128>}, {transform_indices = @transform_5, window_bounds = array<i64: 256, 128>}]} {
    %c0 = arith.constant 0 : index
    %c0_0 = arith.constant 0 : index
    %0 = vector.load %arg1[%c0, %c0_0] : memref<256x128xf32, #tpu.memory_space<vmem>>, vector<256x128xf32>
    %1 = tpu.iota {dimensions = array<i32: 0>} : vector<256x1xi32>
    %c16_i32 = arith.constant 16 : i32
    %c0_i32 = arith.constant 0 : i32
    %2 = arith.cmpi eq, %c16_i32, %c0_i32 : i32
    %c1_i32 = arith.constant 1 : i32
    %3 = arith.select %2, %c1_i32, %c16_i32 : i32
    %4 = vector.broadcast %3 : i32 to vector<256x1xi32>
    %5 = arith.remsi %1, %4 : vector<256x1xi32>
    %c0_i32_1 = arith.constant 0 : i32
    %6 = vector.broadcast %c0_i32_1 : i32 to vector<256x1xi32>
    %7 = arith.cmpi ne, %5, %6 : vector<256x1xi32>
    %c0_i32_2 = arith.constant 0 : i32
    %8 = vector.broadcast %c0_i32_2 : i32 to vector<256x1xi32>
    %9 = arith.cmpi slt, %5, %8 : vector<256x1xi32>
    %c0_i32_3 = arith.constant 0 : i32
    %10 = arith.cmpi slt, %3, %c0_i32_3 : i32
    %11 = vector.broadcast %10 : i1 to vector<256x1xi1>
    %12 = vector.broadcast %11 : vector<256x1xi1> to vector<256x1xi1>
    %13 = arith.xori %9, %12 : vector<256x1xi1>
    %14 = arith.andi %13, %7 : vector<256x1xi1>
    %15 = vector.broadcast %3 : i32 to vector<256x1xi32>
    %16 = arith.addi %5, %15 : vector<256x1xi32>
    %17 = arith.select %14, %16, %5 : vector<256x1xi1>, vector<256x1xi32>
    %c0_i32_4 = arith.constant 0 : i32
    %18 = vector.broadcast %c0_i32_4 : i32 to vector<256x1xi32>
    %19 = arith.cmpi sgt, %17, %18 : vector<256x1xi32>
    %c15_i32 = arith.constant 15 : i32
    %20 = vector.broadcast %c15_i32 : i32 to vector<256x1xi32>
    %21 = arith.cmpi slt, %17, %20 : vector<256x1xi32>
    %cst = arith.constant 0.000000e+00 : f32
    %22 = vector.broadcast %cst : f32 to vector<24x128xf32>
    %c0_5 = arith.constant 0 : index
    %c0_6 = arith.constant 0 : index
    %23 = vector.load %arg7[%c0_5, %c0_6] : memref<304x128xf32, #tpu.memory_space<vmem>>, vector<24x128xf32>
    tpu.vector_store %arg7[%c0_5, %c0_6], %22 {strides = array<i32>} : memref<304x128xf32, #tpu.memory_space<vmem>>, vector<24x128xf32>,
    %c280 = arith.constant 280 : index
    %c0_7 = arith.constant 0 : index
    %24 = vector.load %arg7[%c280, %c0_7] : memref<304x128xf32, #tpu.memory_space<vmem>>, vector<24x128xf32>
    tpu.vector_store %arg7[%c280, %c0_7], %22 {strides = array<i32>} : memref<304x128xf32, #tpu.memory_space<vmem>>, vector<24x128xf32>,
    %c24 = arith.constant 24 : index
    %c0_8 = arith.constant 0 : index
    %25 = vector.load %arg7[%c24, %c0_8] : memref<304x128xf32, #tpu.memory_space<vmem>>, vector<256x128xf32>
    tpu.vector_store %arg7[%c24, %c0_8], %0 {strides = array<i32>} : memref<304x128xf32, #tpu.memory_space<vmem>>, vector<256x128xf32>,
    %c7 = arith.constant 7 : index
    %c0_9 = arith.constant 0 : index
    %26 = vector.load %arg7[%c7, %c0_9] : memref<304x128xf32, #tpu.memory_space<vmem>>, vector<256x128xf32>
    %cst_10 = arith.constant 0.000000e+00 : f32
    %27 = vector.shape_cast %19 : vector<256x1xi1> to vector<256x1xi1>
    %28 = vector.broadcast %27 : vector<256x1xi1> to vector<256x128xi1>
    %29 = vector.broadcast %cst_10 : f32 to vector<256x128xf32>
    %30 = arith.select %28, %26, %29 : vector<256x128xi1>, vector<256x128xf32>
    %31 = arith.truncf %30 : vector<256x128xf32> to vector<256x128xbf16>
    %c0_11 = arith.constant 0 : index
    %c0_12 = arith.constant 0 : index
    %c0_13 = arith.constant 0 : index
    %32 = vector.load %arg2[%c0_11, %c0_12, %c0_13] : memref<9x128x128xbf16, #tpu.memory_space<vmem>>, vector<1x128x128xbf16>
    %33 = vector.shape_cast %32 : vector<1x128x128xbf16> to vector<128x128xbf16>
    %cst_14 = arith.constant dense<0.000000e+00> : vector<256x128xf32>
    %34 = tpu.matmul %31, %33, %cst_14 {dimension_numbers = #tpu.dot_dimension_numbers<[1], [0], [0], [1], [0, 0, 1, 1], [], []>} : vector<256x128xbf16>, vector<128x128xbf16>, vector<256x128xf32> -> vector<256x128xf32>
    %c8 = arith.constant 8 : index
    %c0_15 = arith.constant 0 : index
    %35 = vector.load %arg7[%c8, %c0_15] : memref<304x128xf32, #tpu.memory_space<vmem>>, vector<256x128xf32>
    %36 = arith.truncf %35 : vector<256x128xf32> to vector<256x128xbf16>
    %c1 = arith.constant 1 : index
    %c0_16 = arith.constant 0 : index
    %c0_17 = arith.constant 0 : index
    %37 = vector.load %arg2[%c1, %c0_16, %c0_17] : memref<9x128x128xbf16, #tpu.memory_space<vmem>>, vector<1x128x128xbf16>
    %38 = vector.shape_cast %37 : vector<1x128x128xbf16> to vector<128x128xbf16>
    %cst_18 = arith.constant dense<0.000000e+00> : vector<256x128xf32>
    %39 = tpu.matmul %36, %38, %cst_18 {dimension_numbers = #tpu.dot_dimension_numbers<[1], [0], [0], [1], [0, 0, 1, 1], [], []>} : vector<256x128xbf16>, vector<128x128xbf16>, vector<256x128xf32> -> vector<256x128xf32>
    %40 = arith.addf %34, %39 : vector<256x128xf32>
    %c9 = arith.constant 9 : index
    %c0_19 = arith.constant 0 : index
    %41 = vector.load %arg7[%c9, %c0_19] : memref<304x128xf32, #tpu.memory_space<vmem>>, vector<256x128xf32>
    %cst_20 = arith.constant 0.000000e+00 : f32
    %42 = vector.shape_cast %21 : vector<256x1xi1> to vector<256x1xi1>
    %43 = vector.broadcast %42 : vector<256x1xi1> to vector<256x128xi1>
    %44 = vector.broadcast %cst_20 : f32 to vector<256x128xf32>
    %45 = arith.select %43, %41, %44 : vector<256x128xi1>, vector<256x128xf32>
    %46 = arith.truncf %45 : vector<256x128xf32> to vector<256x128xbf16>
    %c2 = arith.constant 2 : index
    %c0_21 = arith.constant 0 : index
    %c0_22 = arith.constant 0 : index
    %47 = vector.load %arg2[%c2, %c0_21, %c0_22] : memref<9x128x128xbf16, #tpu.memory_space<vmem>>, vector<1x128x128xbf16>
    %48 = vector.shape_cast %47 : vector<1x128x128xbf16> to vector<128x128xbf16>
    %cst_23 = arith.constant dense<0.000000e+00> : vector<256x128xf32>
    %49 = tpu.matmul %46, %48, %cst_23 {dimension_numbers = #tpu.dot_dimension_numbers<[1], [0], [0], [1], [0, 0, 1, 1], [], []>} : vector<256x128xbf16>, vector<128x128xbf16>, vector<256x128xf32> -> vector<256x128xf32>
    %50 = arith.addf %40, %49 : vector<256x128xf32>
    %c23 = arith.constant 23 : index
    %c0_24 = arith.constant 0 : index
    %51 = vector.load %arg7[%c23, %c0_24] : memref<304x128xf32, #tpu.memory_space<vmem>>, vector<256x128xf32>
    %cst_25 = arith.constant 0.000000e+00 : f32
    %52 = vector.shape_cast %19 : vector<256x1xi1> to vector<256x1xi1>
    %53 = vector.broadcast %52 : vector<256x1xi1> to vector<256x128xi1>
    %54 = vector.broadcast %cst_25 : f32 to vector<256x128xf32>
    %55 = arith.select %53, %51, %54 : vector<256x128xi1>, vector<256x128xf32>
    %56 = arith.truncf %55 : vector<256x128xf32> to vector<256x128xbf16>
    %c3 = arith.constant 3 : index
    %c0_26 = arith.constant 0 : index
    %c0_27 = arith.constant 0 : index
    %57 = vector.load %arg2[%c3, %c0_26, %c0_27] : memref<9x128x128xbf16, #tpu.memory_space<vmem>>, vector<1x128x128xbf16>
    %58 = vector.shape_cast %57 : vector<1x128x128xbf16> to vector<128x128xbf16>
    %cst_28 = arith.constant dense<0.000000e+00> : vector<256x128xf32>
    %59 = tpu.matmul %56, %58, %cst_28 {dimension_numbers = #tpu.dot_dimension_numbers<[1], [0], [0], [1], [0, 0, 1, 1], [], []>} : vector<256x128xbf16>, vector<128x128xbf16>, vector<256x128xf32> -> vector<256x128xf32>
    %60 = arith.addf %50, %59 : vector<256x128xf32>
    %c24_29 = arith.constant 24 : index
    %c0_30 = arith.constant 0 : index
    %61 = vector.load %arg7[%c24_29, %c0_30] : memref<304x128xf32, #tpu.memory_space<vmem>>, vector<256x128xf32>
    %62 = arith.truncf %61 : vector<256x128xf32> to vector<256x128xbf16>
    %c4 = arith.constant 4 : index
    %c0_31 = arith.constant 0 : index
    %c0_32 = arith.constant 0 : index
    %63 = vector.load %arg2[%c4, %c0_31, %c0_32] : memref<9x128x128xbf16, #tpu.memory_space<vmem>>, vector<1x128x128xbf16>
    %64 = vector.shape_cast %63 : vector<1x128x128xbf16> to vector<128x128xbf16>
    %cst_33 = arith.constant dense<0.000000e+00> : vector<256x128xf32>
    %65 = tpu.matmul %62, %64, %cst_33 {dimension_numbers = #tpu.dot_dimension_numbers<[1], [0], [0], [1], [0, 0, 1, 1], [], []>} : vector<256x128xbf16>, vector<128x128xbf16>, vector<256x128xf32> -> vector<256x128xf32>
    %66 = arith.addf %60, %65 : vector<256x128xf32>
    %c25 = arith.constant 25 : index
    %c0_34 = arith.constant 0 : index
    %67 = vector.load %arg7[%c25, %c0_34] : memref<304x128xf32, #tpu.memory_space<vmem>>, vector<256x128xf32>
    %cst_35 = arith.constant 0.000000e+00 : f32
    %68 = vector.shape_cast %21 : vector<256x1xi1> to vector<256x1xi1>
    %69 = vector.broadcast %68 : vector<256x1xi1> to vector<256x128xi1>
    %70 = vector.broadcast %cst_35 : f32 to vector<256x128xf32>
    %71 = arith.select %69, %67, %70 : vector<256x128xi1>, vector<256x128xf32>
    %72 = arith.truncf %71 : vector<256x128xf32> to vector<256x128xbf16>
    %c5 = arith.constant 5 : index
    %c0_36 = arith.constant 0 : index
    %c0_37 = arith.constant 0 : index
    %73 = vector.load %arg2[%c5, %c0_36, %c0_37] : memref<9x128x128xbf16, #tpu.memory_space<vmem>>, vector<1x128x128xbf16>
    %74 = vector.shape_cast %73 : vector<1x128x128xbf16> to vector<128x128xbf16>
    %cst_38 = arith.constant dense<0.000000e+00> : vector<256x128xf32>
    %75 = tpu.matmul %72, %74, %cst_38 {dimension_numbers = #tpu.dot_dimension_numbers<[1], [0], [0], [1], [0, 0, 1, 1], [], []>} : vector<256x128xbf16>, vector<128x128xbf16>, vector<256x128xf32> -> vector<256x128xf32>
    %76 = arith.addf %66, %75 : vector<256x128xf32>
    %c39 = arith.constant 39 : index
    %c0_39 = arith.constant 0 : index
    %77 = vector.load %arg7[%c39, %c0_39] : memref<304x128xf32, #tpu.memory_space<vmem>>, vector<256x128xf32>
    %cst_40 = arith.constant 0.000000e+00 : f32
    %78 = vector.shape_cast %19 : vector<256x1xi1> to vector<256x1xi1>
    %79 = vector.broadcast %78 : vector<256x1xi1> to vector<256x128xi1>
    %80 = vector.broadcast %cst_40 : f32 to vector<256x128xf32>
    %81 = arith.select %79, %77, %80 : vector<256x128xi1>, vector<256x128xf32>
    %82 = arith.truncf %81 : vector<256x128xf32> to vector<256x128xbf16>
    %c6 = arith.constant 6 : index
    %c0_41 = arith.constant 0 : index
    %c0_42 = arith.constant 0 : index
    %83 = vector.load %arg2[%c6, %c0_41, %c0_42] : memref<9x128x128xbf16, #tpu.memory_space<vmem>>, vector<1x128x128xbf16>
    %84 = vector.shape_cast %83 : vector<1x128x128xbf16> to vector<128x128xbf16>
    %cst_43 = arith.constant dense<0.000000e+00> : vector<256x128xf32>
    %85 = tpu.matmul %82, %84, %cst_43 {dimension_numbers = #tpu.dot_dimension_numbers<[1], [0], [0], [1], [0, 0, 1, 1], [], []>} : vector<256x128xbf16>, vector<128x128xbf16>, vector<256x128xf32> -> vector<256x128xf32>
    %86 = arith.addf %76, %85 : vector<256x128xf32>
    %c40 = arith.constant 40 : index
    %c0_44 = arith.constant 0 : index
    %87 = vector.load %arg7[%c40, %c0_44] : memref<304x128xf32, #tpu.memory_space<vmem>>, vector<256x128xf32>
    %88 = arith.truncf %87 : vector<256x128xf32> to vector<256x128xbf16>
    %c7_45 = arith.constant 7 : index
    %c0_46 = arith.constant 0 : index
    %c0_47 = arith.constant 0 : index
    %89 = vector.load %arg2[%c7_45, %c0_46, %c0_47] : memref<9x128x128xbf16, #tpu.memory_space<vmem>>, vector<1x128x128xbf16>
    %90 = vector.shape_cast %89 : vector<1x128x128xbf16> to vector<128x128xbf16>
    %cst_48 = arith.constant dense<0.000000e+00> : vector<256x128xf32>
    %91 = tpu.matmul %88, %90, %cst_48 {dimension_numbers = #tpu.dot_dimension_numbers<[1], [0], [0], [1], [0, 0, 1, 1], [], []>} : vector<256x128xbf16>, vector<128x128xbf16>, vector<256x128xf32> -> vector<256x128xf32>
    %92 = arith.addf %86, %91 : vector<256x128xf32>
    %c41 = arith.constant 41 : index
    %c0_49 = arith.constant 0 : index
    %93 = vector.load %arg7[%c41, %c0_49] : memref<304x128xf32, #tpu.memory_space<vmem>>, vector<256x128xf32>
    %cst_50 = arith.constant 0.000000e+00 : f32
    %94 = vector.shape_cast %21 : vector<256x1xi1> to vector<256x1xi1>
    %95 = vector.broadcast %94 : vector<256x1xi1> to vector<256x128xi1>
    %96 = vector.broadcast %cst_50 : f32 to vector<256x128xf32>
    %97 = arith.select %95, %93, %96 : vector<256x128xi1>, vector<256x128xf32>
    %98 = arith.truncf %97 : vector<256x128xf32> to vector<256x128xbf16>
    %c8_51 = arith.constant 8 : index
    %c0_52 = arith.constant 0 : index
    %c0_53 = arith.constant 0 : index
    %99 = vector.load %arg2[%c8_51, %c0_52, %c0_53] : memref<9x128x128xbf16, #tpu.memory_space<vmem>>, vector<1x128x128xbf16>
    %100 = vector.shape_cast %99 : vector<1x128x128xbf16> to vector<128x128xbf16>
    %cst_54 = arith.constant dense<0.000000e+00> : vector<256x128xf32>
    %101 = tpu.matmul %98, %100, %cst_54 {dimension_numbers = #tpu.dot_dimension_numbers<[1], [0], [0], [1], [0, 0, 1, 1], [], []>} : vector<256x128xbf16>, vector<128x128xbf16>, vector<256x128xf32> -> vector<256x128xf32>
    %102 = arith.addf %92, %101 : vector<256x128xf32>
    %c0_55 = arith.constant 0 : index
    %c0_56 = arith.constant 0 : index
    %103 = vector.load %arg3[%c0_55, %c0_56] : memref<1x128xf32, #tpu.memory_space<vmem>>, vector<1x128xf32>
    %104 = vector.broadcast %103 : vector<1x128xf32> to vector<256x128xf32>
    %105 = arith.addf %102, %104 : vector<256x128xf32>
    %cst_57 = arith.constant 0.000000e+00 : f32
    %106 = vector.broadcast %cst_57 : f32 to vector<256x128xf32>
    %107 = arith.maximumf %105, %106 : vector<256x128xf32>
    %c24_58 = arith.constant 24 : index
    %c0_59 = arith.constant 0 : index
    %108 = vector.load %arg7[%c24_58, %c0_59] : memref<304x128xf32, #tpu.memory_space<vmem>>, vector<256x128xf32>
    tpu.vector_store %arg7[%c24_58, %c0_59], %107 {strides = array<i32>} : memref<304x128xf32, #tpu.memory_space<vmem>>, vector<256x128xf32>,
    %c7_60 = arith.constant 7 : index
    %c0_61 = arith.constant 0 : index
    %109 = vector.load %arg7[%c7_60, %c0_61] : memref<304x128xf32, #tpu.memory_space<vmem>>, vector<256x128xf32>
    %cst_62 = arith.constant 0.000000e+00 : f32
    %110 = vector.shape_cast %19 : vector<256x1xi1> to vector<256x1xi1>
    %111 = vector.broadcast %110 : vector<256x1xi1> to vector<256x128xi1>
    %112 = vector.broadcast %cst_62 : f32 to vector<256x128xf32>
    %113 = arith.select %111, %109, %112 : vector<256x128xi1>, vector<256x128xf32>
    %114 = arith.truncf %113 : vector<256x128xf32> to vector<256x128xbf16>
    %c0_63 = arith.constant 0 : index
    %c0_64 = arith.constant 0 : index
    %c0_65 = arith.constant 0 : index
    %115 = vector.load %arg4[%c0_63, %c0_64, %c0_65] : memref<9x128x128xbf16, #tpu.memory_space<vmem>>, vector<1x128x128xbf16>
    %116 = vector.shape_cast %115 : vector<1x128x128xbf16> to vector<128x128xbf16>
    %cst_66 = arith.constant dense<0.000000e+00> : vector<256x128xf32>
    %117 = tpu.matmul %114, %116, %cst_66 {dimension_numbers = #tpu.dot_dimension_numbers<[1], [0], [0], [1], [0, 0, 1, 1], [], []>} : vector<256x128xbf16>, vector<128x128xbf16>, vector<256x128xf32> -> vector<256x128xf32>
    %c8_67 = arith.constant 8 : index
    %c0_68 = arith.constant 0 : index
    %118 = vector.load %arg7[%c8_67, %c0_68] : memref<304x128xf32, #tpu.memory_space<vmem>>, vector<256x128xf32>
    %119 = arith.truncf %118 : vector<256x128xf32> to vector<256x128xbf16>
    %c1_69 = arith.constant 1 : index
    %c0_70 = arith.constant 0 : index
    %c0_71 = arith.constant 0 : index
    %120 = vector.load %arg4[%c1_69, %c0_70, %c0_71] : memref<9x128x128xbf16, #tpu.memory_space<vmem>>, vector<1x128x128xbf16>
    %121 = vector.shape_cast %120 : vector<1x128x128xbf16> to vector<128x128xbf16>
    %cst_72 = arith.constant dense<0.000000e+00> : vector<256x128xf32>
    %122 = tpu.matmul %119, %121, %cst_72 {dimension_numbers = #tpu.dot_dimension_numbers<[1], [0], [0], [1], [0, 0, 1, 1], [], []>} : vector<256x128xbf16>, vector<128x128xbf16>, vector<256x128xf32> -> vector<256x128xf32>
    %123 = arith.addf %117, %122 : vector<256x128xf32>
    %c9_73 = arith.constant 9 : index
    %c0_74 = arith.constant 0 : index
    %124 = vector.load %arg7[%c9_73, %c0_74] : memref<304x128xf32, #tpu.memory_space<vmem>>, vector<256x128xf32>
    %cst_75 = arith.constant 0.000000e+00 : f32
    %125 = vector.shape_cast %21 : vector<256x1xi1> to vector<256x1xi1>
    %126 = vector.broadcast %125 : vector<256x1xi1> to vector<256x128xi1>
    %127 = vector.broadcast %cst_75 : f32 to vector<256x128xf32>
    %128 = arith.select %126, %124, %127 : vector<256x128xi1>, vector<256x128xf32>
    %129 = arith.truncf %128 : vector<256x128xf32> to vector<256x128xbf16>
    %c2_76 = arith.constant 2 : index
    %c0_77 = arith.constant 0 : index
    %c0_78 = arith.constant 0 : index
    %130 = vector.load %arg4[%c2_76, %c0_77, %c0_78] : memref<9x128x128xbf16, #tpu.memory_space<vmem>>, vector<1x128x128xbf16>
    %131 = vector.shape_cast %130 : vector<1x128x128xbf16> to vector<128x128xbf16>
    %cst_79 = arith.constant dense<0.000000e+00> : vector<256x128xf32>
    %132 = tpu.matmul %129, %131, %cst_79 {dimension_numbers = #tpu.dot_dimension_numbers<[1], [0], [0], [1], [0, 0, 1, 1], [], []>} : vector<256x128xbf16>, vector<128x128xbf16>, vector<256x128xf32> -> vector<256x128xf32>
    %133 = arith.addf %123, %132 : vector<256x128xf32>
    %c23_80 = arith.constant 23 : index
    %c0_81 = arith.constant 0 : index
    %134 = vector.load %arg7[%c23_80, %c0_81] : memref<304x128xf32, #tpu.memory_space<vmem>>, vector<256x128xf32>
    %cst_82 = arith.constant 0.000000e+00 : f32
    %135 = vector.shape_cast %19 : vector<256x1xi1> to vector<256x1xi1>
    %136 = vector.broadcast %135 : vector<256x1xi1> to vector<256x128xi1>
    %137 = vector.broadcast %cst_82 : f32 to vector<256x128xf32>
    %138 = arith.select %136, %134, %137 : vector<256x128xi1>, vector<256x128xf32>
    %139 = arith.truncf %138 : vector<256x128xf32> to vector<256x128xbf16>
    %c3_83 = arith.constant 3 : index
    %c0_84 = arith.constant 0 : index
    %c0_85 = arith.constant 0 : index
    %140 = vector.load %arg4[%c3_83, %c0_84, %c0_85] : memref<9x128x128xbf16, #tpu.memory_space<vmem>>, vector<1x128x128xbf16>
    %141 = vector.shape_cast %140 : vector<1x128x128xbf16> to vector<128x128xbf16>
    %cst_86 = arith.constant dense<0.000000e+00> : vector<256x128xf32>
    %142 = tpu.matmul %139, %141, %cst_86 {dimension_numbers = #tpu.dot_dimension_numbers<[1], [0], [0], [1], [0, 0, 1, 1], [], []>} : vector<256x128xbf16>, vector<128x128xbf16>, vector<256x128xf32> -> vector<256x128xf32>
    %143 = arith.addf %133, %142 : vector<256x128xf32>
    %c24_87 = arith.constant 24 : index
    %c0_88 = arith.constant 0 : index
    %144 = vector.load %arg7[%c24_87, %c0_88] : memref<304x128xf32, #tpu.memory_space<vmem>>, vector<256x128xf32>
    %145 = arith.truncf %144 : vector<256x128xf32> to vector<256x128xbf16>
    %c4_89 = arith.constant 4 : index
    %c0_90 = arith.constant 0 : index
    %c0_91 = arith.constant 0 : index
    %146 = vector.load %arg4[%c4_89, %c0_90, %c0_91] : memref<9x128x128xbf16, #tpu.memory_space<vmem>>, vector<1x128x128xbf16>
    %147 = vector.shape_cast %146 : vector<1x128x128xbf16> to vector<128x128xbf16>
    %cst_92 = arith.constant dense<0.000000e+00> : vector<256x128xf32>
    %148 = tpu.matmul %145, %147, %cst_92 {dimension_numbers = #tpu.dot_dimension_numbers<[1], [0], [0], [1], [0, 0, 1, 1], [], []>} : vector<256x128xbf16>, vector<128x128xbf16>, vector<256x128xf32> -> vector<256x128xf32>
    %149 = arith.addf %143, %148 : vector<256x128xf32>
    %c25_93 = arith.constant 25 : index
    %c0_94 = arith.constant 0 : index
    %150 = vector.load %arg7[%c25_93, %c0_94] : memref<304x128xf32, #tpu.memory_space<vmem>>, vector<256x128xf32>
    %cst_95 = arith.constant 0.000000e+00 : f32
    %151 = vector.shape_cast %21 : vector<256x1xi1> to vector<256x1xi1>
    %152 = vector.broadcast %151 : vector<256x1xi1> to vector<256x128xi1>
    %153 = vector.broadcast %cst_95 : f32 to vector<256x128xf32>
    %154 = arith.select %152, %150, %153 : vector<256x128xi1>, vector<256x128xf32>
    %155 = arith.truncf %154 : vector<256x128xf32> to vector<256x128xbf16>
    %c5_96 = arith.constant 5 : index
    %c0_97 = arith.constant 0 : index
    %c0_98 = arith.constant 0 : index
    %156 = vector.load %arg4[%c5_96, %c0_97, %c0_98] : memref<9x128x128xbf16, #tpu.memory_space<vmem>>, vector<1x128x128xbf16>
    %157 = vector.shape_cast %156 : vector<1x128x128xbf16> to vector<128x128xbf16>
    %cst_99 = arith.constant dense<0.000000e+00> : vector<256x128xf32>
    %158 = tpu.matmul %155, %157, %cst_99 {dimension_numbers = #tpu.dot_dimension_numbers<[1], [0], [0], [1], [0, 0, 1, 1], [], []>} : vector<256x128xbf16>, vector<128x128xbf16>, vector<256x128xf32> -> vector<256x128xf32>
    %159 = arith.addf %149, %158 : vector<256x128xf32>
    %c39_100 = arith.constant 39 : index
    %c0_101 = arith.constant 0 : index
    %160 = vector.load %arg7[%c39_100, %c0_101] : memref<304x128xf32, #tpu.memory_space<vmem>>, vector<256x128xf32>
    %cst_102 = arith.constant 0.000000e+00 : f32
    %161 = vector.shape_cast %19 : vector<256x1xi1> to vector<256x1xi1>
    %162 = vector.broadcast %161 : vector<256x1xi1> to vector<256x128xi1>
    %163 = vector.broadcast %cst_102 : f32 to vector<256x128xf32>
    %164 = arith.select %162, %160, %163 : vector<256x128xi1>, vector<256x128xf32>
    %165 = arith.truncf %164 : vector<256x128xf32> to vector<256x128xbf16>
    %c6_103 = arith.constant 6 : index
    %c0_104 = arith.constant 0 : index
    %c0_105 = arith.constant 0 : index
    %166 = vector.load %arg4[%c6_103, %c0_104, %c0_105] : memref<9x128x128xbf16, #tpu.memory_space<vmem>>, vector<1x128x128xbf16>
    %167 = vector.shape_cast %166 : vector<1x128x128xbf16> to vector<128x128xbf16>
    %cst_106 = arith.constant dense<0.000000e+00> : vector<256x128xf32>
    %168 = tpu.matmul %165, %167, %cst_106 {dimension_numbers = #tpu.dot_dimension_numbers<[1], [0], [0], [1], [0, 0, 1, 1], [], []>} : vector<256x128xbf16>, vector<128x128xbf16>, vector<256x128xf32> -> vector<256x128xf32>
    %169 = arith.addf %159, %168 : vector<256x128xf32>
    %c40_107 = arith.constant 40 : index
    %c0_108 = arith.constant 0 : index
    %170 = vector.load %arg7[%c40_107, %c0_108] : memref<304x128xf32, #tpu.memory_space<vmem>>, vector<256x128xf32>
    %171 = arith.truncf %170 : vector<256x128xf32> to vector<256x128xbf16>
    %c7_109 = arith.constant 7 : index
    %c0_110 = arith.constant 0 : index
    %c0_111 = arith.constant 0 : index
    %172 = vector.load %arg4[%c7_109, %c0_110, %c0_111] : memref<9x128x128xbf16, #tpu.memory_space<vmem>>, vector<1x128x128xbf16>
    %173 = vector.shape_cast %172 : vector<1x128x128xbf16> to vector<128x128xbf16>
    %cst_112 = arith.constant dense<0.000000e+00> : vector<256x128xf32>
    %174 = tpu.matmul %171, %173, %cst_112 {dimension_numbers = #tpu.dot_dimension_numbers<[1], [0], [0], [1], [0, 0, 1, 1], [], []>} : vector<256x128xbf16>, vector<128x128xbf16>, vector<256x128xf32> -> vector<256x128xf32>
    %175 = arith.addf %169, %174 : vector<256x128xf32>
    %c41_113 = arith.constant 41 : index
    %c0_114 = arith.constant 0 : index
    %176 = vector.load %arg7[%c41_113, %c0_114] : memref<304x128xf32, #tpu.memory_space<vmem>>, vector<256x128xf32>
    %cst_115 = arith.constant 0.000000e+00 : f32
    %177 = vector.shape_cast %21 : vector<256x1xi1> to vector<256x1xi1>
    %178 = vector.broadcast %177 : vector<256x1xi1> to vector<256x128xi1>
    %179 = vector.broadcast %cst_115 : f32 to vector<256x128xf32>
    %180 = arith.select %178, %176, %179 : vector<256x128xi1>, vector<256x128xf32>
    %181 = arith.truncf %180 : vector<256x128xf32> to vector<256x128xbf16>
    %c8_116 = arith.constant 8 : index
    %c0_117 = arith.constant 0 : index
    %c0_118 = arith.constant 0 : index
    %182 = vector.load %arg4[%c8_116, %c0_117, %c0_118] : memref<9x128x128xbf16, #tpu.memory_space<vmem>>, vector<1x128x128xbf16>
    %183 = vector.shape_cast %182 : vector<1x128x128xbf16> to vector<128x128xbf16>
    %cst_119 = arith.constant dense<0.000000e+00> : vector<256x128xf32>
    %184 = tpu.matmul %181, %183, %cst_119 {dimension_numbers = #tpu.dot_dimension_numbers<[1], [0], [0], [1], [0, 0, 1, 1], [], []>} : vector<256x128xbf16>, vector<128x128xbf16>, vector<256x128xf32> -> vector<256x128xf32>
    %185 = arith.addf %175, %184 : vector<256x128xf32>
    %c0_120 = arith.constant 0 : index
    %c0_121 = arith.constant 0 : index
    %186 = vector.load %arg5[%c0_120, %c0_121] : memref<1x128xf32, #tpu.memory_space<vmem>>, vector<1x128xf32>
    %187 = vector.broadcast %186 : vector<1x128xf32> to vector<256x128xf32>
    %188 = arith.addf %185, %187 : vector<256x128xf32>
    %189 = arith.addf %188, %0 : vector<256x128xf32>
    %cst_122 = arith.constant 0.000000e+00 : f32
    %190 = vector.broadcast %cst_122 : f32 to vector<256x128xf32>
    %191 = arith.maximumf %189, %190 : vector<256x128xf32>
    %c0_123 = arith.constant 0 : index
    %c0_124 = arith.constant 0 : index
    %192 = vector.load %arg6[%c0_123, %c0_124] : memref<256x128xf32, #tpu.memory_space<vmem>>, vector<256x128xf32>
    tpu.vector_store %arg6[%c0_123, %c0_124], %191 {strides = array<i32>} : memref<256x128xf32, #tpu.memory_space<vmem>>, vector<256x128xf32>,
    return
  }
  func.func @transform_0(%arg0: i32) -> (i32, i32) {
    %c0_i32 = arith.constant 0 : i32
    %c0_i32_0 = arith.constant 0 : i32
    return %arg0, %c0_i32 : i32, i32
  }
  func.func @transform_1(%arg0: i32) -> (i32, i32, i32) {
    %c0_i32 = arith.constant 0 : i32
    %c0_i32_0 = arith.constant 0 : i32
    %c0_i32_1 = arith.constant 0 : i32
    %c0_i32_2 = arith.constant 0 : i32
    return %c0_i32, %c0_i32_0, %c0_i32_1 : i32, i32, i32
  }
  func.func @transform_2(%arg0: i32) -> (i32, i32) {
    %c0_i32 = arith.constant 0 : i32
    %c0_i32_0 = arith.constant 0 : i32
    %c0_i32_1 = arith.constant 0 : i32
    return %c0_i32, %c0_i32_0 : i32, i32
  }
  func.func @transform_3(%arg0: i32) -> (i32, i32, i32) {
    %c0_i32 = arith.constant 0 : i32
    %c0_i32_0 = arith.constant 0 : i32
    %c0_i32_1 = arith.constant 0 : i32
    %c0_i32_2 = arith.constant 0 : i32
    return %c0_i32, %c0_i32_0, %c0_i32_1 : i32, i32, i32
  }
  func.func @transform_4(%arg0: i32) -> (i32, i32) {
    %c0_i32 = arith.constant 0 : i32
    %c0_i32_0 = arith.constant 0 : i32
    %c0_i32_1 = arith.constant 0 : i32
    return %c0_i32, %c0_i32_0 : i32, i32
  }
  func.func @transform_5(%arg0: i32) -> (i32, i32) {
    %c0_i32 = arith.constant 0 : i32
    %c0_i32_0 = arith.constant 0 : i32
    return %arg0, %c0_i32 : i32, i32
  }
}

</mosaic_0001>

<bundles_post_ra>
// kernel: tpu_custom_call.1
= control target key start
LH: loop header
LB: loop body
LE: loop exit
PB: predicated region body
PF: predicated region fallthrough
CT: control target
= control target key end

     0   :  { %10 = vsyncpa [#allocation4], 0  ;;  %s12220_s0 = inlined_call_operand.hbm [shape: f32[512,128], index: 0, kind: input, shape index: {}]   ;;  %s12221_s1 = inlined_call_operand.hbm [shape: bf16[9,128,128], index: 1, kind: input, shape index: {}]   ;;  %s12222_s2 = inlined_call_operand.vmem [shape: f32[1,128], index: 2, kind: input, shape index: {}]   ;;  %s12223_s3 = inlined_call_operand.hbm [shape: bf16[9,128,128], index: 3, kind: input, shape index: {}]   ;;  %s12224_s4 = inlined_call_operand.vmem [shape: f32[1,128], index: 4, kind: input, shape index: {}]   ;;  %s12225_s5 = inlined_call_operand.hbm [shape: f32[512,128], index: 5, kind: output, shape index: {}]  }
   0x1   :  { %12 = vsyncpa [#allocation4 + $0x1], 0 }
   0x2   :  { %13 = vsyncpa [#allocation7], 0 }
   0x3   :  { %14 = vsyncpa [#allocation5], 0 }
   0x4   :  { %16 = vsyncpa [#allocation5 + $0x1], 0  ;;  %s9512_s18 = smov 0   ;;  %s9514_s19 = smov 0  }
   0x5   :  { %s9516_s20 = smov 0   ;;  %s9518_s21 = smov 0  }
   0x6 LB: > { %s9533_s22 = sadd.s32 4294967295, %s9467_s21   ;;  %s7060_s23 = sadd.s32 4294967294, %s9467_s21   ;;  %s9467_s21 = sphi %s9518_s21, %s13005_s21   ;;  %s9463_s20 = sphi %s9516_s20, %s13004_s20   ;;  %s9459_s19 = sphi %s9514_s19, %s13003_s19   ;;  %s9455_s18 = sphi %s9512_s18, %s13002_s18  }
   0x7   : > { %p42_p0 = scmp.ne.s32.totalorder %s9459_s19, %s9455_s18  ;;  %p12226_p1 = scmp.eq.s32.totalorder %s9533_s22, 0 }
   0x8   : > { %p156_p3 = scmp.eq.s32.totalorder %s7060_s23, 1  ;;  %p7061_p5 = scmp.ge.s32.totalorder %s9467_s21, 1 }
   0x9   : > { %p9542_p4 = por %p12226_p1, %p42_p0  ;;  %p163_p7 = scmp.lt.s32.totalorder %s9467_s21, 3 }
   0xa   : > { %p9547_p6 = por %p156_p3, %p42_p0  ;;  %s9469_s27 = smov [#allocation6]  }
   0xb   : > { %s12410_s24 = scalar_select %p9542_p4, 1, 0 }
   0xc   : > { %s12411_s25 = scalar_select %p9547_p6, 1, 0 }
   0xd   : > { %p9552_p8 = pnand %p7061_p5, %p163_p7  ;;  %s175_s28 = sshll.u32 %s9469_s27, 4  ;;  %s176_s28 = int_to_ptr.vmem [resolvable:$true] %s175_s28 }
   0xe   : > { %s9470_s30 = smov [#allocation8]   ;;  %s9330_s7 = scalar_lea.vmem %s176_s28, 9216 }
   0xf   : > { %s12412_s26 = scalar_select %p9552_p8, 1, 0 }
  0x10   : > { %p9110_p9 = pneg %p9552_p8  ;;  %s191_s6 = sshll.u32 %s9470_s30, 4  ;;  %s192_s6 = int_to_ptr.vmem [resolvable:$true] %s191_s6 }
  0x11   : > { %p9331_p13 = scmp.ne.s32.totalorder %s176_s28, %s9330_s7  ;;  %p9338_p5 = scmp.lt.s32.totalorder %s176_s28, %s176_s28 }
  0x12   : > { %p9561_p11 = pnand %p9110_p9, %p12226_p1  ;;  %p9339_p7 = scmp.lt.s32.totalorder %s9330_s7, %s9330_s7 }
  0x14   : > { %p9321_p12 = pneg %p9561_p11  ;;  %p9340_p10 = por %p9339_p7, %p9338_p5 }
  0x16   : > { %p9333_p0 = pnand %p9331_p13, %p9321_p12 }
  0x18   : > { %p9334_p3 = pneg %p9333_p0 }
  0x1a   : > { %p9341_p9 = pnand %p9340_p10, %p9334_p3 }
  0x1c   : > { %9344 = shalt.err (!%p9341_p9)
}
  0x1d   : > { %s9471_s8 = smov 64   ;;  %s9472_s9 = smov 4  }
  0x1e   : > { %9113 = dma.hbm_to_vmem [thread:$0]  (!%p9561_p11), %s12221_s1, 9216, %s176_s28, [#allocation7], %s9471_s8, %s9471_s8, %s9472_s9  }
  0x1f   : > { %s9356_s12 = scalar_lea.vmem %s192_s6, 9216  ;;  %p9364_p2 = scmp.lt.s32.totalorder %s192_s6, %s192_s6 }
  0x20   : > { %p9357_p1 = scmp.ne.s32.totalorder %s192_s6, %s9356_s12  ;;  %p9365_p6 = scmp.lt.s32.totalorder %s9356_s12, %s9356_s12 }
  0x22   : > { %p9359_p13 = pnand %p9357_p1, %p9321_p12  ;;  %p9366_p5 = por %p9365_p6, %p9364_p2 }
  0x24   : > { %p9360_p0 = pneg %p9359_p13 }
  0x26   : > { %p9367_p10 = pnand %p9366_p5, %p9360_p0 }
  0x28   : > { %9370 = shalt.err (!%p9367_p10)
}
  0x29   : > { %9116 = dma.hbm_to_vmem [thread:$0]  (!%p9561_p11), %s12223_s3, 9216, %s192_s6, [#allocation7], %s9471_s8, %s9471_s8, %s9472_s9  }
  0x2a   : > { %s9584_s15 = sadd.s32 1, %s9467_s21   ;;  %s29_s16 = sadd.s32 1, %s9463_s20 }
  0x2b   : > { %s26_s17 = ssub.s32 %s9467_s21, %s9584_s15  ;;  %p36_p1 = scmp.ne.s32.totalorder %s9463_s20, %s9459_s19 }
  0x2c   : > { %p27_p2 = scmp.eq.s32.totalorder %s26_s17, 0  ;;  %p37_p6 = scmp.eq.s32.totalorder %s9467_s21, 0 }
  0x2d   : > { %p12414_p12 = scmp.eq.s32.totalorder %s9533_s22, 1  ;;  %p9127_p7 = scmp.lt.s32.totalorder %s9467_s21, 2 }
  0x2e   : > { %s9600_s27 = scalar_select %p27_p2, %s9463_s20, %s29_s16  }
  0x2f   : > { %p9594_p3 = por %p12414_p12, %p36_p1  ;;  %p38_p9 = por %p37_p6, %p36_p1 }
  0x30   : > { %s208_s28 = sand.u32 1, %s9463_s20   ;;  %s7800_s30 = sshll.u32 %s9467_s21, 12 }
  0x31   : > { %s12415_s23 = scalar_select %p9594_p3, 1, 0 }
  0x32   : > { %s7065_s29 = sshll.u32 %s208_s28, 8  ;;  %s9607_s8 = scalar_lea.hbm %s12220_s0, %s7800_s30 }
  0x33   : > { %s212_s9 = scalar_lea.vmem [#allocation3], %s7065_s29  ;;  %p9611_p11 = pnand %p9127_p7, %p38_p9 }
  0x34   : > { %s219_s10 = sshll.u32 %s212_s9, 4  ;;  %s9615_s12 = scalar_lea.sflag [#allocation4], %s208_s28  ;;  %s9609_s10 = int_to_ptr.vmem [resolvable:$true] %s219_s10 }
  0x35   : > { %s9371_s13 = scalar_lea.hbm %s9607_s8, 4096  ;;  %p9373_p0 = pneg %p9611_p11 }
  0x36   : > { %p9372_p13 = scmp.ne.s32.totalorder %s9607_s8, %s9371_s13  ;;  %s9376_s17 = scalar_lea.hbm %s12220_s0, 8192 }
  0x37   : > { %p9377_p1 = scmp.lt.s32.totalorder %s9607_s8, %s12220_s0  ;;  %p9378_p2 = scmp.lt.s32.totalorder %s9376_s17, %s9371_s13 }
  0x38   : > { %p9374_p5 = pnand %p9373_p0, %p9372_p13 }
  0x39   : > { %p9379_p6 = por %p9378_p2, %p9377_p1 }
  0x3a   : > { %p9375_p10 = pneg %p9374_p5 }
  0x3c   : > { %p9380_p12 = pnand %p9379_p6, %p9375_p10 }
  0x3e   : > { %9383 = shalt.err (!%p9380_p12)
}
  0x3f   : > { %s9384_s28 = scalar_lea.vmem %s9609_s10, 4096  ;;  %s9473_s6 = smov [#allocation3]  }
  0x40   : > { %p9385_p7 = scmp.ne.s32.totalorder %s9609_s10, %s9384_s28  ;;  %s9389_s7 = sshll.u32 %s9473_s6, 4  ;;  %s9390_s7 = int_to_ptr.vmem [resolvable:$false] %s9389_s7 }
  0x41   : > { %s9391_s9 = scalar_lea.vmem %s9390_s7, 8192  ;;  %p9392_p5 = scmp.lt.s32.totalorder %s9609_s10, %s9390_s7 }
  0x42   : > { %p9387_p9 = pnand %p9385_p7, %p9373_p0  ;;  %p9393_p3 = scmp.lt.s32.totalorder %s9391_s9, %s9384_s28 }
  0x44   : > { %p9388_p13 = pneg %p9387_p9  ;;  %p9394_p4 = por %p9393_p3, %p9392_p5 }
  0x46   : > { %p9395_p8 = pnand %p9394_p4, %p9388_p13 }
  0x48   : > { %9398 = shalt.err (!%p9395_p8)
}
  0x49   : > { %s9474_s13 = smov 128   ;;  %s9475_s14 = smov 8  }
  0x4a   : > { %9120 = dma.hbm_to_vmem [thread:$0]  (!%p9611_p11), %s9607_s8, 4096, %s9609_s10, %s9615_s12, %s9474_s13, %s9474_s13, %s9475_s14  }
  0x4b   : > { %p12417_p0 = scmp.ne.s32.totalorder %s12412_s26, 0 }
  0x4d   : > { %231 = sbr.rel (%p12417_p0) target bundleno = 1120 (0x460), region = 40 }
  0x52   : > { %s9639_s16 = sand.u32 1, %s9459_s19   ;;  %p12418_p4 = scmp.ne.s32.totalorder %s12410_s24, 0 }
  0x53   : > { %s7069_s17 = sshll.u32 %s9639_s16, 8  ;;  %s234_s29 = scalar_lea.sflag [#allocation4], %s9639_s16 }
  0x54   : > { %s9645_s30 = scalar_lea.vmem [#allocation3], %s7069_s17 }
  0x55   : > { %9442 = dma.done.wait (%p12418_p4), %s234_s29, 4096  }
  0x56   : > { %9444 = vsyncadd (%p12418_p4), %s234_s29, 4294963200  ;;  %p12419_p8 = scmp.eq.s32.totalorder %s9533_s22, 0 }
  0x58   : > { %9446 = dma.done.wait (%p12419_p8), [#allocation7], 18432   ;;  %p12420_p3 = pmov %p12419_p8 }
  0x59   : > { %v9476_v0 = vmov 0.0   ;;  %v9477_v1 = vmov 0.0|0.0   ;;  %v9173_v2 = vld [vmem:[#allocation6 + $0x78] sm:$0xff]   ;;  %v307_v4 = vlaneseq  ;;  %v9175_v5 = vld [vmem:[#allocation6 + $0x70] sm:$0xff]   ;;  %v9177_v7 = vld [vmem:[#allocation6 + $0x68] sm:$0xff]   ;;  %vm12304_vm1 = vmmov 1  }
  0x5a   : > { %9448 = vsyncadd (%p12420_p3), [#allocation7], 4294948864  ;;  %789 = vst [vmem:[#allocation2 + $0x8] sm:$0xff] %v9476_v0  ;;  %8250 = vmatprep.mubr.bf16.mxu0 %v9477_v1  ;;  %v9174_v3 = vld [vmem:[#allocation6 + $0x38] sm:$0xff]   ;;  %8234 = vmatprep.subr.bf16.mxu0 %v9173_v2  ;;  %v9176_v6 = vld [vmem:[#allocation6 + $0x30] sm:$0xff]   ;;  %v12421_v18 = vmov 0 }
  0x5b   : > { %790 = vst [vmem:[#allocation2 + $0x10] sm:$0xff] %v9476_v0  ;;  %788 = vst [vmem:[#allocation2] sm:$0xff] %v9476_v0  ;;  %8282 = vmatprep.subr.bf16.mxu1 %v9174_v3  ;;  %8235 = vmatpush3.bf16.msra.mxu0 %v9173_v2  ;;  %v9178_v8 = vld [vmem:[#allocation6 + $0x28] sm:$0xff]   ;;  %v9655_v9 = vshrl.u32 %v307_v4, 7  ;;  %v9179_v10 = vld [vmem:[#allocation6 + $0x60] sm:$0xff]   ;;  %v12442_v55 = vmov 0 }
  0x5c   : > { %791 = vst [vmem:[#allocation2 + $0x118] sm:$0xff] %v9476_v0  ;;  %792 = vst [vmem:[#allocation2 + $0x120] sm:$0xff] %v9476_v0  ;;  %8283 = vmatpush3.bf16.msra.mxu1 %v9174_v3  ;;  %8236 = vmatprep.subr.bf16.mxu0 %v9175_v5  ;;  %v9180_v11 = vld [vmem:[#allocation6 + $0x20] sm:$0xff]   ;;  %v9181_v13 = vld [vmem:[#allocation6 + $0x58] sm:$0xff]   ;;  %v12447_v61 = vmov 0  ;;  %s11969_s11 = scalar_lea.vmem [#allocation9], %s7069_s17 }
  0x5d   : > { %793 = vst [vmem:[#allocation2 + $0x128] sm:$0xff] %v9476_v0  ;;  %8284 = vmatprep.subr.bf16.mxu1 %v9176_v6  ;;  %v344_v12 = vand.u32 15, %v9655_v9  ;;  %v9182_v14 = vld [vmem:[#allocation6 + $0x18] sm:$0xff]   ;;  %v9183_v15 = vld [vmem:[#allocation6 + $0x50] sm:$0xff]   ;;  %v9664_v21 = vld [vmem:[%s9645_s30] sm:$0xff]  ;;  %v310_v29 = vadd.s32 16, %v9655_v9 }
  0x5e   : > { %v9184_v19 = vld [vmem:[#allocation6 + $0x10] sm:$0xff]   ;;  %12424 = vst [vmem:[#allocation14_spill] sm:$0xff] %v9664_v21  ;;  %v9667_v22 = vld [vmem:[%s9645_s30 + $0x8] sm:$0xff]  ;;  %794 = vst [vmem:[#allocation2 + $0x18] sm:$0xff] %v9664_v21  ;;  %v312_v30 = vadd.s32 32, %v9655_v9  ;;  %v314_v47 = vadd.s32 48, %v9655_v9 }
  0x5f   : > { %8237 = vmatpush3.bf16.msra.mxu0 %v9175_v5  ;;  %vm724_vm0 = vcmp.gt.s32.totalorder %v344_v12, 0  ;;  %12425 = vst [vmem:[#allocation15_spill] sm:$0xff] %v9667_v22  ;;  %795 = vst [vmem:[#allocation2 + $0x20] sm:$0xff] %v9667_v22  ;;  %v9674_v23 = vld [vmem:[%s9645_s30 + $0x10] sm:$0xff]  ;;  %v9677_v24 = vld [vmem:[%s9645_s30 + $0x18] sm:$0xff]  ;;  %v358_v37 = vand.u32 15, %v310_v29  ;;  %v1019_v50 = vpack.c.bf16 %v9667_v22, %v9664_v21 }
  0x60   : > { %8285 = vmatpush3.bf16.msra.mxu1 %v9176_v6  ;;  %8238 = vmatprep.subr.bf16.mxu0 %v9177_v7  ;;  %vm9659_vm2 = vmpackc.low %vm12304_vm1, %vm724_vm0  ;;  %12426 = vst [vmem:[#allocation16_spill] sm:$0xff] %v9674_v23  ;;  %v9185_v25 = vld [vmem:[#allocation6 + $0x48] sm:$0xff]   ;;  %v9682_v26 = vld [vmem:[%s9645_s30 + $0x20] sm:$0xff]  ;;  %v372_v39 = vand.u32 15, %v312_v30  ;;  %v316_v48 = vadd.s32 64, %v9655_v9  ;;  %v1020_v56 = vpack.c.bf16 %v9677_v24, %v9674_v23  ;;  %v386_v58 = vand.u32 15, %v314_v47 }
  0x61   : > { %8286 = vmatprep.subr.bf16.mxu1 %v9178_v8  ;;  %v12422_v18 = vsel %vm9659_vm2, 4294967295, %v12421_v18  ;;  %12427 = vst [vmem:[#allocation17_spill] sm:$0xff] %v9677_v24  ;;  %796 = vst [vmem:[#allocation2 + $0x28] sm:$0xff] %v9674_v23  ;;  %v9685_v27 = vld [vmem:[%s9645_s30 + $0x28] sm:$0xff]  ;;  %v9692_v31 = vld [vmem:[%s9645_s30 + $0x30] sm:$0xff]  ;;  %vm726_vm3 = vcmp.gt.s32.totalorder %v358_v37, 0 }
  0x62   : > { %v826_v16 = vld [vmem:[#allocation2 + $0x7] sm:$0xff]  ;;  %v827_v17 = vld [vmem:[#allocation2 + $0xf] sm:$0xff]  ;;  %12423 = vst [vmem:[#allocation13_spill] sm:$0xff] %v12422_v18  ;;  %797 = vst [vmem:[#allocation2 + $0x30] sm:$0xff] %v9677_v24  ;;  %vm9727_vm4 = vcmp.gt.s32.totalorder %v372_v39, 0  ;;  %v400_v63 = vand.u32 15, %v316_v48  ;;  %v1021_v12 = vpack.c.bf16 %v9685_v27, %v9682_v26 }
  0x63   : > { %8239 = vmatpush3.bf16.msra.mxu0 %v9177_v7  ;;  %v7090_v20 = vpack.c.bf16 %v827_v17, %v826_v16  ;;  %12428 = vst [vmem:[#allocation18_spill] sm:$0xff] %v9682_v26  ;;  %12429 = vst [vmem:[#allocation19_spill] sm:$0xff] %v9685_v27  ;;  %v9186_v28 = vld [vmem:[#allocation6 + $0x8] sm:$0xff]   ;;  %v9695_v32 = vld [vmem:[%s9645_s30 + $0x38] sm:$0xff]  ;;  %v318_v5 = vadd.s32 80, %v9655_v9  ;;  %vm730_vm7 = vcmp.gt.s32.totalorder %v386_v58, 0 }
  0x64   : > { %8287 = vmatpush3.bf16.msra.mxu1 %v9178_v8  ;;  %8240 = vmatprep.subr.bf16.mxu0 %v9179_v10  ;;  %798 = vst [vmem:[#allocation2 + $0x38] sm:$0xff] %v9682_v26  ;;  %799 = vst [vmem:[#allocation2 + $0x40] sm:$0xff] %v9685_v27  ;;  %v9700_v33 = vld [vmem:[%s9645_s30 + $0x40] sm:$0xff]  ;;  %v9703_v34 = vld [vmem:[%s9645_s30 + $0x48] sm:$0xff]  ;;  %vm9772_vm8 = vcmp.gt.s32.totalorder %v400_v63, 0  ;;  %v320_v8 = vadd.s32 96, %v9655_v9  ;;  %v1022_v16 = vpack.c.bf16 %v9695_v32, %v9692_v31 }
  0x65   : > { %8288 = vmatprep.subr.bf16.mxu1 %v9180_v11  ;;  %8298 = vmatprep.mubr.msk.bf16.mxu1 %vm9659_vm2, %v7090_v20  ;;  %12430 = vst [vmem:[#allocation20_spill] sm:$0xff] %v9692_v31  ;;  %12431 = vst [vmem:[#allocation21_spill] sm:$0xff] %v9695_v32  ;;  %v9187_v35 = vld [vmem:[#allocation6 + $0x40] sm:$0xff]   ;;  %v9708_v38 = vld [vmem:[%s9645_s30 + $0x50] sm:$0xff]  ;;  %v12459_v20 = vmov 0  ;;  %v1023_v58 = vpack.c.bf16 %v9703_v34, %v9700_v33  ;;  %v12470_v63 = vmov 0 }
  0x66   : > { %800 = vst [vmem:[#allocation2 + $0x48] sm:$0xff] %v9692_v31  ;;  %801 = vst [vmem:[#allocation2 + $0x50] sm:$0xff] %v9695_v32  ;;  %v9188_v36 = vld [vmem:[#allocation6] sm:$0xff]   ;;  %v9711_v40 = vld [vmem:[%s9645_s30 + $0x58] sm:$0xff]  ;;  %v428_v29 = vand.u32 15, %v320_v8  ;;  %v12522_v27 = vmov 0 }
  0x67   : > { %8241 = vmatpush3.bf16.msra.mxu0 %v9179_v10  ;;  %12432 = vst [vmem:[#allocation22_spill] sm:$0xff] %v9700_v33  ;;  %12433 = vst [vmem:[#allocation23_spill] sm:$0xff] %v9703_v34  ;;  %v9715_v41 = vld [vmem:[%s9645_s30 + $0x60] sm:$0xff]  ;;  %v9189_v42 = vld [vmem:[#allocation6 + $0xb8] sm:$0xff]   ;;  %v331_v22 = vadd.s32 184, %v9655_v9  ;;  %s7801_s12 = sshll.u32 %s9533_s22, 12 }
  0x68   : > { %8289 = vmatpush3.bf16.msra.mxu1 %v9180_v11  ;;  %8242 = vmatprep.subr.bf16.mxu0 %v9181_v13  ;;  %802 = vst [vmem:[#allocation2 + $0x58] sm:$0xff] %v9700_v33  ;;  %803 = vst [vmem:[#allocation2 + $0x60] sm:$0xff] %v9703_v34  ;;  %v9719_v43 = vld [vmem:[%s9645_s30 + $0x68] sm:$0xff]  ;;  %v830_v46 = vld [vmem:[#allocation2 + $0x27] sm:$0xff]  ;;  %vm9830_vm12 = vcmp.gt.s32.totalorder %v428_v29, 0  ;;  %v12516_v34 = vmov 0  ;;  %s12173_s9 = scalar_lea.hbm %s12225_s5, %s7801_s12 }
  0x69   : > { %8290 = vmatprep.subr.bf16.mxu1 %v9182_v14  ;;  %12434 = vst [vmem:[#allocation24_spill] sm:$0xff] %v9708_v38  ;;  %12435 = vst [vmem:[#allocation25_spill] sm:$0xff] %v9711_v40  ;;  %v828_v44 = vld [vmem:[#allocation2 + $0x17] sm:$0xff]  ;;  %v829_v45 = vld [vmem:[#allocation2 + $0x1f] sm:$0xff]  ;;  %s6968_s28 = sshll.u32 %s11969_s11, 4  ;;  %s6955_s13 = scalar_lea.sflag [#allocation5], %s9639_s16  ;;  %s12175_s28 = int_to_ptr.vmem [resolvable:$true] %s6968_s28 }
  0x6a   : > { %804 = vst [vmem:[#allocation2 + $0x68] sm:$0xff] %v9708_v38  ;;  %12436 = vst [vmem:[#allocation26_spill] sm:$0xff] %v9715_v41  ;;  %v831_v49 = vld [vmem:[#allocation2 + $0x2f] sm:$0xff]  ;;  %v9732_v52 = vld [vmem:[%s9645_s30 + $0x70] sm:$0xff]  ;;  %v9734_v53 = vpack.c.bf16 %v829_v45, %v828_v44  ;;  %v322_v45 = vadd.s32 112, %v9655_v9  ;;  %s9399_s22 = scalar_lea.vmem %s12175_s28, 4096 }
  0x6b   : > { %8243 = vmatpush3.bf16.msra.mxu0 %v9181_v13  ;;  %805 = vst [vmem:[#allocation2 + $0x70] sm:$0xff] %v9711_v40  ;;  %12437 = vst [vmem:[#allocation27_spill] sm:$0xff] %v9719_v43  ;;  %v9737_v54 = vld [vmem:[%s9645_s30 + $0x78] sm:$0xff]  ;;  %v9747_v57 = vpack.c.bf16 %v831_v49, %v830_v46  ;;  %v9751_v59 = vld [vmem:[%s9645_s30 + $0x80] sm:$0xff]  ;;  %v324_v49 = vadd.s32 128, %v9655_v9  ;;  %p9400_p11 = scmp.ne.s32.totalorder %s12175_s28, %s9399_s22  ;;  %p12999_p10 = scmp.ne.s32.totalorder %s12415_s23, 0 }
  0x6c   : > { %8291 = vmatpush3.bf16.msra.mxu1 %v9182_v14  ;;  %8244 = vmatprep.subr.bf16.mxu0 %v9183_v15  ;;  %806 = vst [vmem:[#allocation2 + $0x78] sm:$0xff] %v9715_v41  ;;  %807 = vst [vmem:[#allocation2 + $0x80] sm:$0xff] %v9719_v43  ;;  %v9754_v60 = vld [vmem:[%s9645_s30 + $0x88] sm:$0xff]  ;;  %v9190_v62 = vld [vmem:[#allocation6 + $0xb0] sm:$0xff]   ;;  %v12454_v14 = vmov 0  ;;  %s9479_s14 = smov [#allocation9]  }
  0x6d   : > { %8292 = vmatprep.subr.bf16.mxu1 %v9184_v19  ;;  %12440 = vst [vmem:[#allocation28_spill] sm:$0xff] %v9732_v52  ;;  %12441 = vst [vmem:[#allocation29_spill] sm:$0xff] %v9737_v54  ;;  %v832_v0 = vld [vmem:[#allocation2 + $0x37] sm:$0xff]  ;;  %v833_v1 = vld [vmem:[#allocation2 + $0x3f] sm:$0xff]  ;;  %p9401_p1 = pnand %p9400_p11, %p12999_p10  ;;  %s9403_s17 = sshll.u32 %s9479_s14, 4  ;;  %s9404_s17 = int_to_ptr.vmem [resolvable:$false] %s9403_s17 }
  0x6e   : > { %808 = vst [vmem:[#allocation2 + $0x88] sm:$0xff] %v9732_v52  ;;  %vm9741_vm5 = vmpackc.low %vm12304_vm1, %vm726_vm3  ;;  %v9191_v2 = vld [vmem:[#allocation6 + $0xa8] sm:$0xff]   ;;  %v834_v3 = vld [vmem:[#allocation2 + $0x47] sm:$0xff]  ;;  %s9405_s29 = scalar_lea.vmem %s9404_s17, 8192  ;;  %p9406_p6 = scmp.lt.s32.totalorder %s12175_s28, %s9404_s17 }
  0x6f   : > { %8245 = vmatpush3.bf16.msra.mxu0 %v9183_v15  ;;  %v12443_v55 = vsel %vm9741_vm5, 4294967295, %v12442_v55  ;;  %809 = vst [vmem:[#allocation2 + $0x90] sm:$0xff] %v9737_v54  ;;  %12445 = vst [vmem:[#allocation31_spill] sm:$0xff] %v9751_v59  ;;  %v835_v4 = vld [vmem:[#allocation2 + $0x4f] sm:$0xff]  ;;  %v9195_v10 = vld [vmem:[#allocation6 + $0xf0] sm:$0xff]   ;;  %v9791_v15 = vpack.c.bf16 %v833_v1, %v832_v0  ;;  %v1024_v1 = vpack.c.bf16 %v9711_v40, %v9708_v38  ;;  %p9402_p2 = pneg %p9401_p1  ;;  %p9407_p12 = scmp.lt.s32.totalorder %s9405_s29, %s9399_s22 }
  0x70   : > { %8293 = vmatpush3.bf16.msra.mxu1 %v9184_v19  ;;  %8246 = vmatprep.subr.bf16.mxu0 %v9185_v25  ;;  %12444 = vst [vmem:[#allocation30_spill] sm:$0xff] %v12443_v55  ;;  %12446 = vst [vmem:[#allocation32_spill] sm:$0xff] %v9754_v60  ;;  %v9194_v6 = vld [vmem:[#allocation6 + $0xf8] sm:$0xff]   ;;  %v9778_v11 = vld [vmem:[%s9645_s30 + $0x90] sm:$0xff] }
  0x71   : > { %8294 = vmatprep.subr.bf16.mxu1 %v9186_v28  ;;  %vm9759_vm6 = vmpackc.low %vm12304_vm1, %vm9727_vm4  ;;  %810 = vst [vmem:[#allocation2 + $0x98] sm:$0xff] %v9751_v59  ;;  %v9783_v13 = vld [vmem:[%s9645_s30 + $0x98] sm:$0xff]  ;;  %v9797_v17 = vld [vmem:[%s9645_s30 + $0xa0] sm:$0xff]  ;;  %p9408_p7 = por %p9407_p12, %p9406_p6 }
  0x72   : > { %v12448_v61 = vsel %vm9759_vm6, 4294967295, %v12447_v61  ;;  %811 = vst [vmem:[#allocation2 + $0xa0] sm:$0xff] %v9754_v60  ;;  %12452 = vst [vmem:[#allocation34_spill] sm:$0xff] %v9778_v11  ;;  %v9800_v19 = vld [vmem:[%s9645_s30 + $0xa8] sm:$0xff]  ;;  %v9192_v30 = vld [vmem:[#allocation6 + $0xa0] sm:$0xff]  }
  0x73   : > { %8247 = vmatpush3.bf16.msra.mxu0 %v9185_v25  ;;  %12449 = vst [vmem:[#allocation33_spill] sm:$0xff] %v12448_v61  ;;  %12453 = vst [vmem:[#allocation35_spill] sm:$0xff] %v9783_v13  ;;  %v9809_v25 = vpack.c.bf16 %v835_v4, %v834_v3  ;;  %v9197_v37 = vld [vmem:[#allocation6 + $0xe8] sm:$0xff]   ;;  %v838_v39 = vld [vmem:[#allocation2 + $0x67] sm:$0xff]  ;;  %v442_v4 = vand.u32 15, %v322_v45  ;;  %v328_v45 = vadd.s32 160, %v9655_v9  ;;  %p9409_p9 = pnand %p9408_p7, %p9402_p2 }
  0x74   : > { %8295 = vmatpush3.bf16.msra.mxu1 %v9186_v28  ;;  %8248 = vmatprep.subr.bf16.mxu0 %v9187_v35  ;;  %812 = vst [vmem:[#allocation2 + $0xa8] sm:$0xff] %v9778_v11  ;;  %vm9787_vm9 = vmpackc.low %vm12304_vm1, %vm730_vm7  ;;  %v414_v28 = vand.u32 15, %v318_v5  ;;  %v839_v44 = vld [vmem:[#allocation2 + $0x6f] sm:$0xff]  ;;  %v9825_v46 = vld [vmem:[%s9645_s30 + $0xb0] sm:$0xff]  ;;  %v456_v5 = vand.u32 15, %v324_v49 }
  0x75   : > { %8296 = vmatprep.subr.bf16.mxu1 %v9188_v36  ;;  %v12455_v14 = vsel %vm9787_vm9, 4294967295, %v12454_v14  ;;  %813 = vst [vmem:[#allocation2 + $0xb0] sm:$0xff] %v9783_v13  ;;  %12457 = vst [vmem:[#allocation37_spill] sm:$0xff] %v9797_v17  ;;  %v9828_v47 = vld [vmem:[%s9645_s30 + $0xb8] sm:$0xff]  ;;  %v9838_v51 = vld [vmem:[%s9645_s30 + $0xc0] sm:$0xff]  ;;  %v9865_v3 = vpack.c.bf16 %v839_v44, %v838_v39  ;;  %vm9887_vm15 = vcmp.gt.s32.totalorder %v442_v4, 0  ;;  %v1025_v44 = vpack.c.bf16 %v9719_v43, %v9715_v41 }
  0x76   : > { %12456 = vst [vmem:[#allocation36_spill] sm:$0xff] %v12455_v14  ;;  %12458 = vst [vmem:[#allocation38_spill] sm:$0xff] %v9800_v19  ;;  %vm9819_vm11 = vcmp.gt.s32.totalorder %v414_v28, 0  ;;  %v9200_v7 = vld [vmem:[#allocation6 + $0xd8] sm:$0xff]   ;;  %v9868_v8 = vld [vmem:[%s9645_s30 + $0xd0] sm:$0xff]  ;;  %vm9893_vm0 = vcmp.gt.s32.totalorder %v456_v5, 0 }
  0x77   : > { %8249 = vmatpush3.bf16.msra.mxu0 %v9187_v35  ;;  %vm9805_vm10 = vmpackc.low %vm12304_vm1, %vm9772_vm8  ;;  %814 = vst [vmem:[#allocation2 + $0xb8] sm:$0xff] %v9797_v17  ;;  %v836_v35 = vld [vmem:[#allocation2 + $0x57] sm:$0xff]  ;;  %v326_v39 = vadd.s32 144, %v9655_v9  ;;  %v9201_v48 = vld [vmem:[#allocation6 + $0xd0] sm:$0xff]   ;;  %v484_v28 = vand.u32 15, %v328_v45 }
  0x78   : > { %8297 = vmatpush3.bf16.msra.mxu1 %v9188_v36  ;;  %8330 = vmatprep.subr.bf16.mxu0 %v9189_v42  ;;  %v12460_v20 = vsel %vm9805_vm10, 4294967295, %v12459_v20  ;;  %815 = vst [vmem:[#allocation2 + $0xc0] sm:$0xff] %v9800_v19  ;;  %v837_v36 = vld [vmem:[#allocation2 + $0x5f] sm:$0xff]  ;;  %12464 = vst [vmem:[#allocation40_spill] sm:$0xff] %v9825_v46  ;;  %v840_v29 = vld [vmem:[#allocation2 + $0x77] sm:$0xff] }
  0x79   : > { %8378 = vmatprep.subr.bf16.mxu1 %v9194_v6  ;;  %12461 = vst [vmem:[#allocation39_spill] sm:$0xff] %v12460_v20  ;;  %12465 = vst [vmem:[#allocation41_spill] sm:$0xff] %v9828_v47  ;;  %v9854_v0 = vpack.c.bf16 %v837_v36, %v836_v35  ;;  %v842_v35 = vld [vmem:[#allocation2 + $0x87] sm:$0xff]  ;;  %v470_v4 = vand.u32 15, %v326_v39  ;;  %v9202_v5 = vld [vmem:[#allocation6 + $0x80] sm:$0xff]   ;;  %vm744_vm8 = vcmp.gt.s32.totalorder %v484_v28, 0 }
  0x7a   : > { %8251 = vmatmul.mubr.bf16.vlgmr.msra.gmra.mxu0 %v1019_v50  ;;  %v9193_v50 = vld [vmem:[#allocation6 + $0x98] sm:$0xff]   ;;  %816 = vst [vmem:[#allocation2 + $0xc8] sm:$0xff] %v9825_v46  ;;  %817 = vst [vmem:[#allocation2 + $0xd0] sm:$0xff] %v9828_v47  ;;  %v9204_v45 = vld [vmem:[#allocation6 + $0xc0] sm:$0xff]   ;;  %v12493_v28 = vmov 0 }
  0x7b   : > { %8299 = vmatmul.mubr.msk.bf16.vlgmr.msra.gmra.mxu1 %vm9741_vm5, %v9734_v53  ;;  %8331 = vmatpush3.bf16.msra.mxu0 %v9189_v42  ;;  %12468 = vst [vmem:[#allocation42_spill] sm:$0xff] %v9838_v51  ;;  %818 = vst [vmem:[#allocation2 + $0xd8] sm:$0xff] %v9838_v51  ;;  %v9199_v42 = vld [vmem:[#allocation6 + $0x88] sm:$0xff]   ;;  %vm742_vm7 = vcmp.gt.s32.totalorder %v470_v4, 0  ;;  %v9929_v39 = vld [vmem:[#allocation6 + $0x138] sm:$0xff]   ;;  %v12490_v4 = vmov 0 }
  0x7c   : > { %8254 = vmatprep.mubr.bf16.mxu0 %v1020_v56  ;;  %8302 = vmatprep.mubr.msk.bf16.mxu1 %vm9759_vm6, %v9747_v57  ;;  %v9841_v56 = vld [vmem:[%s9645_s30 + $0xc8] sm:$0xff]  ;;  %vm9850_vm13 = vmpackc.low %vm12304_vm1, %vm9819_vm11  ;;  %12476 = vst [vmem:[#allocation46_spill] sm:$0xff] %v9868_v8  ;;  %v847_v36 = vld [vmem:[#allocation2 + $0xaf] sm:$0xff] }
  0x7d   : > { %8332 = vmatprep.subr.bf16.mxu0 %v9190_v62  ;;  %8379 = vmatpush3.bf16.msra.mxu1 %v9194_v6  ;;  %12469 = vst [vmem:[#allocation43_spill] sm:$0xff] %v9841_v56  ;;  %819 = vst [vmem:[#allocation2 + $0xe0] sm:$0xff] %v9841_v56  ;;  %v12471_v63 = vsel %vm9850_vm13, 4294967295, %v12470_v63  ;;  %v9196_v6 = vld [vmem:[#allocation6 + $0x90] sm:$0xff]   ;;  %v9213_v38 = vld [vmem:[#allocation6 + $0x168] sm:$0xff]  }
  0x7e   : > { %8380 = vmatprep.subr.bf16.mxu1 %v9195_v10  ;;  %12472 = vst [vmem:[#allocation44_spill] sm:$0xff] %v12471_v63  ;;  %vm9861_vm14 = vmpackc.low %vm12304_vm1, %vm9830_vm12  ;;  %v9206_v40 = vld [vmem:[#allocation6 + $0x130] sm:$0xff]   ;;  %v9219_v23 = vld [vmem:[#allocation6 + $0x148] sm:$0xff]  }
  0x7f   : > { %8333 = vmatpush3.bf16.msra.mxu0 %v9190_v62  ;;  %v9198_v62 = vld [vmem:[#allocation6 + $0xe0] sm:$0xff]   ;;  %820 = vst [vmem:[#allocation2 + $0xe8] sm:$0xff] %v9868_v8  ;;  %vm9908_vm3 = vmpackc.low %vm12304_vm1, %vm9887_vm15 }
  0x80   : > { %8334 = vmatprep.subr.bf16.mxu0 %v9191_v2  ;;  %vm9917_vm4 = vmpackc.low %vm12304_vm1, %vm9893_vm0 }
  0x81   : > { %8381 = vmatpush3.bf16.msra.mxu1 %v9195_v10  ;;  %v9871_v10 = vld [vmem:[%s9645_s30 + $0xd8] sm:$0xff]  ;;  %vm9940_vm11 = vmpackc.low %vm12304_vm1, %vm742_vm7 }
  0x82   : > { %8255 = vmatmul.mubr.bf16.gmra.mxu0 %v1021_v12  ;;  %8382 = vmatprep.subr.bf16.mxu1 %v9197_v37  ;;  %12477 = vst [vmem:[#allocation47_spill] sm:$0xff] %v9871_v10  ;;  %821 = vst [vmem:[#allocation2 + $0xf0] sm:$0xff] %v9871_v10  ;;  %v9879_v12 = vld [vmem:[%s9645_s30 + $0xe0] sm:$0xff]  ;;  %v12491_v4 = vsel %vm9940_vm11, 4294967295, %v12490_v4 }
  0x83   : > { %8303 = vmatmul.mubr.msk.bf16.gmra.mxu1 %vm9787_vm9, %v9791_v15  ;;  %8258 = vmatprep.mubr.bf16.mxu0 %v1022_v16  ;;  %12478 = vst [vmem:[#allocation48_spill] sm:$0xff] %v9879_v12  ;;  %v9882_v16 = vld [vmem:[%s9645_s30 + $0xe8] sm:$0xff]  ;;  %822 = vst [vmem:[#allocation2 + $0xf8] sm:$0xff] %v9879_v12 }
  0x84   : > { %8306 = vmatprep.mubr.msk.bf16.mxu1 %vm9805_vm10, %v9809_v25  ;;  %8335 = vmatpush3.bf16.msra.mxu0 %v9191_v2  ;;  %v12473_v2 = vmov 0  ;;  %12479 = vst [vmem:[#allocation49_spill] sm:$0xff] %v9882_v16  ;;  %823 = vst [vmem:[#allocation2 + $0x100] sm:$0xff] %v9882_v16 }
  0x85   : > { %8336 = vmatprep.subr.bf16.mxu0 %v9192_v30  ;;  %v12474_v2 = vsel %vm9861_vm14, 4294967295, %v12473_v2  ;;  %8383 = vmatpush3.bf16.msra.mxu1 %v9197_v37  ;;  %v843_v37 = vld [vmem:[#allocation2 + $0x8f] sm:$0xff]  ;;  %12492 = vst [vmem:[#allocation52_spill] sm:$0xff] %v12491_v4  ;;  %vm9947_vm12 = vmpackc.low %vm12304_vm1, %vm744_vm8 }
  0x86   : > { %12475 = vst [vmem:[#allocation45_spill] sm:$0xff] %v12474_v2  ;;  %8384 = vmatprep.subr.bf16.mxu1 %v9198_v62  ;;  %v12494_v28 = vsel %vm9947_vm12, 4294967295, %v12493_v28  ;;  %v9220_v2 = vld [vmem:[#allocation6 + $0x140] sm:$0xff]  }
  0x87   : > { %12495 = vst [vmem:[#allocation53_spill] sm:$0xff] %v12494_v28 }
  0x88   : > { %8337 = vmatpush3.bf16.msra.mxu0 %v9192_v30  ;;  %v841_v30 = vld [vmem:[#allocation2 + $0x7f] sm:$0xff] }
  0x89   : > { %8338 = vmatprep.subr.bf16.mxu0 %v9193_v50  ;;  %8385 = vmatpush3.bf16.msra.mxu1 %v9198_v62  ;;  %v9901_v49 = vpack.c.bf16 %v841_v30, %v840_v29  ;;  %v9912_v62 = vpack.c.bf16 %v843_v37, %v842_v35  ;;  %v9203_v29 = vld [vmem:[#allocation6 + $0xc8] sm:$0xff]   ;;  %v330_v35 = vadd.s32 176, %v9655_v9  ;;  %v332_v37 = vadd.s32 192, %v9655_v9 }
  0x8a   : > { %8259 = vmatmul.mubr.bf16.gmra.mxu0 %v1023_v58  ;;  %8386 = vmatprep.subr.bf16.mxu1 %v9200_v7  ;;  %v12484_v58 = vmov 0  ;;  %v845_v30 = vld [vmem:[#allocation2 + $0x9f] sm:$0xff] }
  0x8b   : > { %8307 = vmatmul.mubr.msk.bf16.gmra.mxu1 %vm9850_vm13, %v9854_v0  ;;  %8262 = vmatprep.mubr.bf16.mxu0 %v1024_v1  ;;  %v12485_v58 = vsel %vm9908_vm3, 4294967295, %v12484_v58  ;;  %v12487_v1 = vmov 0  ;;  %v498_v43 = vand.u32 15, %v330_v35  ;;  %v850_v35 = vld [vmem:[#allocation2 + $0xc7] sm:$0xff] }
  0x8c   : > { %8310 = vmatprep.mubr.msk.bf16.mxu1 %vm9861_vm14, %v9865_v3  ;;  %8339 = vmatpush3.bf16.msra.mxu0 %v9193_v50  ;;  %v1026_v50 = vpack.c.bf16 %v9737_v54, %v9732_v52  ;;  %12486 = vst [vmem:[#allocation50_spill] sm:$0xff] %v12485_v58  ;;  %v12488_v1 = vsel %vm9917_vm4, 4294967295, %v12487_v1 }
  0x8d   : > { %8340 = vmatprep.subr.bf16.mxu0 %v9196_v6  ;;  %12489 = vst [vmem:[#allocation51_spill] sm:$0xff] %v12488_v1  ;;  %8387 = vmatpush3.bf16.msra.mxu1 %v9200_v7  ;;  %v846_v7 = vld [vmem:[#allocation2 + $0xa7] sm:$0xff]  ;;  %vm746_vm15 = vcmp.gt.s32.totalorder %v498_v43, 0  ;;  %v9972_v43 = vpack.c.bf16 %v9828_v47, %v9825_v46  ;;  %v10001_v46 = vpack.c.bf16 %v9871_v10, %v9868_v8  ;;  %v12512_v8 = vmov 0 }
  0x8e   : > { %8388 = vmatprep.subr.bf16.mxu1 %v9201_v48  ;;  %vm9964_vm7 = vmpackc.low %vm12304_vm1, %vm746_vm15  ;;  %v10035_v10 = vld [vmem:[%s9645_s30 + $0xf0] sm:$0xff] }
  0x8f   : > { %12511 = vst [vmem:[#allocation59_spill] sm:$0xff] %v10035_v10  ;;  %824 = vst [vmem:[#allocation2 + $0x108] sm:$0xff] %v10035_v10 }
  0x90   : > { %8341 = vmatpush3.bf16.msra.mxu0 %v9196_v6  ;;  %v844_v6 = vld [vmem:[#allocation2 + $0x97] sm:$0xff] }
  0x91   : > { %8342 = vmatprep.subr.bf16.mxu0 %v9199_v42  ;;  %8389 = vmatpush3.bf16.msra.mxu1 %v9201_v48  ;;  %v9944_v48 = vpack.c.bf16 %v847_v36, %v846_v7  ;;  %v851_v7 = vld [vmem:[#allocation2 + $0xcf] sm:$0xff]  ;;  %v1029_v36 = vpack.c.bf16 %v9800_v19, %v9797_v17 }
  0x92   : > { %8263 = vmatmul.mubr.bf16.gmra.mxu0 %v1025_v44  ;;  %v1027_v44 = vpack.c.bf16 %v9754_v60, %v9751_v59  ;;  %8390 = vmatprep.subr.bf16.mxu1 %v9203_v29  ;;  %v9981_v17 = vld [vmem:[#allocation6 + $0x178] sm:$0xff]   ;;  %v338_v59 = vadd.s32 240, %v9655_v9 }
  0x93   : > { %8311 = vmatmul.mubr.msk.bf16.gmra.mxu1 %vm9908_vm3, %v9901_v49  ;;  %8266 = vmatprep.mubr.bf16.mxu0 %v1026_v50  ;;  %v9933_v50 = vpack.c.bf16 %v845_v30, %v844_v6  ;;  %v512_v6 = vand.u32 15, %v332_v37  ;;  %v849_v30 = vld [vmem:[#allocation2 + $0xbf] sm:$0xff]  ;;  %v336_v37 = vadd.s32 224, %v9655_v9 }
  0x94   : > { %8314 = vmatprep.mubr.msk.bf16.mxu1 %vm9917_vm4, %v9912_v62  ;;  %8343 = vmatpush3.bf16.msra.mxu0 %v9199_v42  ;;  %v9937_v42 = vpack.c.bf16 %v9783_v13, %v9778_v11  ;;  %v12502_v11 = vmov 0 }
  0x95   : > { %8344 = vmatprep.subr.bf16.mxu0 %v9202_v5  ;;  %8391 = vmatpush3.bf16.msra.mxu1 %v9203_v29  ;;  %v334_v29 = vadd.s32 208, %v9655_v9  ;;  %vm748_vm0 = vcmp.gt.s32.totalorder %v512_v6, 0  ;;  %v12499_v6 = vmov 0  ;;  %v540_v13 = vand.u32 15, %v336_v37 }
  0x96   : > { %8392 = vmatprep.subr.bf16.mxu1 %v9204_v45  ;;  %vm9975_vm8 = vmpackc.low %vm12304_vm1, %vm748_vm0  ;;  %v554_v37 = vand.u32 15, %v338_v59  ;;  %v1469_v59 = vld [vmem:[#allocation2 + $0x9] sm:$0xff] }
  0x97   : > { %v12500_v6 = vsel %vm9975_vm8, 4294967295, %v12499_v6  ;;  %v526_v19 = vand.u32 15, %v334_v29  ;;  %v309_v29 = vadd.s32 8, %v9655_v9  ;;  %vm752_vm0 = vcmp.gt.s32.totalorder %v540_v13, 0  ;;  %v1470_v13 = vld [vmem:[#allocation2 + $0x11] sm:$0xff] }
  0x98   : > { %8345 = vmatpush3.bf16.msra.mxu0 %v9202_v5  ;;  %v848_v5 = vld [vmem:[#allocation2 + $0xb7] sm:$0xff]  ;;  %12501 = vst [vmem:[#allocation55_spill] sm:$0xff] %v12500_v6 }
  0x99   : > { %8426 = vmatprep.subr.bf16.mxu0 %v9929_v39  ;;  %8393 = vmatpush3.bf16.msra.mxu1 %v9204_v45  ;;  %v9968_v60 = vpack.c.bf16 %v849_v30, %v848_v5  ;;  %v9979_v45 = vpack.c.bf16 %v851_v7, %v850_v35  ;;  %v852_v5 = vld [vmem:[#allocation2 + $0xd7] sm:$0xff]  ;;  %v853_v30 = vld [vmem:[#allocation2 + $0xdf] sm:$0xff]  ;;  %v854_v35 = vld [vmem:[#allocation2 + $0xe7] sm:$0xff]  ;;  %vm750_vm15 = vcmp.gt.s32.totalorder %v526_v19, 0  ;;  %v351_v19 = vand.u32 15, %v309_v29 }
  0x9a   : > { %8267 = vmatmul.mubr.bf16.gmra.mxu0 %v1027_v44  ;;  %v12496_v44 = vmov 0  ;;  %8474 = vmatprep.subr.bf16.mxu1 %v9981_v17  ;;  %v855_v7 = vld [vmem:[#allocation2 + $0xef] sm:$0xff]  ;;  %v9997_v47 = vpack.c.bf16 %v853_v30, %v852_v5  ;;  %v856_v5 = vld [vmem:[#allocation2 + $0xf7] sm:$0xff]  ;;  %v311_v30 = vadd.s32 24, %v9655_v9  ;;  %v10026_v29 = vpack.c.bf16 %v9882_v16, %v9879_v12 }
  0x9b   : > { %8315 = vmatmul.mubr.msk.bf16.gmra.mxu1 %vm9940_vm11, %v9933_v50  ;;  %8270 = vmatprep.mubr.bf16.mxu0 %v9937_v42  ;;  %v12497_v44 = vsel %vm9964_vm7, 4294967295, %v12496_v44  ;;  %v10008_v54 = vpack.c.bf16 %v855_v7, %v854_v35  ;;  %v857_v35 = vld [vmem:[#allocation2 + $0xff] sm:$0xff]  ;;  %v12508_v7 = vmov 0  ;;  %v10046_v12 = vld [vmem:[%s9645_s30 + $0xf8] sm:$0xff] }
  0x9c   : > { %8318 = vmatprep.mubr.msk.bf16.mxu1 %vm9947_vm12, %v9944_v48  ;;  %12498 = vst [vmem:[#allocation54_spill] sm:$0xff] %v12497_v44  ;;  %vm754_vm12 = vcmp.gt.s32.totalorder %v554_v37, 0  ;;  %v313_v37 = vadd.s32 40, %v9655_v9  ;;  %v365_v16 = vand.u32 15, %v311_v30  ;;  %12515 = vst [vmem:[#allocation61_spill] sm:$0xff] %v10046_v12  ;;  %v1474_v30 = vld [vmem:[#allocation2 + $0x31] sm:$0xff] }
  0x9d   : > { %825 = vst [vmem:[#allocation2 + $0x110] sm:$0xff] %v10046_v12 }
  0x9e   : > { %v379_v41 = vand.u32 15, %v313_v37  ;;  %v317_v37 = vadd.s32 72, %v9655_v9 }
  0xa0   : > { %v407_v33 = vand.u32 15, %v317_v37  ;;  %v9207_v37 = vld [vmem:[#allocation6 + $0x128] sm:$0xff]  }
  0xa2   : > { %8271 = vmatmul.mubr.bf16.gmra.mxu0 %v1029_v36  ;;  %v9995_v36 = vpack.c.bf16 %v9841_v56, %v9838_v51  ;;  %v12505_v56 = vmov 0  ;;  %v10037_v51 = vpack.c.bf16 %v857_v35, %v856_v5  ;;  %v1471_v5 = vld [vmem:[#allocation2 + $0x19] sm:$0xff]  ;;  %v1472_v35 = vld [vmem:[#allocation2 + $0x21] sm:$0xff] }
  0xa3   : > { %8319 = vmatmul.mubr.msk.bf16.gmra.mxu1 %vm9964_vm7, %v9968_v60  ;;  %8274 = vmatprep.mubr.bf16.mxu0 %v9972_v43  ;;  %vm10011_vm7 = vmpackc.low %vm12304_vm1, %vm752_vm0  ;;  %v10060_v52 = vpack.c.bf16 %v1472_v35, %v1471_v5  ;;  %v9211_v5 = vld [vmem:[#allocation6 + $0x170] sm:$0xff]  }
  0xa4   : > { %8322 = vmatprep.mubr.msk.bf16.mxu1 %vm9975_vm8, %v9979_v45  ;;  %vm10004_vm8 = vmpackc.low %vm12304_vm1, %vm750_vm15  ;;  %v12506_v56 = vsel %vm10011_vm7, 4294967295, %v12505_v56  ;;  %vm757_vm15 = vcmp.lt.s32.totalorder %v351_v19, 15  ;;  %v7146_v19 = vpack.c.bf16 %v1470_v13, %v1469_v59  ;;  %v315_v59 = vadd.s32 56, %v9655_v9  ;;  %v1473_v13 = vld [vmem:[#allocation2 + $0x29] sm:$0xff]  ;;  %v1476_v35 = vld [vmem:[#allocation2 + $0x41] sm:$0xff] }
  0xa5   : > { %v12503_v11 = vsel %vm10004_vm8, 4294967295, %v12502_v11  ;;  %12507 = vst [vmem:[#allocation57_spill] sm:$0xff] %v12506_v56  ;;  %vm10029_vm0 = vmpackc.low %vm12304_vm1, %vm754_vm12  ;;  %vm759_vm12 = vcmp.lt.s32.totalorder %v365_v16, 15  ;;  %v2217_v56 = vld [vmem:[#allocation2 + $0x58] sm:$0xff] }
  0xa6   : > { %12504 = vst [vmem:[#allocation56_spill] sm:$0xff] %v12503_v11  ;;  %v12509_v7 = vsel %vm10029_vm0, 4294967295, %v12508_v7  ;;  %v393_v16 = vand.u32 15, %v315_v59  ;;  %v1477_v59 = vld [vmem:[#allocation2 + $0x49] sm:$0xff] }
  0xa7   : > { %12510 = vst [vmem:[#allocation58_spill] sm:$0xff] %v12509_v7 }
  0xaa   : > { %8275 = vmatmul.mubr.bf16.gmra.mxu0 %v9995_v36 }
  0xab   : > { %8323 = vmatmul.mubr.msk.bf16.gmra.mxu1 %vm10004_vm8, %v9997_v47  ;;  %8278 = vmatprep.mubr.bf16.mxu0 %v10001_v46  ;;  %vm10040_vm8 = vmpackc.low %vm757_vm15, %vm12304_vm1  ;;  %vm761_vm15 = vcmp.lt.s32.totalorder %v379_v41, 15  ;;  %v1475_v41 = vld [vmem:[#allocation2 + $0x39] sm:$0xff] }
  0xac   : > { %8326 = vmatprep.mubr.msk.bf16.mxu1 %vm10011_vm7, %v10008_v54  ;;  %v12513_v8 = vsel %vm10040_vm8, 4294967295, %v12512_v8 }
  0xad   : > { %12514 = vst [vmem:[#allocation60_spill] sm:$0xff] %v12513_v8 }
  0xb2   : > { %8279 = vmatmul.mubr.bf16.gmra.mxu0 %v10026_v29 }
  0xb3   : > { %8327 = vmatmul.mubr.msk.bf16.gmra.mxu1 %vm10029_vm0, %v10037_v51  ;;  %8346 = vmatprep.mubr.msk.bf16.mxu0 %vm10040_vm8, %v7146_v19  ;;  %vm10063_vm0 = vmpackc.low %vm759_vm12, %vm12304_vm1  ;;  %v10067_v19 = vpack.c.bf16 %v1474_v30, %v1473_v13  ;;  %v319_v13 = vadd.s32 88, %v9655_v9  ;;  %vm763_vm12 = vcmp.lt.s32.totalorder %v393_v16, 15  ;;  %v1478_v30 = vld [vmem:[#allocation2 + $0x51] sm:$0xff] }
  0xb4   : > { %8394 = vmatprep.mubr.msk.bf16.mxu1 %vm9659_vm2, %v9734_v53  ;;  %v12517_v34 = vsel %vm10063_vm0, 4294967295, %v12516_v34  ;;  %vm10070_vm2 = vmpackc.low %vm761_vm15, %vm12304_vm1  ;;  %v12519_v53 = vmov 0  ;;  %vm765_vm15 = vcmp.lt.s32.totalorder %v407_v33, 15  ;;  %v10097_v16 = vpack.c.bf16 %v1478_v30, %v1477_v59  ;;  %v9214_v59 = vld [vmem:[#allocation6 + $0x160] sm:$0xff]  }
  0xb5   : > { %12518 = vst [vmem:[#allocation62_spill] sm:$0xff] %v12517_v34  ;;  %v12520_v53 = vsel %vm10070_vm2, 4294967295, %v12519_v53  ;;  %v421_v32 = vand.u32 15, %v319_v13  ;;  %v12525_v33 = vmov 0  ;;  %v1481_v13 = vld [vmem:[#allocation2 + $0x69] sm:$0xff]  ;;  %v325_v30 = vadd.s32 136, %v9655_v9 }
  0xb6   : > { %12521 = vst [vmem:[#allocation63_spill] sm:$0xff] %v12520_v53  ;;  %v2222_v34 = vld [vmem:[#allocation2 + $0x80] sm:$0xff] }
  0xba   : > { %8347 = vmatmul.mubr.msk.bf16.vlgmr.msra.gmra.mxu0 %vm10063_vm0, %v10060_v52 }
  0xbb   : > { %8427 = vmatpush3.bf16.msra.mxu0 %v9929_v39  ;;  %8395 = vmatmul.mubr.msk.bf16.vlgmr.msra.gmra.mxu1 %vm9741_vm5, %v9747_v57  ;;  %v321_v39 = vadd.s32 104, %v9655_v9  ;;  %v10090_v57 = vpack.c.bf16 %v1476_v35, %v1475_v41  ;;  %vm10093_vm5 = vmpackc.low %vm763_vm12, %vm12304_vm1  ;;  %v9208_v35 = vld [vmem:[#allocation6 + $0x120] sm:$0xff]   ;;  %vm767_vm12 = vcmp.lt.s32.totalorder %v421_v32, 15  ;;  %v12528_v32 = vmov 0 }
  0xbc   : > { %8350 = vmatprep.mubr.msk.bf16.mxu0 %vm10070_vm2, %v10067_v19  ;;  %8428 = vmatprep.subr.bf16.mxu0 %v9206_v40  ;;  %v12523_v27 = vsel %vm10093_vm5, 4294967295, %v12522_v27 }
  0xbd   : > { %8398 = vmatprep.mubr.msk.bf16.mxu1 %vm9759_vm6, %v9791_v15  ;;  %8475 = vmatpush3.bf16.msra.mxu1 %v9981_v17  ;;  %12524 = vst [vmem:[#allocation64_spill] sm:$0xff] %v12523_v27  ;;  %vm10100_vm6 = vmpackc.low %vm765_vm15, %vm12304_vm1  ;;  %v1479_v15 = vld [vmem:[#allocation2 + $0x59] sm:$0xff]  ;;  %v1480_v17 = vld [vmem:[#allocation2 + $0x61] sm:$0xff]  ;;  %v435_v41 = vand.u32 15, %v321_v39 }
  0xbe   : > { %8476 = vmatprep.subr.bf16.mxu1 %v9211_v5  ;;  %v12526_v33 = vsel %vm10100_vm6, 4294967295, %v12525_v33  ;;  %v9209_v39 = vld [vmem:[#allocation6 + $0x118] sm:$0xff]   ;;  %v10118_v26 = vpack.c.bf16 %v1480_v17, %v1479_v15  ;;  %v463_v15 = vand.u32 15, %v325_v30  ;;  %v9212_v17 = vld [vmem:[#allocation6 + $0x110] sm:$0xff]  }
  0xbf   : > { %8429 = vmatpush3.bf16.msra.mxu0 %v9206_v40  ;;  %12527 = vst [vmem:[#allocation65_spill] sm:$0xff] %v12526_v33  ;;  %v323_v40 = vadd.s32 120, %v9655_v9  ;;  %vm769_vm15 = vcmp.lt.s32.totalorder %v435_v41, 15  ;;  %v329_v41 = vadd.s32 168, %v9655_v9  ;;  %v3939_v27 = vld [vmem:[#allocation2 + $0xf] sm:$0xff] }
  0xc0   : > { %8430 = vmatprep.subr.bf16.mxu0 %v9207_v37 }
  0xc1   : > { %8477 = vmatpush3.bf16.msra.mxu1 %v9211_v5  ;;  %v1482_v5 = vld [vmem:[#allocation2 + $0x71] sm:$0xff]  ;;  %v491_v21 = vand.u32 15, %v329_v41  ;;  %v505_v41 = vand.u32 15, %v331_v22  ;;  %v337_v22 = vadd.s32 232, %v9655_v9 }
  0xc2   : > { %8351 = vmatmul.mubr.msk.bf16.gmra.mxu0 %vm10093_vm5, %v10090_v57  ;;  %8478 = vmatprep.subr.bf16.mxu1 %v9213_v38  ;;  %v10125_v31 = vpack.c.bf16 %v1482_v5, %v1481_v13  ;;  %v9217_v13 = vld [vmem:[#allocation6 + $0x150] sm:$0xff]   ;;  %v1485_v5 = vld [vmem:[#allocation2 + $0x89] sm:$0xff] }
  0xc3   : > { %8399 = vmatmul.mubr.msk.bf16.gmra.mxu1 %vm9787_vm9, %v9809_v25  ;;  %8354 = vmatprep.mubr.msk.bf16.mxu0 %vm10100_vm6, %v10097_v16  ;;  %v9216_v25 = vld [vmem:[#allocation6 + $0x158] sm:$0xff]   ;;  %vm10121_vm9 = vmpackc.low %vm767_vm12, %vm12304_vm1 }
  0xc4   : > { %8402 = vmatprep.mubr.msk.bf16.mxu1 %vm9805_vm10, %v9854_v0  ;;  %8431 = vmatpush3.bf16.msra.mxu0 %v9207_v37  ;;  %v12529_v32 = vsel %vm10121_vm9, 4294967295, %v12528_v32  ;;  %vm10128_vm10 = vmpackc.low %vm769_vm15, %vm12304_vm1  ;;  %v12531_v0 = vmov 0  ;;  %v449_v37 = vand.u32 15, %v323_v40  ;;  %v1484_v40 = vld [vmem:[#allocation2 + $0x81] sm:$0xff]  ;;  %vm773_vm15 = vcmp.lt.s32.totalorder %v463_v15, 15 }
  0xc5   : > { %8432 = vmatprep.subr.bf16.mxu0 %v9208_v35  ;;  %8479 = vmatpush3.bf16.msra.mxu1 %v9213_v38  ;;  %12530 = vst [vmem:[#allocation66_spill] sm:$0xff] %v12529_v32  ;;  %v12532_v0 = vsel %vm10128_vm10, 4294967295, %v12531_v0  ;;  %v327_v38 = vadd.s32 152, %v9655_v9  ;;  %v1488_v15 = vld [vmem:[#allocation2 + $0xa1] sm:$0xff] }
  0xc6   : > { %8480 = vmatprep.subr.bf16.mxu1 %v9214_v59  ;;  %12533 = vst [vmem:[#allocation67_spill] sm:$0xff] %v12532_v0  ;;  %vm771_vm12 = vcmp.lt.s32.totalorder %v449_v37, 15  ;;  %v12534_v37 = vmov 0 }
  0xc7   : > { %v477_v30 = vand.u32 15, %v327_v38  ;;  %v1487_v38 = vld [vmem:[#allocation2 + $0x99] sm:$0xff] }
  0xc8   : > { %8433 = vmatpush3.bf16.msra.mxu0 %v9208_v35  ;;  %v1483_v35 = vld [vmem:[#allocation2 + $0x79] sm:$0xff]  ;;  %v10188_v63 = vpack.c.bf16 %v1488_v15, %v1487_v38  ;;  %v1492_v15 = vld [vmem:[#allocation2 + $0xc1] sm:$0xff] }
  0xc9   : > { %8434 = vmatprep.subr.bf16.mxu0 %v9209_v39  ;;  %8481 = vmatpush3.bf16.msra.mxu1 %v9214_v59  ;;  %v1486_v59 = vld [vmem:[#allocation2 + $0x91] sm:$0xff]  ;;  %v10147_v24 = vpack.c.bf16 %v1484_v40, %v1483_v35  ;;  %v1491_v38 = vld [vmem:[#allocation2 + $0xb9] sm:$0xff]  ;;  %v1493_v40 = vld [vmem:[#allocation2 + $0xc9] sm:$0xff] }
  0xca   : > { %8355 = vmatmul.mubr.msk.bf16.gmra.mxu0 %vm10121_vm9, %v10118_v26  ;;  %8482 = vmatprep.subr.bf16.mxu1 %v9216_v25  ;;  %v9218_v35 = vld [vmem:[#allocation6 + $0x100] sm:$0xff]  }
  0xcb   : > { %8403 = vmatmul.mubr.msk.bf16.gmra.mxu1 %vm9850_vm13, %v9865_v3  ;;  %8358 = vmatprep.mubr.msk.bf16.mxu0 %vm10128_vm10, %v10125_v31  ;;  %v9215_v3 = vld [vmem:[#allocation6 + $0x108] sm:$0xff]   ;;  %vm10150_vm13 = vmpackc.low %vm771_vm12, %vm12304_vm1  ;;  %vm10161_vm10 = vcmp.lt.s32.totalorder %v477_v30, 15  ;;  %vm10168_vm12 = vcmp.lt.s32.totalorder %v491_v21, 15  ;;  %v335_v30 = vadd.s32 216, %v9655_v9  ;;  %v10180_v21 = vld [vmem:[#allocation6 + $0x1b8] sm:$0xff]  }
  0xcc   : > { %8406 = vmatprep.mubr.msk.bf16.mxu1 %vm9861_vm14, %v9901_v49  ;;  %8435 = vmatpush3.bf16.msra.mxu0 %v9209_v39  ;;  %v12535_v37 = vsel %vm10150_vm13, 4294967295, %v12534_v37  ;;  %v10154_v49 = vpack.c.bf16 %v1486_v59, %v1485_v5  ;;  %vm10157_vm14 = vmpackc.low %vm773_vm15, %vm12304_vm1  ;;  %v12537_v39 = vmov 0  ;;  %v1489_v5 = vld [vmem:[#allocation2 + $0xa9] sm:$0xff]  ;;  %v333_v59 = vadd.s32 200, %v9655_v9 }
  0xcd   : > { %8436 = vmatprep.subr.bf16.mxu0 %v9212_v17  ;;  %8483 = vmatpush3.bf16.msra.mxu1 %v9216_v25  ;;  %12536 = vst [vmem:[#allocation68_spill] sm:$0xff] %v12535_v37  ;;  %v12538_v39 = vsel %vm10157_vm14, 4294967295, %v12537_v39  ;;  %vm10193_vm15 = vmpackc.low %vm10161_vm10, %vm12304_vm1  ;;  %v339_v25 = vadd.s32 248, %v9655_v9  ;;  %v533_v1 = vand.u32 15, %v335_v30  ;;  %vm12552_vm10 = vnez %v12494_v28  ;;  %v1494_v9 = vld [vmem:[#allocation2 + $0xd1] sm:$0xff]  ;;  %v1497_v30 = vld [vmem:[#allocation2 + $0xe9] sm:$0xff] }
  0xce   : > { %8484 = vmatprep.subr.bf16.mxu1 %v9217_v13  ;;  %12539 = vst [vmem:[#allocation69_spill] sm:$0xff] %v12538_v39 }
  0xd0   : > { %8437 = vmatpush3.bf16.msra.mxu0 %v9212_v17  ;;  %v1490_v17 = vld [vmem:[#allocation2 + $0xb1] sm:$0xff] }
  0xd1   : > { %8438 = vmatprep.subr.bf16.mxu0 %v9215_v3  ;;  %8485 = vmatpush3.bf16.msra.mxu1 %v9217_v13  ;;  %v10186_v13 = vld [vmem:[#allocation6 + $0x1f8] sm:$0xff]   ;;  %v10197_v58 = vpack.c.bf16 %v1490_v17, %v1489_v5  ;;  %v547_v5 = vand.u32 15, %v337_v22  ;;  %v561_v17 = vand.u32 15, %v339_v25  ;;  %v1498_v22 = vld [vmem:[#allocation2 + $0xf1] sm:$0xff]  ;;  %v1499_v25 = vld [vmem:[#allocation2 + $0xf9] sm:$0xff] }
  0xd2   : > { %8359 = vmatmul.mubr.msk.bf16.gmra.mxu0 %vm10150_vm13, %v10147_v24  ;;  %8486 = vmatprep.subr.bf16.mxu1 %v9219_v23 }
  0xd3   : > { %8407 = vmatmul.mubr.msk.bf16.gmra.mxu1 %vm9908_vm3, %v9912_v62  ;;  %8362 = vmatprep.mubr.msk.bf16.mxu0 %vm10157_vm14, %v10154_v49  ;;  %v12544_v62 = vmov 0  ;;  %vm10206_vm3 = vcmp.lt.s32.totalorder %v505_v41, 15  ;;  %v12553_v41 = vmov 0 }
  0xd4   : > { %8410 = vmatprep.mubr.msk.bf16.mxu1 %vm9917_vm4, %v9933_v50  ;;  %8439 = vmatpush3.bf16.msra.mxu0 %v9215_v3  ;;  %v12545_v62 = vsel %vm10193_vm15, 4294967295, %v12544_v62  ;;  %vm10202_vm4 = vmpackc.low %vm10168_vm12, %vm12304_vm1  ;;  %v12547_v50 = vmov 0  ;;  %v519_v3 = vand.u32 15, %v333_v59  ;;  %v1496_v59 = vld [vmem:[#allocation2 + $0xe1] sm:$0xff] }
  0xd5   : > { %8440 = vmatprep.subr.bf16.mxu0 %v9218_v35  ;;  %8487 = vmatpush3.bf16.msra.mxu1 %v9219_v23  ;;  %12546 = vst [vmem:[#allocation70_spill] sm:$0xff] %v12545_v62  ;;  %v12548_v50 = vsel %vm10202_vm4, 4294967295, %v12547_v50 }
  0xd6   : > { %8488 = vmatprep.subr.bf16.mxu1 %v9220_v2  ;;  %12549 = vst [vmem:[#allocation71_spill] sm:$0xff] %v12548_v50  ;;  %vm781_vm12 = vcmp.lt.s32.totalorder %v519_v3, 15  ;;  %v10260_v3 = vpack.c.bf16 %v1498_v22, %v1497_v30  ;;  %v2211_v30 = vld [vmem:[#allocation2 + $0x28] sm:$0xff]  ;;  %v2212_v22 = vld [vmem:[#allocation2 + $0x30] sm:$0xff] }
  0xd8   : > { %8441 = vmatpush3.bf16.msra.mxu0 %v9218_v35  ;;  %v12556_v35 = vmov 0 }
  0xd9   : > { %8489 = vmatpush3.bf16.msra.mxu1 %v9220_v2  ;;  %8522 = vmatprep.subr.bf16.mxu0 %v10180_v21  ;;  %v10225_v2 = vpack.c.bf16 %v1492_v15, %v1491_v38  ;;  %v1500_v38 = vld [vmem:[#allocation2 + $0x101] sm:$0xff] }
  0xda   : > { %8363 = vmatmul.mubr.msk.bf16.gmra.mxu0 %vm10193_vm15, %v10188_v63  ;;  %8570 = vmatprep.subr.bf16.mxu1 %v10186_v13  ;;  %vm10230_vm15 = vmpackc.low %vm10206_vm3, %vm12304_vm1  ;;  %vm12559_vm3 = vnez %v12497_v44  ;;  %v1901_v15 = vld [vmem:[#allocation2 + $0x107] sm:$0xff] }
  0xdb   : > { %8411 = vmatmul.mubr.msk.bf16.gmra.mxu1 %vm9940_vm11, %v9944_v48  ;;  %8366 = vmatprep.mubr.msk.bf16.mxu0 %vm10202_vm4, %v10197_v58  ;;  %v12554_v41 = vsel %vm10230_vm15, 4294967295, %v12553_v41  ;;  %v10234_v48 = vpack.c.bf16 %v1494_v9, %v1493_v40  ;;  %vm10237_vm11 = vmpackc.low %vm781_vm12, %vm12304_vm1  ;;  %vm785_vm4 = vcmp.lt.s32.totalorder %v547_v5, 15  ;;  %vm12560_vm12 = vnez %v12500_v6  ;;  %v2209_v5 = vld [vmem:[#allocation2 + $0x18] sm:$0xff]  ;;  %v2210_v40 = vld [vmem:[#allocation2 + $0x20] sm:$0xff] }
  0xdc   : > { %8414 = vmatprep.mubr.msk.bf16.mxu1 %vm12552_vm10, %v9968_v60  ;;  %12555 = vst [vmem:[#allocation72_spill] sm:$0xff] %v12554_v41  ;;  %v12557_v35 = vsel %vm10237_vm11, 4294967295, %v12556_v35  ;;  %v1495_v60 = vld [vmem:[#allocation2 + $0xd9] sm:$0xff]  ;;  %vm783_vm10 = vcmp.lt.s32.totalorder %v533_v1, 15  ;;  %vm787_vm1 = vcmp.lt.s32.totalorder %v561_v17, 15  ;;  %v12562_v1 = vmov 0 }
  0xdd   : > { %12558 = vst [vmem:[#allocation73_spill] sm:$0xff] %v12557_v35  ;;  %v10253_v23 = vpack.c.bf16 %v1496_v59, %v1495_v60  ;;  %v1902_v9 = vld [vmem:[#allocation2 + $0x10f] sm:$0xff]  ;;  %v10284_v17 = vpack.c.bf16 %v1500_v38, %v1499_v25  ;;  %v2241_v59 = vpack.c.bf16 %v2210_v40, %v2209_v5  ;;  %v10297_v25 = vpack.c.bf16 %v2212_v22, %v2211_v30  ;;  %v9227_v5 = vld [vmem:[#allocation6 + $0x1f0] sm:$0xff]  }
  0xde   : > { %v10286_v60 = vpack.c.bf16 %v1902_v9, %v1901_v15  ;;  %v9222_v15 = vld [vmem:[#allocation6 + $0x1b0] sm:$0xff]   ;;  %v2215_v40 = vld [vmem:[#allocation2 + $0x48] sm:$0xff]  ;;  %v2216_v9 = vld [vmem:[#allocation2 + $0x50] sm:$0xff] }
  0xdf   : > { %v9230_v22 = vld [vmem:[#allocation6 + $0x1e0] sm:$0xff]  }
  0xe0   : > { %12572 = vst [vmem:[#allocation77_spill] sm:$0xff] %v10286_v60 }
  0xe2   : > { %8367 = vmatmul.mubr.msk.bf16.gmra.mxu0 %vm10230_vm15, %v10225_v2  ;;  %vm12561_vm15 = vmmov 1  }
  0xe3   : > { %8415 = vmatmul.mubr.msk.bf16.gmra.mxu1 %vm12559_vm3, %v9979_v45  ;;  %8370 = vmatprep.mubr.msk.bf16.mxu0 %vm10237_vm11, %v10234_v48  ;;  %vm10256_vm14 = vmpackc.low %vm783_vm10, %vm12561_vm15  ;;  %v12565_v45 = vmov 0  ;;  %vm12575_vm10 = vnez %v12538_v39 }
  0xe4   : > { %8418 = vmatprep.mubr.msk.bf16.mxu1 %vm12560_vm12, %v9997_v47  ;;  %v12563_v1 = vsel %vm10256_vm14, 4294967295, %v12562_v1  ;;  %vm10263_vm3 = vmpackc.low %vm785_vm4, %vm12561_vm15  ;;  %v12568_v47 = vmov 0  ;;  %vm12571_vm4 = vnez %v12503_v11 }
  0xe5   : > { %12564 = vst [vmem:[#allocation74_spill] sm:$0xff] %v12563_v1  ;;  %v12566_v45 = vsel %vm10263_vm3, 4294967295, %v12565_v45  ;;  %vm10268_vm11 = vmpackc.low %vm787_vm1, %vm12561_vm15  ;;  %vm12573_vm1 = vnez %v12509_v7  ;;  %v2218_v7 = vld [vmem:[#allocation2 + $0x60] sm:$0xff]  ;;  %vm12574_vm15 = vnez %v12532_v0 }
  0xe6   : > { %12567 = vst [vmem:[#allocation75_spill] sm:$0xff] %v12566_v45  ;;  %v12569_v47 = vsel %vm10268_vm11, 4294967295, %v12568_v47  ;;  %v10313_v30 = vpack.c.bf16 %v2218_v7, %v2217_v56  ;;  %v9232_v56 = vld [vmem:[#allocation6 + $0x1d8] sm:$0xff]  }
  0xe7   : > { %12570 = vst [vmem:[#allocation76_spill] sm:$0xff] %v12569_v47 }
  0xea   : > { %8371 = vmatmul.mubr.msk.bf16.gmra.mxu0 %vm10256_vm14, %v10253_v23 }
  0xeb   : > { %8419 = vmatmul.mubr.msk.bf16.gmra.mxu1 %vm12571_vm4, %v10008_v54  ;;  %8374 = vmatprep.mubr.msk.bf16.mxu0 %vm10263_vm3, %v10260_v3  ;;  %v2213_v54 = vld [vmem:[#allocation2 + $0x38] sm:$0xff] }
  0xec   : > { %8422 = vmatprep.mubr.msk.bf16.mxu1 %vm10011_vm7, %v10037_v51  ;;  %v2214_v51 = vld [vmem:[#allocation2 + $0x40] sm:$0xff] }
  0xed   : > { %v10299_v38 = vpack.c.bf16 %v2214_v51, %v2213_v54  ;;  %v2220_v54 = vld [vmem:[#allocation2 + $0x70] sm:$0xff]  ;;  %v2221_v51 = vld [vmem:[#allocation2 + $0x78] sm:$0xff] }
  0xf2   : > { %8375 = vmatmul.mubr.msk.bf16.gmra.mxu0 %vm10268_vm11, %v10284_v17 }
  0xf3   : > { %8423 = vmatmul.mubr.msk.bf16.gmra.mxu1 %vm12573_vm1, %v10286_v60  ;;  %8442 = vmatprep.mubr.bf16.mxu0 %v2241_v59  ;;  %v9223_v60 = vld [vmem:[#allocation6 + $0x1a8] sm:$0xff]   ;;  %v10311_v59 = vpack.c.bf16 %v2216_v9, %v2215_v40  ;;  %v2224_v40 = vld [vmem:[#allocation2 + $0x90] sm:$0xff] }
  0xf4   : > { %8490 = vmatprep.mubr.msk.bf16.mxu1 %vm10040_vm8, %v10060_v52  ;;  %v9229_v52 = vld [vmem:[#allocation6 + $0x1e8] sm:$0xff]  }
  0xf5   : > { %v2225_v9 = vld [vmem:[#allocation2 + $0x98] sm:$0xff] }
  0xfa   : > { %8443 = vmatmul.mubr.bf16.vlgmr.msra.gmra.mxu0 %v10297_v25 }
  0xfb   : > { %8523 = vmatpush3.bf16.msra.mxu0 %v10180_v21  ;;  %8491 = vmatmul.mubr.msk.bf16.vlgmr.msra.gmra.mxu1 %vm10063_vm0, %v10067_v19  ;;  %v9224_v21 = vld [vmem:[#allocation6 + $0x1a0] sm:$0xff]   ;;  %v2219_v19 = vld [vmem:[#allocation2 + $0x68] sm:$0xff] }
  0xfc   : > { %8446 = vmatprep.mubr.bf16.mxu0 %v10299_v38  ;;  %8524 = vmatprep.subr.bf16.mxu0 %v9222_v15  ;;  %v10323_v7 = vpack.c.bf16 %v2220_v54, %v2219_v19  ;;  %v9236_v19 = vld [vmem:[#allocation6 + $0x1c0] sm:$0xff]   ;;  %v2230_v54 = vld [vmem:[#allocation2 + $0xc0] sm:$0xff] }
  0xfd   : > { %8494 = vmatprep.mubr.msk.bf16.mxu1 %vm10070_vm2, %v10090_v57  ;;  %8571 = vmatpush3.bf16.msra.mxu1 %v10186_v13  ;;  %v9225_v57 = vld [vmem:[#allocation6 + $0x198] sm:$0xff]   ;;  %v10325_v13 = vpack.c.bf16 %v2222_v34, %v2221_v51  ;;  %v9231_v34 = vld [vmem:[#allocation6 + $0x188] sm:$0xff]  }
  0xfe   : > { %8572 = vmatprep.subr.bf16.mxu1 %v9227_v5 }
  0xff   : > { %8525 = vmatpush3.bf16.msra.mxu0 %v9222_v15  ;;  %v9228_v15 = vld [vmem:[#allocation6 + $0x190] sm:$0xff]  }
 0x100   : > { %8526 = vmatprep.subr.bf16.mxu0 %v9223_v60 }
 0x101   : > { %8573 = vmatpush3.bf16.msra.mxu1 %v9227_v5  ;;  %v9233_v5 = vld [vmem:[#allocation6 + $0x1d0] sm:$0xff]  }
 0x102   : > { %8447 = vmatmul.mubr.bf16.gmra.mxu0 %v10311_v59  ;;  %8574 = vmatprep.subr.bf16.mxu1 %v9229_v52 }
 0x103   : > { %8495 = vmatmul.mubr.msk.bf16.gmra.mxu1 %vm10093_vm5, %v10097_v16  ;;  %8450 = vmatprep.mubr.bf16.mxu0 %v10313_v30  ;;  %v2223_v16 = vld [vmem:[#allocation2 + $0x88] sm:$0xff] }
 0x104   : > { %8498 = vmatprep.mubr.msk.bf16.mxu1 %vm10100_vm6, %v10118_v26  ;;  %8527 = vmatpush3.bf16.msra.mxu0 %v9223_v60  ;;  %v2226_v26 = vld [vmem:[#allocation2 + $0xa0] sm:$0xff]  ;;  %v9235_v60 = vld [vmem:[#allocation6 + $0x1c8] sm:$0xff]  }
 0x105   : > { %8528 = vmatprep.subr.bf16.mxu0 %v9224_v21  ;;  %8575 = vmatpush3.bf16.msra.mxu1 %v9229_v52  ;;  %v10335_v52 = vpack.c.bf16 %v2224_v40, %v2223_v16  ;;  %v2860_v16 = vld [vmem:[#allocation2 + $0x5f] sm:$0xff] }
 0x106   : > { %8576 = vmatprep.subr.bf16.mxu1 %v9230_v22 }
 0x108   : > { %8529 = vmatpush3.bf16.msra.mxu0 %v9224_v21  ;;  %v10337_v21 = vpack.c.bf16 %v2226_v26, %v2225_v9  ;;  %v2862_v26 = vld [vmem:[#allocation2 + $0x6f] sm:$0xff] }
 0x109   : > { %8530 = vmatprep.subr.bf16.mxu0 %v9225_v57  ;;  %8577 = vmatpush3.bf16.msra.mxu1 %v9230_v22  ;;  %v9234_v22 = vld [vmem:[#allocation6 + $0x180] sm:$0xff]  }
 0x10a   : > { %8451 = vmatmul.mubr.bf16.gmra.mxu0 %v10323_v7  ;;  %8578 = vmatprep.subr.bf16.mxu1 %v9232_v56 }
 0x10b   : > { %8499 = vmatmul.mubr.msk.bf16.gmra.mxu1 %vm10121_vm9, %v10125_v31  ;;  %8454 = vmatprep.mubr.bf16.mxu0 %v10325_v13  ;;  %v2229_v31 = vld [vmem:[#allocation2 + $0xb8] sm:$0xff]  ;;  %vm12579_vm9 = vnez %v12557_v35 }
 0x10c   : > { %8502 = vmatprep.mubr.msk.bf16.mxu1 %vm12574_vm15, %v10147_v24  ;;  %8531 = vmatpush3.bf16.msra.mxu0 %v9225_v57  ;;  %v9237_v24 = vld [vmem:[#allocation6 + $0x238] sm:$0xff]   ;;  %v10347_v51 = vpack.c.bf16 %v2230_v54, %v2229_v31  ;;  %vm12578_vm15 = vnez %v12554_v41  ;;  %v9238_v57 = vld [vmem:[#allocation6 + $0x230] sm:$0xff]  }
 0x10d   : > { %8532 = vmatprep.subr.bf16.mxu0 %v9228_v15  ;;  %8579 = vmatpush3.bf16.msra.mxu1 %v9232_v56 }
 0x10e   : > { %8580 = vmatprep.subr.bf16.mxu1 %v9233_v5 }
 0x110   : > { %8533 = vmatpush3.bf16.msra.mxu0 %v9228_v15 }
 0x111   : > { %8534 = vmatprep.subr.bf16.mxu0 %v9231_v34  ;;  %8581 = vmatpush3.bf16.msra.mxu1 %v9233_v5  ;;  %v2859_v5 = vld [vmem:[#allocation2 + $0x57] sm:$0xff] }
 0x112   : > { %8455 = vmatmul.mubr.bf16.gmra.mxu0 %v10335_v52  ;;  %8582 = vmatprep.subr.bf16.mxu1 %v9235_v60  ;;  %v7331_v31 = vpack.c.bf16 %v2860_v16, %v2859_v5 }
 0x113   : > { %8503 = vmatmul.mubr.msk.bf16.gmra.mxu1 %vm10150_vm13, %v10154_v49  ;;  %8458 = vmatprep.mubr.bf16.mxu0 %v10337_v21  ;;  %vm12576_vm13 = vnez %v12545_v62 }
 0x114   : > { %8506 = vmatprep.mubr.msk.bf16.mxu1 %vm12575_vm10, %v10188_v63  ;;  %8535 = vmatpush3.bf16.msra.mxu0 %v9231_v34  ;;  %vm12577_vm10 = vnez %v12548_v50  ;;  %v2545_v63 = vld [vmem:[#allocation2 + $0x109] sm:$0xff]  ;;  %v9239_v34 = vld [vmem:[#allocation6 + $0x228] sm:$0xff]  }
 0x115   : > { %8536 = vmatprep.subr.bf16.mxu0 %v9234_v22  ;;  %8583 = vmatpush3.bf16.msra.mxu1 %v9235_v60 }
 0x116   : > { %8584 = vmatprep.subr.bf16.mxu1 %v9236_v19 }
 0x118   : > { %8537 = vmatpush3.bf16.msra.mxu0 %v9234_v22 }
 0x119   : > { %8585 = vmatpush3.bf16.msra.mxu1 %v9236_v19  ;;  %8618 = vmatprep.subr.bf16.mxu0 %v9237_v24 }
 0x11a   : > { %8459 = vmatmul.mubr.bf16.gmra.mxu0 %v9937_v42  ;;  %v2853_v42 = vld [vmem:[#allocation2 + $0x27] sm:$0xff] }
 0x11b   : > { %8507 = vmatmul.mubr.msk.bf16.gmra.mxu1 %vm12576_vm13, %v10197_v58  ;;  %8462 = vmatprep.mubr.bf16.mxu0 %v10347_v51  ;;  %v2546_v58 = vld [vmem:[#allocation2 + $0x111] sm:$0xff] }
 0x11c   : > { %8510 = vmatprep.mubr.msk.bf16.mxu1 %vm12577_vm10, %v10225_v2  ;;  %v10377_v49 = vpack.c.bf16 %v2546_v58, %v2545_v63  ;;  %v2856_v2 = vld [vmem:[#allocation2 + $0x3f] sm:$0xff] }
 0x122   : > { %8463 = vmatmul.mubr.bf16.gmra.mxu0 %v9972_v43  ;;  %v2854_v43 = vld [vmem:[#allocation2 + $0x2f] sm:$0xff] }
 0x123   : > { %8511 = vmatmul.mubr.msk.bf16.gmra.mxu1 %vm12578_vm15, %v10234_v48  ;;  %8466 = vmatprep.mubr.bf16.mxu0 %v9995_v36  ;;  %v10375_v36 = vpack.c.bf16 %v10046_v12, %v10035_v10  ;;  %v2857_v48 = vld [vmem:[#allocation2 + $0x47] sm:$0xff]  ;;  %v12589_v12 = vld [vmem:[#allocation50_spill] sm:$0xff] }
 0x124   : > { %8514 = vmatprep.mubr.msk.bf16.mxu1 %vm12579_vm9, %v10253_v23  ;;  %v2858_v23 = vld [vmem:[#allocation2 + $0x4f] sm:$0xff] }
 0x12a   : > { %8467 = vmatmul.mubr.bf16.gmra.mxu0 %v10001_v46  ;;  %v7322_v46 = vpack.c.bf16 %v2854_v43, %v2853_v42  ;;  %v9240_v42 = vld [vmem:[#allocation6 + $0x220] sm:$0xff]  }
 0x12b   : > { %8515 = vmatmul.mubr.msk.bf16.gmra.mxu1 %vm10256_vm14, %v10260_v3  ;;  %8470 = vmatprep.mubr.bf16.mxu0 %v10026_v29  ;;  %vm12580_vm14 = vnez %v12422_v18  ;;  %v2855_v29 = vld [vmem:[#allocation2 + $0x37] sm:$0xff] }
 0x12c   : > { %8518 = vmatprep.mubr.msk.bf16.mxu1 %vm10263_vm3, %v10284_v17  ;;  %v7325_v3 = vpack.c.bf16 %v2856_v2, %v2855_v29  ;;  %v7328_v17 = vpack.c.bf16 %v2858_v23, %v2857_v48  ;;  %vm12581_vm3 = vnez %v12443_v55  ;;  %v2863_v29 = vld [vmem:[#allocation2 + $0x77] sm:$0xff]  ;;  %v2864_v2 = vld [vmem:[#allocation2 + $0x7f] sm:$0xff] }
 0x132   : > { %8471 = vmatmul.mubr.bf16.gmra.mxu0 %v10375_v36 }
 0x133   : > { %8519 = vmatmul.mubr.msk.bf16.gmra.mxu1 %vm10268_vm11, %v10377_v49  ;;  %8538 = vmatprep.mubr.msk.bf16.mxu0 %vm12580_vm14, %v7322_v46  ;;  %vm12582_vm14 = vnez %v12448_v61 }
 0x134   : > { %8586 = vmatprep.mubr.bf16.mxu1 %v10297_v25  ;;  %v2861_v25 = vld [vmem:[#allocation2 + $0x67] sm:$0xff] }
 0x135   : > { %v7334_v54 = vpack.c.bf16 %v2862_v26, %v2861_v25 }
 0x13a   : > { %v8252_v56 = vpop.f32.mrf.mxu0  ;;  %8539 = vmatmul.mubr.msk.bf16.vlgmr.msra.gmra.mxu0 %vm12581_vm3, %v7325_v3  ;;  %vm12584_vm3 = vnez %v12460_v20  ;;  %v2865_v3 = vld [vmem:[#allocation2 + $0x87] sm:$0xff] }
 0x13b   : > { %v8300_v15 = vpop.f32.mrf.mxu1  ;;  %8619 = vmatpush3.bf16.msra.mxu0 %v9237_v24  ;;  %8587 = vmatmul.mubr.bf16.vlgmr.msra.gmra.mxu1 %v10299_v38 }
 0x13c   : > { %v10389_v40 = vadd.f32 %v8300_v15, %v8252_v56  ;;  %v1133_v9 = vpop.f32.mrf.mxu0  ;;  %8542 = vmatprep.mubr.msk.bf16.mxu0 %vm12582_vm14, %v7328_v17  ;;  %8620 = vmatprep.subr.bf16.mxu0 %v9238_v57  ;;  %vm12583_vm14 = vnez %v12455_v14  ;;  %v2866_v17 = vld [vmem:[#allocation2 + $0x8f] sm:$0xff] }
 0x13d   : > { %v1342_v60 = vpop.f32.mrf.mxu1  ;;  %8590 = vmatprep.mubr.bf16.mxu1 %v10311_v59  ;;  %v9241_v56 = vld [vmem:[#allocation6 + $0x218] sm:$0xff]  }
 0x13e   : > { %v10394_v22 = vadd.f32 %v1342_v60, %v1133_v9  ;;  %v8253_v19 = vpop.f32.mrf.mxu0  ;;  %v7340_v9 = vpack.c.bf16 %v2866_v17, %v2865_v3  ;;  %v3208_v3 = vld [vmem:[#allocation2 + $0xb0] sm:$0xff]  ;;  %v9243_v17 = vld [vmem:[#allocation6 + $0x208] sm:$0xff]  }
 0x13f   : > { %v8301_v38 = vpop.f32.mrf.mxu1  ;;  %8621 = vmatpush3.bf16.msra.mxu0 %v9238_v57 }
 0x140   : > { %v10396_v24 = vadd.f32 %v8301_v38, %v8253_v19  ;;  %v1136_v63 = vpop.f32.mrf.mxu0  ;;  %8622 = vmatprep.subr.bf16.mxu0 %v9239_v34  ;;  %v9242_v19 = vld [vmem:[#allocation6 + $0x210] sm:$0xff]  }
 0x141   : > { %v1345_v58 = vpop.f32.mrf.mxu1 }
 0x142   : > { %v10398_v43 = vadd.f32 %v1345_v58, %v1136_v63  ;;  %v8256_v46 = vpop.f32.mrf.mxu0  ;;  %8543 = vmatmul.mubr.msk.bf16.gmra.mxu0 %vm12583_vm14, %v7331_v31  ;;  %v12585_v31 = vld [vmem:[#allocation44_spill] sm:$0xff]  ;;  %v2867_v63 = vld [vmem:[#allocation2 + $0x97] sm:$0xff]  ;;  %v2868_v58 = vld [vmem:[#allocation2 + $0x9f] sm:$0xff] }
 0x143   : > { %v8304_v59 = vpop.f32.mrf.mxu1  ;;  %8591 = vmatmul.mubr.bf16.gmra.mxu1 %v10313_v30  ;;  %8546 = vmatprep.mubr.msk.bf16.mxu0 %vm12584_vm3, %v7334_v54  ;;  %v7337_v30 = vpack.c.bf16 %v2864_v2, %v2863_v29  ;;  %vm12586_vm3 = vnez %v12585_v31  ;;  %v12587_v54 = vld [vmem:[#allocation45_spill] sm:$0xff] }
 0x144   : > { %v10405_v48 = vadd.f32 %v8304_v59, %v8256_v46  ;;  %v1149_v23 = vpop.f32.mrf.mxu0  ;;  %8594 = vmatprep.mubr.bf16.mxu1 %v10323_v7  ;;  %8623 = vmatpush3.bf16.msra.mxu0 %v9239_v34  ;;  %vm12588_vm14 = vnez %v12587_v54  ;;  %v2869_v59 = vld [vmem:[#allocation2 + $0xa7] sm:$0xff]  ;;  %v2870_v29 = vld [vmem:[#allocation2 + $0xaf] sm:$0xff] }
 0x145   : > { %v1358_v57 = vpop.f32.mrf.mxu1  ;;  %8624 = vmatprep.subr.bf16.mxu0 %v9240_v42 }
 0x146   : > { %v10408_v15 = vadd.f32 %v1358_v57, %v1149_v23  ;;  %v8257_v5 = vpop.f32.mrf.mxu0  ;;  %v3207_v23 = vld [vmem:[#allocation2 + $0xa8] sm:$0xff] }
 0x147   : > { %v8305_v16 = vpop.f32.mrf.mxu1 }
 0x148   : > { %v10410_v25 = vadd.f32 %v8305_v16, %v8257_v5  ;;  %v1152_v26 = vpop.f32.mrf.mxu0  ;;  %8625 = vmatpush3.bf16.msra.mxu0 %v9240_v42  ;;  %v7343_v5 = vpack.c.bf16 %v2868_v58, %v2867_v63  ;;  %v7346_v16 = vpack.c.bf16 %v2870_v29, %v2869_v59  ;;  %v12591_v63 = vld [vmem:[#allocation51_spill] sm:$0xff]  ;;  %v2871_v58 = vld [vmem:[#allocation2 + $0xb7] sm:$0xff] }
 0x149   : > { %v1361_v60 = vpop.f32.mrf.mxu1  ;;  %8626 = vmatprep.subr.bf16.mxu0 %v9241_v56  ;;  %v2872_v59 = vld [vmem:[#allocation2 + $0xbf] sm:$0xff] }
 0x14a   : > { %v10412_v7 = vadd.f32 %v1361_v60, %v1152_v26  ;;  %v8260_v34 = vpop.f32.mrf.mxu0  ;;  %8547 = vmatmul.mubr.msk.bf16.gmra.mxu0 %vm12586_vm3, %v7337_v30  ;;  %v3231_v60 = vpack.c.bf16 %v3208_v3, %v3207_v23  ;;  %vm12592_vm3 = vnez %v12591_v63  ;;  %v2874_v23 = vld [vmem:[#allocation2 + $0xcf] sm:$0xff] }
 0x14b   : > { %v8308_v38 = vpop.f32.mrf.mxu1  ;;  %8595 = vmatmul.mubr.bf16.gmra.mxu1 %v10325_v13  ;;  %8550 = vmatprep.mubr.msk.bf16.mxu0 %vm12588_vm14, %v7340_v9  ;;  %vm12590_vm14 = vnez %v12589_v12 }
 0x14c   : > { %v10419_v46 = vadd.f32 %v8308_v38, %v8260_v34  ;;  %v1165_v42 = vpop.f32.mrf.mxu0  ;;  %8598 = vmatprep.mubr.bf16.mxu1 %v10335_v52  ;;  %8627 = vmatpush3.bf16.msra.mxu0 %v9241_v56  ;;  %v9244_v34 = vld [vmem:[#allocation6 + $0x200] sm:$0xff]  }
 0x14d   : > { %v1374_v2 = vpop.f32.mrf.mxu1  ;;  %8628 = vmatprep.subr.bf16.mxu0 %v9242_v19 }
 0x14e   : > { %v10422_v57 = vadd.f32 %v1374_v2, %v1165_v42  ;;  %v8261_v13 = vpop.f32.mrf.mxu0  ;;  %v2873_v2 = vld [vmem:[#allocation2 + $0xc7] sm:$0xff] }
 0x14f   : > { %v8309_v30 = vpop.f32.mrf.mxu1  ;;  %v7352_v10 = vpack.c.bf16 %v2874_v23, %v2873_v2 }
 0x150   : > { %v10424_v9 = vadd.f32 %v8309_v30, %v8261_v13  ;;  %v1168_v26 = vpop.f32.mrf.mxu0  ;;  %8629 = vmatpush3.bf16.msra.mxu0 %v9242_v19  ;;  %v3211_v13 = vld [vmem:[#allocation2 + $0xc8] sm:$0xff]  ;;  %v3212_v30 = vld [vmem:[#allocation2 + $0xd0] sm:$0xff] }
 0x151   : > { %v1377_v52 = vpop.f32.mrf.mxu1  ;;  %8630 = vmatprep.subr.bf16.mxu0 %v9243_v17 }
 0x152   : > { %v10426_v56 = vadd.f32 %v1377_v52, %v1168_v26  ;;  %v8264_v38 = vpop.f32.mrf.mxu0  ;;  %8551 = vmatmul.mubr.msk.bf16.gmra.mxu0 %vm12590_vm14, %v7343_v5  ;;  %vm12594_vm14 = vnez %v12494_v28 }
 0x153   : > { %v8312_v42 = vpop.f32.mrf.mxu1  ;;  %8599 = vmatmul.mubr.bf16.gmra.mxu1 %v10337_v21  ;;  %8554 = vmatprep.mubr.msk.bf16.mxu0 %vm12592_vm3, %v7346_v16  ;;  %v7349_v21 = vpack.c.bf16 %v2872_v59, %v2871_v58  ;;  %vm12593_vm3 = vnez %v12491_v4  ;;  %v2875_v58 = vld [vmem:[#allocation2 + $0xd7] sm:$0xff]  ;;  %v2876_v59 = vld [vmem:[#allocation2 + $0xdf] sm:$0xff] }
 0x154   : > { %v10433_v29 = vadd.f32 %v8312_v42, %v8264_v38  ;;  %v1181_v19 = vpop.f32.mrf.mxu0  ;;  %8602 = vmatprep.mubr.bf16.mxu1 %v3231_v60  ;;  %8631 = vmatpush3.bf16.msra.mxu0 %v9243_v17  ;;  %v3233_v38 = vpack.c.bf16 %v3212_v30, %v3211_v13  ;;  %v3215_v30 = vld [vmem:[#allocation2 + $0xe8] sm:$0xff] }
 0x155   : > { %v1390_v3 = vpop.f32.mrf.mxu1  ;;  %8632 = vmatprep.subr.bf16.mxu0 %v9244_v34 }
 0x156   : > { %v10435_v5 = vadd.f32 %v1390_v3, %v1181_v19  ;;  %v8265_v26 = vpop.f32.mrf.mxu0  ;;  %v3213_v19 = vld [vmem:[#allocation2 + $0xd8] sm:$0xff]  ;;  %v2878_v3 = vld [vmem:[#allocation2 + $0xef] sm:$0xff] }
 0x157   : > { %v8313_v52 = vpop.f32.mrf.mxu1 }
 0x158   : > { %v10437_v16 = vadd.f32 %v8313_v52, %v8265_v26  ;;  %v1184_v63 = vpop.f32.mrf.mxu0  ;;  %8633 = vmatpush3.bf16.msra.mxu0 %v9244_v34  ;;  %v3214_v34 = vld [vmem:[#allocation2 + $0xe0] sm:$0xff]  ;;  %v3216_v26 = vld [vmem:[#allocation2 + $0xf0] sm:$0xff] }
 0x159   : > { %v1393_v42 = vpop.f32.mrf.mxu1  ;;  %v3234_v28 = vpack.c.bf16 %v3214_v34, %v3213_v19  ;;  %v3217_v34 = vld [vmem:[#allocation2 + $0xf8] sm:$0xff] }
 0x15a   : > { %v10439_v60 = vadd.f32 %v1393_v42, %v1184_v63  ;;  %v8268_v12 = vpop.f32.mrf.mxu0  ;;  %8555 = vmatmul.mubr.msk.bf16.gmra.mxu0 %vm12593_vm3, %v7349_v21  ;;  %v2877_v63 = vld [vmem:[#allocation2 + $0xe7] sm:$0xff] }
 0x15b   : > { %v8316_v17 = vpop.f32.mrf.mxu1  ;;  %8603 = vmatmul.mubr.bf16.gmra.mxu1 %v10347_v51  ;;  %8558 = vmatprep.mubr.msk.bf16.mxu0 %vm12594_vm14, %v7352_v10  ;;  %v7355_v51 = vpack.c.bf16 %v2876_v59, %v2875_v58  ;;  %v7358_v10 = vpack.c.bf16 %v2878_v3, %v2877_v63  ;;  %vm12596_vm14 = vnez %v12497_v44  ;;  %v2879_v58 = vld [vmem:[#allocation2 + $0xf7] sm:$0xff]  ;;  %v2880_v59 = vld [vmem:[#allocation2 + $0xff] sm:$0xff] }
 0x15c   : > { %v10446_v2 = vadd.f32 %v8316_v17, %v8268_v12  ;;  %v1197_v23 = vpop.f32.mrf.mxu0  ;;  %8606 = vmatprep.mubr.bf16.mxu1 %v3233_v38  ;;  %v3235_v12 = vpack.c.bf16 %v3216_v26, %v3215_v30  ;;  %v3218_v63 = vld [vmem:[#allocation2 + $0x100] sm:$0xff]  ;;  %v7361_v26 = vpack.c.bf16 %v2880_v59, %v2879_v58 }
 0x15d   : > { %v1406_v13 = vpop.f32.mrf.mxu1  ;;  %v2884_v58 = vld [vmem:[#allocation2 + $0x11f] sm:$0xff] }
 0x15e   : > { %v10448_v21 = vadd.f32 %v1406_v13, %v1197_v23  ;;  %v8269_v52 = vpop.f32.mrf.mxu0 }
 0x15f   : > { %v8317_v42 = vpop.f32.mrf.mxu1 }
 0x160   : > { %v10450_v4 = vadd.f32 %v8317_v42, %v8269_v52  ;;  %v10452_v54 = vpop.f32.mrf.mxu0 }
 0x161   : > { %v10454_v17 = vpop.f32.mrf.mxu1 }
 0x162   : > { %12595 = vst [vmem:[#allocation78_spill] sm:$0xff] %v10454_v17  ;;  %v8272_v38 = vpop.f32.mrf.mxu0  ;;  %8559 = vmatmul.mubr.msk.bf16.gmra.mxu0 %vm12596_vm14, %v7355_v51  ;;  %v3236_v51 = vpack.c.bf16 %v3218_v63, %v3217_v34  ;;  %v3497_v63 = vld [vmem:[#allocation2 + $0x29] sm:$0xff] }
 0x163   : > { %v8320_v31 = vpop.f32.mrf.mxu1  ;;  %8607 = vmatmul.mubr.bf16.gmra.mxu1 %v3234_v28  ;;  %8562 = vmatprep.mubr.msk.bf16.mxu0 %vm12560_vm12, %v7358_v10 }
 0x164   : > { %v10460_v19 = vadd.f32 %v8320_v31, %v8272_v38  ;;  %v1213_v23 = vpop.f32.mrf.mxu0  ;;  %8610 = vmatprep.mubr.bf16.mxu1 %v3235_v12  ;;  %v12599_v12 = vld [vmem:[#allocation77_spill] sm:$0xff] }
 0x165   : > { %v1422_v3 = vpop.f32.mrf.mxu1 }
 0x166   : > { %v10462_v13 = vadd.f32 %v1422_v3, %v1213_v23  ;;  %v8273_v30 = vpop.f32.mrf.mxu0  ;;  %v2883_v23 = vld [vmem:[#allocation2 + $0x117] sm:$0xff] }
 0x167   : > { %v8321_v52 = vpop.f32.mrf.mxu1  ;;  %v3498_v3 = vld [vmem:[#allocation2 + $0x31] sm:$0xff] }
 0x168   : > { %v10464_v42 = vadd.f32 %v8321_v52, %v8273_v30  ;;  %v10466_v28 = vpop.f32.mrf.mxu0  ;;  %v7386_v38 = vpack.c.bf16 %v3498_v3, %v3497_v63  ;;  %v3502_v63 = vld [vmem:[#allocation2 + $0x51] sm:$0xff] }
 0x169   : > { %12597 = vst [vmem:[#allocation79_spill] sm:$0xff] %v10466_v28  ;;  %v10468_v10 = vpop.f32.mrf.mxu1 }
 0x16a   : > { %12598 = vst [vmem:[#allocation80_spill] sm:$0xff] %v10468_v10  ;;  %v8276_v6 = vpop.f32.mrf.mxu0  ;;  %8563 = vmatmul.mubr.msk.bf16.gmra.mxu0 %vm12571_vm4, %v7361_v26  ;;  %v7367_v26 = vpack.c.bf16 %v2884_v58, %v2883_v23  ;;  %v3499_v23 = vld [vmem:[#allocation2 + $0x39] sm:$0xff]  ;;  %v3500_v58 = vld [vmem:[#allocation2 + $0x41] sm:$0xff] }
 0x16b   : > { %v8324_v31 = vpop.f32.mrf.mxu1  ;;  %8611 = vmatmul.mubr.bf16.gmra.mxu1 %v3236_v51  ;;  %8566 = vmatprep.mubr.msk.bf16.mxu0 %vm10011_vm7, %v12599_v12  ;;  %v9317_v51 = vld [vmem:[#allocation2 + $0x8] sm:$0xff]  ;;  %v7389_v55 = vpack.c.bf16 %v3500_v58, %v3499_v23 }
 0x16c   : > { %v10475_v59 = vadd.f32 %v8324_v31, %v8276_v6  ;;  %v1229_v34 = vpop.f32.mrf.mxu0  ;;  %8614 = vmatprep.mubr.bf16.mxu1 %v10375_v36  ;;  %v10480_v20 = vpack.c.bf16 %v9317_v51, %v9317_v51  ;;  %v3504_v23 = vld [vmem:[#allocation2 + $0x61] sm:$0xff] }
 0x16d   : > { %v1438_v30 = vpop.f32.mrf.mxu1 }
 0x16e   : > { %v10478_v52 = vadd.f32 %v1438_v30, %v1229_v34  ;;  %v8277_v11 = vpop.f32.mrf.mxu0 }
 0x16f   : > { %v8325_v44 = vpop.f32.mrf.mxu1 }
 0x170   : > { %v10482_v12 = vadd.f32 %v8325_v44, %v8277_v11  ;;  %v10484_v14 = vpop.f32.mrf.mxu0  ;;  %v3501_v44 = vld [vmem:[#allocation2 + $0x49] sm:$0xff] }
 0x171   : > { %12601 = vst [vmem:[#allocation77_spill] sm:$0xff] %v10484_v14  ;;  %v10486_v6 = vpop.f32.mrf.mxu1 }
 0x172   : > { %12602 = vst [vmem:[#allocation81_spill] sm:$0xff] %v10486_v6  ;;  %v8280_v31 = vpop.f32.mrf.mxu0  ;;  %8567 = vmatmul.mubr.msk.bf16.gmra.mxu0 %vm12573_vm1, %v7367_v26  ;;  %v7392_v26 = vpack.c.bf16 %v3502_v63, %v3501_v44  ;;  %v3505_v44 = vld [vmem:[#allocation2 + $0x69] sm:$0xff] }
 0x173   : > { %v8328_v61 = vpop.f32.mrf.mxu1  ;;  %8615 = vmatmul.mubr.bf16.gmra.mxu1 %v10480_v20  ;;  %8634 = vmatprep.mubr.msk.bf16.mxu0 %vm10040_vm8, %v7386_v38 }
 0x174   : > { %v10493_v34 = vadd.f32 %v8328_v61, %v8280_v31  ;;  %v1245_v11 = vpop.f32.mrf.mxu0  ;;  %8682 = vmatprep.mubr.bf16.mxu1 %v10480_v20 }
 0x175   : > { %v1454_v3 = vpop.f32.mrf.mxu1 }
 0x176   : > { %v10495_v30 = vadd.f32 %v1454_v3, %v1245_v11  ;;  %v8281_v51 = vpop.f32.mrf.mxu0  ;;  %v3503_v11 = vld [vmem:[#allocation2 + $0x59] sm:$0xff] }
 0x177   : > { %v8329_v36 = vpop.f32.mrf.mxu1 }
 0x178   : > { %v10497_v6 = vadd.f32 %v8329_v36, %v8281_v51  ;;  %v10499_v14 = vpop.f32.mrf.mxu0  ;;  %v3506_v36 = vld [vmem:[#allocation2 + $0x71] sm:$0xff] }
 0x179   : > { %12604 = vst [vmem:[#allocation82_spill] sm:$0xff] %v10499_v14  ;;  %v10501_v8 = vpop.f32.mrf.mxu1  ;;  %v7395_v14 = vpack.c.bf16 %v3504_v23, %v3503_v11  ;;  %v3509_v23 = vld [vmem:[#allocation2 + $0x89] sm:$0xff] }
 0x17a   : > { %12605 = vst [vmem:[#allocation83_spill] sm:$0xff] %v10501_v8  ;;  %v8348_v38 = vpop.f32.mrf.mxu0  ;;  %8635 = vmatmul.mubr.msk.bf16.vlgmr.msra.gmra.mxu0 %vm10063_vm0, %v7389_v55 }
 0x17b   : > { %v1841_v61 = vadd.f32 %v8348_v38, %v10389_v40  ;;  %v8396_v31 = vpop.f32.mrf.mxu1  ;;  %8638 = vmatprep.mubr.msk.bf16.mxu0 %vm10070_vm2, %v7392_v26  ;;  %v7398_v38 = vpack.c.bf16 %v3506_v36, %v3505_v44 }
 0x17c   : > { %v1712_v58 = vpop.f32.mrf.mxu0 }
 0x17d   : > { %v1839_v63 = vadd.f32 %v1712_v58, %v10394_v22  ;;  %v10509_v3 = vadd.f32 %v8396_v31, %v1841_v61  ;;  %v2050_v51 = vpop.f32.mrf.mxu1 }
 0x17e   : > { %v8349_v8 = vpop.f32.mrf.mxu0 }
 0x17f   : > { %v1842_v55 = vadd.f32 %v8349_v8, %v10396_v24  ;;  %v10512_v10 = vadd.f32 %v2050_v51, %v1839_v63  ;;  %v8397_v40 = vpop.f32.mrf.mxu1  ;;  %v3507_v8 = vld [vmem:[#allocation2 + $0x79] sm:$0xff]  ;;  %v3508_v24 = vld [vmem:[#allocation2 + $0x81] sm:$0xff] }
 0x180   : > { %v1715_v53 = vpop.f32.mrf.mxu0  ;;  %v7401_v63 = vpack.c.bf16 %v3508_v24, %v3507_v8  ;;  %v3512_v8 = vld [vmem:[#allocation2 + $0xa1] sm:$0xff] }
 0x181   : > { %v10515_v26 = vadd.f32 %v1715_v53, %v10398_v43  ;;  %v10517_v28 = vadd.f32 %v8397_v40, %v1842_v55  ;;  %v10519_v17 = vpop.f32.mrf.mxu1  ;;  %v3510_v53 = vld [vmem:[#allocation2 + $0x91] sm:$0xff] }
 0x182   : > { %v8352_v22 = vpop.f32.mrf.mxu0  ;;  %8639 = vmatmul.mubr.msk.bf16.gmra.mxu0 %vm10093_vm5, %v7395_v14  ;;  %v7404_v55 = vpack.c.bf16 %v3510_v53, %v3509_v23  ;;  %vm12608_vm5 = vnez %v12532_v0 }
 0x183   : > { %v1845_v61 = vadd.f32 %v8352_v22, %v10405_v48  ;;  %v8400_v31 = vpop.f32.mrf.mxu1  ;;  %8642 = vmatprep.mubr.msk.bf16.mxu0 %vm10100_vm6, %v7398_v38  ;;  %vm12607_vm6 = vnez %v12529_v32  ;;  %v3938_v32 = vld [vmem:[#allocation2 + $0x7] sm:$0xff] }
 0x184   : > { %v1728_v11 = vpop.f32.mrf.mxu0 }
 0x185   : > { %v1843_v43 = vadd.f32 %v1728_v11, %v10408_v15  ;;  %v10527_v58 = vadd.f32 %v8400_v31, %v1845_v61  ;;  %v2066_v44 = vpop.f32.mrf.mxu1  ;;  %v3513_v11 = vld [vmem:[#allocation2 + $0xa9] sm:$0xff] }
 0x186   : > { %v8353_v36 = vpop.f32.mrf.mxu0 }
 0x187   : > { %v1846_v14 = vadd.f32 %v8353_v36, %v10410_v25  ;;  %v10530_v51 = vadd.f32 %v2066_v44, %v1843_v43  ;;  %v8401_v48 = vpop.f32.mrf.mxu1  ;;  %v3511_v25 = vld [vmem:[#allocation2 + $0x99] sm:$0xff] }
 0x188   : > { %v1731_v40 = vpop.f32.mrf.mxu0  ;;  %v7407_v36 = vpack.c.bf16 %v3512_v8, %v3511_v25  ;;  %v3515_v25 = vld [vmem:[#allocation2 + $0xb9] sm:$0xff]  ;;  %v3516_v8 = vld [vmem:[#allocation2 + $0xc1] sm:$0xff] }
 0x189   : > { %v10533_v38 = vadd.f32 %v1731_v40, %v10412_v7  ;;  %v10535_v22 = vadd.f32 %v8401_v48, %v1846_v14  ;;  %v10537_v33 = vpop.f32.mrf.mxu1  ;;  %v3514_v7 = vld [vmem:[#allocation2 + $0xb1] sm:$0xff] }
 0x18a   : > { %v8356_v15 = vpop.f32.mrf.mxu0  ;;  %8643 = vmatmul.mubr.msk.bf16.gmra.mxu0 %vm12607_vm6, %v7401_v63  ;;  %v7410_v48 = vpack.c.bf16 %v3514_v7, %v3513_v11  ;;  %vm12610_vm6 = vnez %v12538_v39  ;;  %v3518_v11 = vld [vmem:[#allocation2 + $0xd1] sm:$0xff] }
 0x18b   : > { %v1849_v61 = vadd.f32 %v8356_v15, %v10419_v46  ;;  %v8404_v31 = vpop.f32.mrf.mxu1  ;;  %8646 = vmatprep.mubr.msk.bf16.mxu0 %vm12608_vm5, %v7404_v55  ;;  %vm12609_vm5 = vnez %v12535_v37 }
 0x18c   : > { %v1744_v24 = vpop.f32.mrf.mxu0 }
 0x18d   : > { %v1847_v23 = vadd.f32 %v1744_v24, %v10422_v57  ;;  %v10545_v53 = vadd.f32 %v8404_v31, %v1849_v61  ;;  %v2082_v43 = vpop.f32.mrf.mxu1  ;;  %v9245_v57 = vld [vmem:[#allocation8 + $0x78] sm:$0xff]  }
 0x18e   : > { %v8357_v44 = vpop.f32.mrf.mxu0  ;;  %8666 = vmatprep.subr.bf16.mxu1 %v9245_v57  ;;  %v3517_v24 = vld [vmem:[#allocation2 + $0xc9] sm:$0xff] }
 0x18f   : > { %v1850_v63 = vadd.f32 %v8357_v44, %v10424_v9  ;;  %v10548_v14 = vadd.f32 %v2082_v43, %v1847_v23  ;;  %v8405_v46 = vpop.f32.mrf.mxu1  ;;  %8667 = vmatpush3.bf16.msra.mxu1 %v9245_v57 }
 0x190   : > { %v1747_v40 = vpop.f32.mrf.mxu0 }
 0x191   : > { %v10551_v55 = vadd.f32 %v1747_v40, %v10426_v56  ;;  %v10553_v15 = vadd.f32 %v8405_v46, %v1850_v63  ;;  %v10555_v0 = vpop.f32.mrf.mxu1 }
 0x192   : > { %v8360_v61 = vpop.f32.mrf.mxu0  ;;  %8647 = vmatmul.mubr.msk.bf16.gmra.mxu0 %vm12609_vm5, %v7407_v36  ;;  %v7413_v36 = vpack.c.bf16 %v3516_v8, %v3515_v25  ;;  %v3519_v25 = vld [vmem:[#allocation2 + $0xd9] sm:$0xff]  ;;  %v3520_v8 = vld [vmem:[#allocation2 + $0xe1] sm:$0xff] }
 0x193   : > { %v1853_v31 = vadd.f32 %v8360_v61, %v10433_v29  ;;  %v8408_v9 = vpop.f32.mrf.mxu1  ;;  %8650 = vmatprep.mubr.msk.bf16.mxu0 %vm12610_vm6, %v7410_v48  ;;  %v7416_v48 = vpack.c.bf16 %v3518_v11, %v3517_v24  ;;  %v3522_v24 = vld [vmem:[#allocation2 + $0xf1] sm:$0xff] }
 0x194   : > { %v1760_v56 = vpop.f32.mrf.mxu0 }
 0x195   : > { %v1851_v7 = vadd.f32 %v1760_v56, %v10435_v5  ;;  %v10563_v23 = vadd.f32 %v8408_v9, %v1853_v31  ;;  %v2098_v43 = vpop.f32.mrf.mxu1  ;;  %v9246_v5 = vld [vmem:[#allocation8 + $0x70] sm:$0xff]   ;;  %v3521_v56 = vld [vmem:[#allocation2 + $0xe9] sm:$0xff] }
 0x196   : > { %v8361_v44 = vpop.f32.mrf.mxu0  ;;  %8668 = vmatprep.subr.bf16.mxu1 %v9246_v5 }
 0x197   : > { %v1854_v29 = vadd.f32 %v8361_v44, %v10437_v16  ;;  %v10566_v63 = vadd.f32 %v2098_v43, %v1851_v7  ;;  %v8409_v46 = vpop.f32.mrf.mxu1  ;;  %8669 = vmatpush3.bf16.msra.mxu1 %v9246_v5  ;;  %v9247_v5 = vld [vmem:[#allocation8 + $0x68] sm:$0xff]  }
 0x198   : > { %v1763_v40 = vpop.f32.mrf.mxu0  ;;  %8670 = vmatprep.subr.bf16.mxu1 %v9247_v5 }
 0x199   : > { %v10569_v61 = vadd.f32 %v1763_v40, %v10439_v60  ;;  %v10571_v39 = vadd.f32 %v8409_v46, %v1854_v29  ;;  %v10573_v57 = vpop.f32.mrf.mxu1 }
 0x19a   : > { %v8364_v31 = vpop.f32.mrf.mxu0  ;;  %8651 = vmatmul.mubr.msk.bf16.gmra.mxu0 %vm12576_vm13, %v7413_v36  ;;  %v7419_v36 = vpack.c.bf16 %v3520_v8, %v3519_v25 }
 0x19b   : > { %v1857_v9 = vadd.f32 %v8364_v31, %v10446_v2  ;;  %v8412_v16 = vpop.f32.mrf.mxu1  ;;  %8654 = vmatprep.mubr.msk.bf16.mxu0 %vm12577_vm10, %v7416_v48  ;;  %v7422_v48 = vpack.c.bf16 %v3522_v24, %v3521_v56  ;;  %8671 = vmatpush3.bf16.msra.mxu1 %v9247_v5 }
 0x19c   : > { %v1776_v60 = vpop.f32.mrf.mxu0 }
 0x19d   : > { %v1855_v11 = vadd.f32 %v1776_v60, %v10448_v21  ;;  %v10581_v7 = vadd.f32 %v8412_v16, %v1857_v9  ;;  %v2114_v43 = vpop.f32.mrf.mxu1  ;;  %v3524_v16 = vld [vmem:[#allocation2 + $0x101] sm:$0xff] }
 0x19e   : > { %v8365_v44 = vpop.f32.mrf.mxu0 }
 0x19f   : > { %v1858_v2 = vadd.f32 %v8365_v44, %v10450_v4  ;;  %v10584_v29 = vadd.f32 %v2114_v43, %v1855_v11  ;;  %v8413_v46 = vpop.f32.mrf.mxu1  ;;  %v3523_v4 = vld [vmem:[#allocation2 + $0xf9] sm:$0xff] }
 0x1a0   : > { %v10586_v40 = vpop.f32.mrf.mxu0  ;;  %v7425_v11 = vpack.c.bf16 %v3524_v16, %v3523_v4 }
 0x1a1   : > { %v10588_v31 = vadd.f32 %v8413_v46, %v1858_v2  ;;  %v10590_v50 = vpop.f32.mrf.mxu1  ;;  %v9248_v46 = vld [vmem:[#allocation8 + $0x60] sm:$0xff]  }
 0x1a2   : > { %12611 = vst [vmem:[#allocation84_spill] sm:$0xff] %v10590_v50  ;;  %v8368_v62 = vpop.f32.mrf.mxu0  ;;  %8655 = vmatmul.mubr.msk.bf16.gmra.mxu0 %vm12578_vm15, %v7419_v36  ;;  %vm12614_vm15 = vnez %v12566_v45  ;;  %8672 = vmatprep.subr.bf16.mxu1 %v9248_v46 }
 0x1a3   : > { %v1861_v21 = vadd.f32 %v8368_v62, %v10460_v19  ;;  %v8416_v9 = vpop.f32.mrf.mxu1  ;;  %8658 = vmatprep.mubr.msk.bf16.mxu0 %vm12579_vm9, %v7422_v48  ;;  %vm12613_vm9 = vnez %v12563_v1  ;;  %8673 = vmatpush3.bf16.msra.mxu1 %v9248_v46  ;;  %v9249_v46 = vld [vmem:[#allocation8 + $0x58] sm:$0xff]  }
 0x1a4   : > { %v1792_v25 = vpop.f32.mrf.mxu0  ;;  %8674 = vmatprep.subr.bf16.mxu1 %v9249_v46 }
 0x1a5   : > { %v1859_v8 = vadd.f32 %v1792_v25, %v10462_v13  ;;  %v10598_v60 = vadd.f32 %v8416_v9, %v1861_v21  ;;  %v2130_v56 = vpop.f32.mrf.mxu1  ;;  %v3528_v21 = vld [vmem:[#allocation2 + $0x121] sm:$0xff] }
 0x1a6   : > { %v8369_v24 = vpop.f32.mrf.mxu0 }
 0x1a7   : > { %v1862_v43 = vadd.f32 %v8369_v24, %v10464_v42  ;;  %v10601_v44 = vadd.f32 %v2130_v56, %v1859_v8  ;;  %v8417_v62 = vpop.f32.mrf.mxu1  ;;  %v3527_v42 = vld [vmem:[#allocation2 + $0x119] sm:$0xff]  ;;  %8675 = vmatpush3.bf16.msra.mxu1 %v9249_v46 }
 0x1a8   : > { %v10603_v19 = vpop.f32.mrf.mxu0  ;;  %v7431_v56 = vpack.c.bf16 %v3528_v21, %v3527_v42 }
 0x1a9   : > { %v10605_v36 = vadd.f32 %v8417_v62, %v1862_v43  ;;  %v10607_v2 = vpop.f32.mrf.mxu1 }
 0x1aa   : > { %12612 = vst [vmem:[#allocation85_spill] sm:$0xff] %v10607_v2  ;;  %v8372_v48 = vpop.f32.mrf.mxu0  ;;  %8659 = vmatmul.mubr.msk.bf16.gmra.mxu0 %vm12613_vm9, %v7425_v11 }
 0x1ab   : > { %v1865_v13 = vadd.f32 %v8372_v48, %v10475_v59  ;;  %v8420_v5 = vpop.f32.mrf.mxu1  ;;  %8662 = vmatprep.mubr.msk.bf16.mxu0 %vm12614_vm15, %v10377_v49  ;;  %v9250_v49 = vld [vmem:[#allocation8 + $0x38] sm:$0xff]  }
 0x1ac   : > { %v1808_v9 = vpop.f32.mrf.mxu0  ;;  %8714 = vmatprep.subr.bf16.mxu0 %v9250_v49 }
 0x1ad   : > { %v1863_v4 = vadd.f32 %v1808_v9, %v10478_v52  ;;  %v10616_v16 = vadd.f32 %v8420_v5, %v1865_v13  ;;  %v2146_v25 = vpop.f32.mrf.mxu1  ;;  %8715 = vmatpush3.bf16.msra.mxu0 %v9250_v49  ;;  %v9251_v5 = vld [vmem:[#allocation8 + $0x30] sm:$0xff]  }
 0x1ae   : > { %v8373_v8 = vpop.f32.mrf.mxu0  ;;  %8716 = vmatprep.subr.bf16.mxu0 %v9251_v5  ;;  %v9252_v49 = vld [vmem:[#allocation8 + $0x50] sm:$0xff]  }
 0x1af   : > { %v1866_v24 = vadd.f32 %v8373_v8, %v10482_v12  ;;  %v10619_v59 = vadd.f32 %v2146_v25, %v1863_v4  ;;  %v8421_v11 = vpop.f32.mrf.mxu1  ;;  %8676 = vmatprep.subr.bf16.mxu1 %v9252_v49 }
 0x1b0   : > { %v10621_v43 = vpop.f32.mrf.mxu0  ;;  %8677 = vmatpush3.bf16.msra.mxu1 %v9252_v49 }
 0x1b1   : > { %v10623_v62 = vadd.f32 %v8421_v11, %v1866_v24  ;;  %v10625_v48 = vpop.f32.mrf.mxu1  ;;  %8717 = vmatpush3.bf16.msra.mxu0 %v9251_v5 }
 0x1b2   : > { %12615 = vst [vmem:[#allocation86_spill] sm:$0xff] %v10625_v48  ;;  %v8376_v45 = vpop.f32.mrf.mxu0  ;;  %8663 = vmatmul.mubr.msk.bf16.gmra.mxu0 %vm10268_vm11, %v7431_v56  ;;  %vm12619_vm11 = vnez %v12422_v18  ;;  %v10717_v18 = vld [vmem:[#allocation8 + $0xb8] sm:$0xff]  }
 0x1b3   : > { %v1869_v52 = vadd.f32 %v8376_v45, %v10493_v34  ;;  %v8424_v13 = vpop.f32.mrf.mxu1  ;;  %v9253_v34 = vld [vmem:[#allocation8 + $0x28] sm:$0xff]   ;;  %12626 = vst [vmem:[#allocation96_spill] sm:$0xff] %v10717_v18 }
 0x1b4   : > { %v1824_v12 = vpop.f32.mrf.mxu0  ;;  %8718 = vmatprep.subr.bf16.mxu0 %v9253_v34 }
 0x1b5   : > { %v1867_v42 = vadd.f32 %v1824_v12, %v10495_v30  ;;  %v10631_v21 = vadd.f32 %v8424_v13, %v1869_v52  ;;  %v2162_v9 = vpop.f32.mrf.mxu1  ;;  %8719 = vmatpush3.bf16.msra.mxu0 %v9253_v34  ;;  %v9254_v13 = vld [vmem:[#allocation8 + $0x20] sm:$0xff]  }
 0x1b6   : > { %v8377_v4 = vpop.f32.mrf.mxu0  ;;  %8720 = vmatprep.subr.bf16.mxu0 %v9254_v13 }
 0x1b7   : > { %v1870_v25 = vadd.f32 %v8377_v4, %v10497_v6  ;;  %v10634_v8 = vadd.f32 %v2162_v9, %v1867_v42  ;;  %v8425_v56 = vpop.f32.mrf.mxu1 }
 0x1b8   : > { %v10636_v45 = vpop.f32.mrf.mxu0 }
 0x1b9   : > { %12616 = vst [vmem:[#allocation87_spill] sm:$0xff] %v10636_v45  ;;  %v10638_v24 = vadd.f32 %v8425_v56, %v1870_v25  ;;  %v10640_v11 = vpop.f32.mrf.mxu1  ;;  %8721 = vmatpush3.bf16.msra.mxu0 %v9254_v13  ;;  %v9255_v25 = vld [vmem:[#allocation8 + $0x48] sm:$0xff]   ;;  %v9256_v56 = vld [vmem:[#allocation8 + $0x18] sm:$0xff]  }
 0x1ba   : > { %12617 = vst [vmem:[#allocation88_spill] sm:$0xff] %v10640_v11  ;;  %v8444_v30 = vpop.f32.mrf.mxu0  ;;  %8678 = vmatprep.subr.bf16.mxu1 %v9255_v25  ;;  %8722 = vmatprep.subr.bf16.mxu0 %v9256_v56 }
 0x1bb   : > { %v10643_v46 = vadd.f32 %v8444_v30, %v10509_v3  ;;  %v10645_v52 = vpop.f32.mrf.mxu1  ;;  %8679 = vmatpush3.bf16.msra.mxu1 %v9255_v25 }
 0x1bc   : > { %v2356_v6 = vpop.f32.mrf.mxu0 }
 0x1bd   : > { %v10648_v12 = vadd.f32 %v2356_v6, %v10512_v10  ;;  %v10650_v5 = vpop.f32.mrf.mxu1  ;;  %8723 = vmatpush3.bf16.msra.mxu0 %v9256_v56  ;;  %v9257_v6 = vld [vmem:[#allocation8 + $0x10] sm:$0xff]   ;;  %v9259_v56 = vld [vmem:[#allocation8 + $0x8] sm:$0xff]  }
 0x1be   : > { %v8445_v42 = vpop.f32.mrf.mxu0  ;;  %8724 = vmatprep.subr.bf16.mxu0 %v9257_v6 }
 0x1bf   : > { %v10653_v9 = vadd.f32 %v8445_v42, %v10517_v28  ;;  %v10655_v4 = vpop.f32.mrf.mxu1  ;;  %v9258_v42 = vld [vmem:[#allocation8 + $0x40] sm:$0xff]  }
 0x1c0   : > { %v10657_v3 = vpop.f32.mrf.mxu0  ;;  %8680 = vmatprep.subr.bf16.mxu1 %v9258_v42 }
 0x1c1   : > { %v10659_v34 = vpop.f32.mrf.mxu1  ;;  %8725 = vmatpush3.bf16.msra.mxu0 %v9257_v6  ;;  %8681 = vmatpush3.bf16.msra.mxu1 %v9258_v42 }
 0x1c2   : > { %v8448_v49 = vpop.f32.mrf.mxu0  ;;  %8726 = vmatprep.subr.bf16.mxu0 %v9259_v56  ;;  %8762 = vmatprep.subr.bf16.mxu1 %v10717_v18 }
 0x1c3   : > { %v10662_v10 = vadd.f32 %v8448_v49, %v10527_v58  ;;  %v10664_v30 = vpop.f32.mrf.mxu1 }
 0x1c4   : > { %v2372_v28 = vpop.f32.mrf.mxu0 }
 0x1c5   : > { %v10667_v13 = vadd.f32 %v2372_v28, %v10530_v51  ;;  %v10669_v47 = vpop.f32.mrf.mxu1  ;;  %8727 = vmatpush3.bf16.msra.mxu0 %v9259_v56 }
 0x1c6   : > { %v8449_v1 = vpop.f32.mrf.mxu0 }
 0x1c7   : > { %v10672_v35 = vadd.f32 %v8449_v1, %v10535_v22  ;;  %v10674_v58 = vpop.f32.mrf.mxu1  ;;  %v9260_v22 = vld [vmem:[#allocation8] sm:$0xff]  }
 0x1c8   : > { %v10676_v25 = vpop.f32.mrf.mxu0  ;;  %8728 = vmatprep.subr.bf16.mxu0 %v9260_v22 }
 0x1c9   : > { %v10678_v49 = vpop.f32.mrf.mxu1  ;;  %8729 = vmatpush3.bf16.msra.mxu0 %v9260_v22 }
 0x1ca   : > { %v8452_v51 = vpop.f32.mrf.mxu0 }
 0x1cb   : > { %v10682_v28 = vadd.f32 %v8452_v51, %v10545_v53  ;;  %v10684_v41 = vpop.f32.mrf.mxu1  ;;  %v7451_v53 = vpack.c.bf16 %v3939_v27, %v3938_v32 }
 0x1cc   : > { %v2388_v1 = vpop.f32.mrf.mxu0 }
 0x1cd   : > { %v10687_v6 = vadd.f32 %v2388_v1, %v10548_v14  ;;  %v10689_v42 = vpop.f32.mrf.mxu1  ;;  %8730 = vmatprep.mubr.msk.bf16.mxu0 %vm12619_vm11, %v7451_v53 }
 0x1ce   : > { %v8453_v37 = vpop.f32.mrf.mxu0 }
 0x1cf   : > { %v10692_v20 = vadd.f32 %v8453_v37, %v10553_v15  ;;  %v10694_v11 = vpop.f32.mrf.mxu1 }
 0x1d0   : > { %v10696_v51 = vpop.f32.mrf.mxu0 }
 0x1d1   : > { %v10698_v56 = vpop.f32.mrf.mxu1 }
 0x1d2   : > { %12618 = vst [vmem:[#allocation89_spill] sm:$0xff] %v10698_v56  ;;  %v8456_v14 = vpop.f32.mrf.mxu0 }
 0x1d3   : > { %v10703_v1 = vadd.f32 %v8456_v14, %v10563_v23  ;;  %v10705_v45 = vpop.f32.mrf.mxu1 }
 0x1d4   : > { %12621 = vst [vmem:[#allocation91_spill] sm:$0xff] %v10705_v45  ;;  %v2404_v48 = vpop.f32.mrf.mxu0 }
 0x1d5   : > { %12620 = vst [vmem:[#allocation90_spill] sm:$0xff] %v10703_v1  ;;  %v10708_v37 = vadd.f32 %v2404_v48, %v10566_v63  ;;  %v10710_v15 = vpop.f32.mrf.mxu1 }
 0x1d6   : > { %12623 = vst [vmem:[#allocation93_spill] sm:$0xff] %v10710_v15  ;;  %v8457_v27 = vpop.f32.mrf.mxu0 }
 0x1d7   : > { %12622 = vst [vmem:[#allocation92_spill] sm:$0xff] %v10708_v37  ;;  %v10713_v32 = vadd.f32 %v8457_v27, %v10571_v39  ;;  %v10715_v22 = vpop.f32.mrf.mxu1 }
 0x1d8   : > { %12625 = vst [vmem:[#allocation95_spill] sm:$0xff] %v10715_v22  ;;  %v10719_v53 = vpop.f32.mrf.mxu0 }
 0x1d9   : > { %12624 = vst [vmem:[#allocation94_spill] sm:$0xff] %v10713_v32  ;;  %12627 = vst [vmem:[#allocation97_spill] sm:$0xff] %v10719_v53  ;;  %v10721_v23 = vpop.f32.mrf.mxu1 }
 0x1da   : > { %12628 = vst [vmem:[#allocation98_spill] sm:$0xff] %v10721_v23  ;;  %v8460_v14 = vpop.f32.mrf.mxu0 }
 0x1db   : > { %v10725_v63 = vadd.f32 %v8460_v14, %v10581_v7  ;;  %v10727_v48 = vpop.f32.mrf.mxu1 }
 0x1dc   : > { %12630 = vst [vmem:[#allocation100_spill] sm:$0xff] %v10727_v48  ;;  %v2420_v15 = vpop.f32.mrf.mxu0 }
 0x1dd   : > { %12629 = vst [vmem:[#allocation99_spill] sm:$0xff] %v10725_v63  ;;  %v10730_v39 = vadd.f32 %v2420_v15, %v10584_v29  ;;  %v10732_v27 = vpop.f32.mrf.mxu1 }
 0x1de   : > { %12632 = vst [vmem:[#allocation102_spill] sm:$0xff] %v10732_v27  ;;  %v8461_v22 = vpop.f32.mrf.mxu0 }
 0x1df   : > { %12631 = vst [vmem:[#allocation101_spill] sm:$0xff] %v10730_v39  ;;  %v10735_v32 = vadd.f32 %v8461_v22, %v10588_v31  ;;  %v10737_v53 = vpop.f32.mrf.mxu1 }
 0x1e0   : > { %12634 = vst [vmem:[#allocation104_spill] sm:$0xff] %v10737_v53  ;;  %v10739_v23 = vpop.f32.mrf.mxu0 }
 0x1e1   : > { %12633 = vst [vmem:[#allocation103_spill] sm:$0xff] %v10735_v32  ;;  %12635 = vst [vmem:[#allocation105_spill] sm:$0xff] %v10739_v23  ;;  %v10741_v37 = vpop.f32.mrf.mxu1 }
 0x1e2   : > { %12636 = vst [vmem:[#allocation106_spill] sm:$0xff] %v10741_v37  ;;  %v8464_v7 = vpop.f32.mrf.mxu0 }
 0x1e3   : > { %v10744_v14 = vadd.f32 %v8464_v7, %v10598_v60  ;;  %v10746_v48 = vpop.f32.mrf.mxu1 }
 0x1e4   : > { %12638 = vst [vmem:[#allocation108_spill] sm:$0xff] %v10746_v48  ;;  %v2436_v29 = vpop.f32.mrf.mxu0 }
 0x1e5   : > { %12637 = vst [vmem:[#allocation107_spill] sm:$0xff] %v10744_v14  ;;  %v10749_v15 = vadd.f32 %v2436_v29, %v10601_v44  ;;  %v10751_v27 = vpop.f32.mrf.mxu1 }
 0x1e6   : > { %12640 = vst [vmem:[#allocation110_spill] sm:$0xff] %v10751_v27  ;;  %v8465_v31 = vpop.f32.mrf.mxu0 }
 0x1e7   : > { %12639 = vst [vmem:[#allocation109_spill] sm:$0xff] %v10749_v15  ;;  %v10754_v22 = vadd.f32 %v8465_v31, %v10605_v36  ;;  %v10756_v53 = vpop.f32.mrf.mxu1 }
 0x1e8   : > { %12642 = vst [vmem:[#allocation112_spill] sm:$0xff] %v10756_v53  ;;  %v10758_v32 = vpop.f32.mrf.mxu0 }
 0x1e9   : > { %12641 = vst [vmem:[#allocation111_spill] sm:$0xff] %v10754_v22  ;;  %12643 = vst [vmem:[#allocation113_spill] sm:$0xff] %v10758_v32  ;;  %v10760_v37 = vpop.f32.mrf.mxu1 }
 0x1ea   : > { %12644 = vst [vmem:[#allocation114_spill] sm:$0xff] %v10760_v37  ;;  %v8468_v60 = vpop.f32.mrf.mxu0  ;;  %v10779_v37 = vld [vmem:[#allocation8 + $0xf8] sm:$0xff]  }
 0x1eb   : > { %v10763_v7 = vadd.f32 %v8468_v60, %v10616_v16  ;;  %v10765_v48 = vpop.f32.mrf.mxu1  ;;  %12652 = vst [vmem:[#allocation122_spill] sm:$0xff] %v10779_v37  ;;  %8810 = vmatprep.subr.bf16.mxu0 %v10779_v37 }
 0x1ec   : > { %12646 = vst [vmem:[#allocation116_spill] sm:$0xff] %v10765_v48  ;;  %v2452_v44 = vpop.f32.mrf.mxu0 }
 0x1ed   : > { %12645 = vst [vmem:[#allocation115_spill] sm:$0xff] %v10763_v7  ;;  %v10768_v29 = vadd.f32 %v2452_v44, %v10619_v59  ;;  %v10770_v27 = vpop.f32.mrf.mxu1 }
 0x1ee   : > { %12648 = vst [vmem:[#allocation118_spill] sm:$0xff] %v10770_v27  ;;  %v8469_v36 = vpop.f32.mrf.mxu0 }
 0x1ef   : > { %12647 = vst [vmem:[#allocation117_spill] sm:$0xff] %v10768_v29  ;;  %v10773_v31 = vadd.f32 %v8469_v36, %v10623_v62  ;;  %v10775_v53 = vpop.f32.mrf.mxu1 }
 0x1f0   : > { %12650 = vst [vmem:[#allocation120_spill] sm:$0xff] %v10775_v53  ;;  %v10777_v22 = vpop.f32.mrf.mxu0 }
 0x1f1   : > { %12649 = vst [vmem:[#allocation119_spill] sm:$0xff] %v10773_v31  ;;  %12651 = vst [vmem:[#allocation121_spill] sm:$0xff] %v10777_v22  ;;  %v10781_v16 = vpop.f32.mrf.mxu1 }
 0x1f2   : > { %12653 = vst [vmem:[#allocation123_spill] sm:$0xff] %v10781_v16  ;;  %v8472_v60 = vpop.f32.mrf.mxu0 }
 0x1f3   : > { %v10785_v59 = vadd.f32 %v8472_v60, %v10631_v21  ;;  %v10787_v44 = vpop.f32.mrf.mxu1 }
 0x1f4   : > { %12655 = vst [vmem:[#allocation125_spill] sm:$0xff] %v10787_v44  ;;  %v2468_v27 = vpop.f32.mrf.mxu0 }
 0x1f5   : > { %12654 = vst [vmem:[#allocation124_spill] sm:$0xff] %v10785_v59  ;;  %v10790_v62 = vadd.f32 %v2468_v27, %v10634_v8  ;;  %v10792_v36 = vpop.f32.mrf.mxu1 }
 0x1f6   : > { %12657 = vst [vmem:[#allocation127_spill] sm:$0xff] %v10792_v36  ;;  %v8473_v53 = vpop.f32.mrf.mxu0 }
 0x1f7   : > { %12656 = vst [vmem:[#allocation126_spill] sm:$0xff] %v10790_v62  ;;  %v10795_v31 = vadd.f32 %v8473_v53, %v10638_v24  ;;  %v10797_v29 = vpop.f32.mrf.mxu1 }
 0x1f8   : > { %12659 = vst [vmem:[#allocation129_spill] sm:$0xff] %v10797_v29  ;;  %v10799_v16 = vpop.f32.mrf.mxu0 }
 0x1f9   : > { %12658 = vst [vmem:[#allocation128_spill] sm:$0xff] %v10795_v31  ;;  %12660 = vst [vmem:[#allocation130_spill] sm:$0xff] %v10799_v16  ;;  %v10801_v22 = vpop.f32.mrf.mxu1 }
 0x1fa   : > { %12661 = vst [vmem:[#allocation131_spill] sm:$0xff] %v10801_v22  ;;  %v8540_v21 = vpop.f32.mrf.mxu0 }
 0x1fb   : > { %v8588_v60 = vpop.f32.mrf.mxu1 }
 0x1fc   : > { %v3032_v59 = vpop.f32.mrf.mxu0 }
 0x1fd   : > { %v3338_v44 = vpop.f32.mrf.mxu1 }
 0x1fe   : > { %v8541_v48 = vpop.f32.mrf.mxu0 }
 0x1ff   : > { %v10803_v7 = vpop.f32.mrf.mxu1 }
 0x200   : > { %v3035_v8 = vpop.f32.mrf.mxu0 }
 0x201   : > { %v10807_v36 = vpop.f32.mrf.mxu1 }
 0x202   : > { %v10805_v27 = vpop.f32.mrf.mxu0 }
 0x203   : > { %v10813_v29 = vpop.f32.mrf.mxu1 }
 0x204   : > { %v10809_v24 = vpop.f32.mrf.mxu0 }
 0x205   : > { %v10819_v16 = vpop.f32.mrf.mxu1 }
 0x206   : > { %v10811_v53 = vpop.f32.mrf.mxu0 }
 0x207   : > { %v10825_v32 = vpop.f32.mrf.mxu1 }
 0x208   : > { %v10815_v31 = vpop.f32.mrf.mxu0 }
 0x209   : > { %v10831_v39 = vpop.f32.mrf.mxu1 }
 0x20a   : > { %v10817_v22 = vpop.f32.mrf.mxu0 }
 0x20b   : > { %v10837_v18 = vpop.f32.mrf.mxu1 }
 0x20c   : > { %v10821_v62 = vpop.f32.mrf.mxu0  ;;  %12667 = vst [vmem:[#allocation137_spill] sm:$0xff] %v10837_v18 }
 0x20d   : > { %v10843_v56 = vpop.f32.mrf.mxu1 }
 0x20e   : > { %v10823_v15 = vpop.f32.mrf.mxu0  ;;  %12670 = vst [vmem:[#allocation140_spill] sm:$0xff] %v10843_v56 }
 0x20f   : > { %12662 = vst [vmem:[#allocation132_spill] sm:$0xff] %v10823_v15 }
 0x210   : > { %v10827_v14 = vpop.f32.mrf.mxu0 }
 0x211   : > { %12663 = vst [vmem:[#allocation133_spill] sm:$0xff] %v10827_v14  ;;  %v10849_v14 = vpop.f32.mrf.mxu1 }
 0x212   : > { %v10829_v37 = vpop.f32.mrf.mxu0  ;;  %12673 = vst [vmem:[#allocation143_spill] sm:$0xff] %v10849_v14 }
 0x213   : > { %12664 = vst [vmem:[#allocation134_spill] sm:$0xff] %v10829_v37 }
 0x214   : > { %v10833_v23 = vpop.f32.mrf.mxu0 }
 0x215   : > { %12665 = vst [vmem:[#allocation135_spill] sm:$0xff] %v10833_v23  ;;  %v10855_v23 = vpop.f32.mrf.mxu1 }
 0x216   : > { %v10835_v63 = vpop.f32.mrf.mxu0 }
 0x217   : > { %12666 = vst [vmem:[#allocation136_spill] sm:$0xff] %v10835_v63 }
 0x218   : > { %v10839_v45 = vpop.f32.mrf.mxu0 }
 0x219   : > { %12668 = vst [vmem:[#allocation138_spill] sm:$0xff] %v10839_v45  ;;  %v10861_v45 = vpop.f32.mrf.mxu1 }
 0x21a   : > { %v10841_v1 = vpop.f32.mrf.mxu0  ;;  %12678 = vst [vmem:[#allocation148_spill] sm:$0xff] %v10861_v45 }
 0x21b   : > { %12669 = vst [vmem:[#allocation139_spill] sm:$0xff] %v10841_v1 }
 0x21c   : > { %v10845_v15 = vpop.f32.mrf.mxu0 }
 0x21d   : > { %12671 = vst [vmem:[#allocation141_spill] sm:$0xff] %v10845_v15  ;;  %v10867_v15 = vpop.f32.mrf.mxu1 }
 0x21e   : > { %v10847_v2 = vpop.f32.mrf.mxu0  ;;  %12681 = vst [vmem:[#allocation151_spill] sm:$0xff] %v10867_v15 }
 0x21f   : > { %12672 = vst [vmem:[#allocation142_spill] sm:$0xff] %v10847_v2 }
 0x220   : > { %v10851_v37 = vpop.f32.mrf.mxu0 }
 0x221   : > { %12674 = vst [vmem:[#allocation144_spill] sm:$0xff] %v10851_v37  ;;  %v10873_v37 = vpop.f32.mrf.mxu1 }
 0x222   : > { %v10853_v50 = vpop.f32.mrf.mxu0  ;;  %12684 = vst [vmem:[#allocation154_spill] sm:$0xff] %v10873_v37 }
 0x223   : > { %12675 = vst [vmem:[#allocation145_spill] sm:$0xff] %v10853_v50  ;;  %v10883_v45 = vpop.f32.mrf.mxu1 }
 0x224   : > { %v10857_v63 = vpop.f32.mrf.mxu0 }
 0x225   : > { %12676 = vst [vmem:[#allocation146_spill] sm:$0xff] %v10857_v63  ;;  %v2178_v63 = vadd.f32 %v10519_v17, %v10515_v26  ;;  %v2824_v17 = vadd.f32 %v10655_v4, %v10653_v9  ;;  %v2827_v9 = vadd.f32 %v10664_v30, %v10662_v10 }
 0x226   : > { %v10859_v18 = vpop.f32.mrf.mxu0 }
 0x227   : > { %12677 = vst [vmem:[#allocation147_spill] sm:$0xff] %v10859_v18  ;;  %v3165_v10 = vadd.f32 %v10805_v27, %v2827_v9  ;;  %v2186_v9 = vadd.f32 %v10555_v0, %v10551_v55  ;;  %v2831_v55 = vadd.f32 %v10684_v41, %v10682_v28 }
 0x228   : > { %v10863_v1 = vpop.f32.mrf.mxu0 }
 0x229   : > { %12679 = vst [vmem:[#allocation149_spill] sm:$0xff] %v10863_v1  ;;  %v2823_v1 = vadd.f32 %v10645_v52, %v10643_v46  ;;  %v3169_v41 = vadd.f32 %v10817_v22, %v2831_v55 }
 0x22a   : > { %v10865_v56 = vpop.f32.mrf.mxu0 }
 0x22b   : > { %12680 = vst [vmem:[#allocation150_spill] sm:$0xff] %v10865_v56  ;;  %v2484_v56 = vadd.f32 %v10657_v3, %v2178_v63  ;;  %v3162_v3 = vadd.f32 %v8541_v48, %v2824_v17  ;;  %v2182_v63 = vadd.f32 %v10537_v33, %v10533_v38  ;;  %v12689_v48 = vld [vmem:[#allocation79_spill] sm:$0xff]  ;;  %v2825_v38 = vadd.f32 %v10669_v47, %v10667_v13 }
 0x22c   : > { %v10869_v2 = vpop.f32.mrf.mxu0  ;;  %v2828_v47 = vadd.f32 %v10674_v58, %v10672_v35 }
 0x22d   : > { %12682 = vst [vmem:[#allocation152_spill] sm:$0xff] %v10869_v2  ;;  %v3161_v2 = vadd.f32 %v8540_v21, %v2823_v1  ;;  %v2822_v46 = vadd.f32 %v10659_v34, %v2484_v56 }
 0x22e   : > { %v10871_v14 = vpop.f32.mrf.mxu0  ;;  %v3166_v58 = vadd.f32 %v10811_v53, %v2828_v47  ;;  %v12699_v47 = vld [vmem:[#allocation137_spill] sm:$0xff] }
 0x22f   : > { %12683 = vst [vmem:[#allocation153_spill] sm:$0xff] %v10871_v14  ;;  %v2821_v14 = vadd.f32 %v10650_v5, %v10648_v12  ;;  %v10904_v5 = vld [vmem:[%s12222_s2] ss:$0 sm:$0xff] }
 0x230   : > { %v10875_v50 = vpop.f32.mrf.mxu0 }
 0x231   : > { %12685 = vst [vmem:[#allocation155_spill] sm:$0xff] %v10875_v50  ;;  %v3159_v26 = vadd.f32 %v3032_v59, %v2821_v14  ;;  %v3467_v50 = vadd.f32 %v8588_v60, %v3161_v2  ;;  %v12688_v2 = vld [vmem:[#allocation78_spill] sm:$0xff]  ;;  %v12690_v14 = vld [vmem:[#allocation80_spill] sm:$0xff]  ;;  %v2488_v59 = vadd.f32 %v10676_v25, %v2182_v63  ;;  %v3468_v60 = vadd.f32 %v10803_v7, %v3162_v3 }
 0x232   : > { %v10879_v18 = vpop.f32.mrf.mxu0  ;;  %v1410_v56 = vadd.f32 %v12688_v2, %v10452_v54  ;;  %v1426_v33 = vadd.f32 %v12690_v14, %v12689_v48  ;;  %v12693_v54 = vld [vmem:[#allocation82_spill] sm:$0xff]  ;;  %v3163_v7 = vadd.f32 %v10809_v24, %v2825_v38 }
 0x233   : > { %12686 = vst [vmem:[#allocation156_spill] sm:$0xff] %v10879_v18  ;;  %v10894_v18 = vpop.f32.mrf.mxu1  ;;  %v3465_v4 = vadd.f32 %v3338_v44, %v3159_v26  ;;  %v12694_v26 = vld [vmem:[#allocation83_spill] sm:$0xff]  ;;  %v2826_v35 = vadd.f32 %v10678_v49, %v2488_v59 }
 0x234   : > { %v10886_v15 = vpop.f32.mrf.mxu0  ;;  %v1856_v48 = vadd.f32 %v10586_v40, %v1410_v56  ;;  %v1860_v0 = vadd.f32 %v10603_v19, %v1426_v33  ;;  %v3469_v49 = vadd.f32 %v10819_v16, %v3163_v7  ;;  %v2829_v40 = vadd.f32 %v10689_v42, %v10687_v6 }
 0x235   : > { %12687 = vst [vmem:[#allocation157_spill] sm:$0xff] %v10886_v15  ;;  %v3160_v15 = vadd.f32 %v3035_v8, %v2822_v46  ;;  %v10908_v1 = vpop.f32.mrf.mxu1  ;;  %v12692_v8 = vld [vmem:[#allocation81_spill] sm:$0xff]  ;;  %v10924_v46 = vadd.f32 %v12694_v26, %v12693_v54  ;;  %v2492_v19 = vadd.f32 %v10696_v51, %v2186_v9  ;;  %v3472_v56 = vadd.f32 %v10825_v32, %v3166_v58  ;;  %v12701_v9 = vld [vmem:[#allocation90_spill] sm:$0xff] }
 0x236   : > { %v10890_v37 = vpop.f32.mrf.mxu0  ;;  %v3167_v42 = vadd.f32 %v10821_v62, %v2829_v40  ;;  %v12708_v40 = vld [vmem:[#allocation97_spill] sm:$0xff] }
 0x237   : > { %v3466_v13 = vadd.f32 %v10807_v36, %v3160_v15  ;;  %v10930_v3 = vpop.f32.mrf.mxu1  ;;  %v3471_v36 = vadd.f32 %v10813_v29, %v3165_v10 }
 0x238   : > { %v10897_v52 = vpop.f32.mrf.mxu0 }
 0x239   : > { %v10949_v53 = vpop.f32.mrf.mxu1 }
 0x23a   : > { %v8636_v12 = vpop.f32.mrf.mxu0 }
 0x23b   : > { %v3805_v34 = vadd.f32 %v8636_v12, %v3467_v50  ;;  %v12691_v50 = vld [vmem:[#allocation77_spill] sm:$0xff]  ;;  %v10963_v32 = vpop.f32.mrf.mxu1 }
 0x23c   : > { %v3676_v21 = vpop.f32.mrf.mxu0  ;;  %v1442_v17 = vadd.f32 %v12692_v8, %v12691_v50  ;;  %v9262_v50 = vld [vmem:[#allocation8 + $0xb0] sm:$0xff]   ;;  %v12695_v8 = vld [vmem:[#allocation84_spill] sm:$0xff] }
 0x23d   : > { %v3844_v30 = vadd.f32 %v10904_v5, %v3805_v34  ;;  %v3803_v44 = vadd.f32 %v3676_v21, %v3465_v4  ;;  %v10937_v4 = vadd.f32 %v10573_v57, %v10569_v61  ;;  %v3164_v61 = vadd.f32 %v10815_v31, %v2826_v35  ;;  %v12702_v35 = vld [vmem:[#allocation91_spill] sm:$0xff] }
 0x23e   : > { %v8637_v25 = vpop.f32.mrf.mxu0  ;;  %v1864_v21 = vadd.f32 %v10621_v43, %v1442_v17  ;;  %v10967_v54 = vadd.f32 %v12695_v8, %v1856_v48  ;;  %v12696_v43 = vld [vmem:[#allocation85_spill] sm:$0xff]  ;;  %v2835_v58 = vadd.f32 %v12702_v35, %v12701_v9 }
 0x23f   : > { %v3876_v27 = vmax.f32 %v3844_v30, 0.0  ;;  %v3842_v63 = vadd.f32 %v10904_v5, %v3803_v44  ;;  %v3806_v12 = vadd.f32 %v8637_v25, %v3468_v60  ;;  %v2832_v60 = vadd.f32 %v10694_v11, %v10692_v20  ;;  %v12697_v11 = vld [vmem:[#allocation89_spill] sm:$0xff] }
 0x240   : > { %v3679_v15 = vpop.f32.mrf.mxu0  ;;  %v3470_v6 = vadd.f32 %v10831_v39, %v3164_v61  ;;  %v10970_v17 = vadd.f32 %v12696_v43, %v1860_v0  ;;  %v2830_v20 = vadd.f32 %v12697_v11, %v2492_v19  ;;  %v12698_v39 = vld [vmem:[#allocation132_spill] sm:$0xff]  ;;  %v10984_v0 = vpop.f32.mrf.mxu1  ;;  %v2496_v19 = vadd.f32 %v12708_v40, %v10937_v4 }
 0x241   : > { %3908 = vst [vmem:[#allocation2 + $0x28] sm:$0xff] %v3876_v27  ;;  %v3874_v24 = vmax.f32 %v3842_v63, 0.0  ;;  %v3845_v34 = vadd.f32 %v10904_v5, %v3806_v12  ;;  %v3804_v2 = vadd.f32 %v3679_v15, %v3466_v13  ;;  %v3170_v62 = vadd.f32 %v12698_v39, %v2832_v60  ;;  %v12700_v63 = vld [vmem:[#allocation86_spill] sm:$0xff]  ;;  %v12703_v15 = vld [vmem:[#allocation133_spill] sm:$0xff] }
 0x242   : > { %v8640_v57 = vpop.f32.mrf.mxu0  ;;  %v3475_v13 = vadd.f32 %v12699_v47, %v3169_v41  ;;  %v10977_v12 = vadd.f32 %v12700_v63, %v1864_v21 }
 0x243   : > { %3906 = vst [vmem:[#allocation2 + $0x18] sm:$0xff] %v3874_v24  ;;  %v3877_v29 = vmax.f32 %v3845_v34, 0.0  ;;  %v3843_v14 = vadd.f32 %v10904_v5, %v3804_v2  ;;  %v3809_v38 = vadd.f32 %v8640_v57, %v3471_v36  ;;  %v3168_v36 = vadd.f32 %v12703_v15, %v2830_v20  ;;  %v12704_v34 = vld [vmem:[#allocation96_spill] sm:$0xff] }
 0x244   : > { %v3692_v28 = vpop.f32.mrf.mxu0  ;;  %v12705_v2 = vld [vmem:[#allocation140_spill] sm:$0xff] }
 0x245   : > { %3909 = vst [vmem:[#allocation2 + $0x30] sm:$0xff] %v3877_v29  ;;  %v3875_v31 = vmax.f32 %v3843_v14, 0.0  ;;  %v3848_v16 = vadd.f32 %v10904_v5, %v3809_v38  ;;  %v3807_v33 = vadd.f32 %v3692_v28, %v3469_v49  ;;  %v4068_v59 = vpack.c.bf16 %v3877_v29, %v3876_v27  ;;  %v9263_v49 = vld [vmem:[#allocation8 + $0xa8] sm:$0xff]   ;;  %v12706_v29 = vld [vmem:[#allocation92_spill] sm:$0xff]  ;;  %v12707_v14 = vld [vmem:[#allocation93_spill] sm:$0xff] }
 0x246   : > { %v8641_v51 = vpop.f32.mrf.mxu0  ;;  %v3473_v48 = vadd.f32 %v12705_v2, %v3167_v42  ;;  %v2833_v38 = vadd.f32 %v12707_v14, %v12706_v29  ;;  %v12710_v28 = vld [vmem:[#allocation134_spill] sm:$0xff]  ;;  %v3474_v4 = vadd.f32 %v10855_v23, %v3168_v36  ;;  %v12717_v15 = vld [vmem:[#allocation148_spill] sm:$0xff]  ;;  %v12722_v14 = vld [vmem:[#allocation105_spill] sm:$0xff] }
 0x247   : > { %3907 = vst [vmem:[#allocation2 + $0x20] sm:$0xff] %v3875_v31  ;;  %v3880_v22 = vmax.f32 %v3848_v16, 0.0  ;;  %v3846_v10 = vadd.f32 %v10904_v5, %v3807_v33  ;;  %v3810_v30 = vadd.f32 %v8641_v51, %v3472_v56  ;;  %v4067_v44 = vpack.c.bf16 %v3875_v31, %v3874_v24  ;;  %v12709_v56 = vld [vmem:[#allocation143_spill] sm:$0xff]  ;;  %v12712_v51 = vld [vmem:[#allocation94_spill] sm:$0xff] }
 0x248   : > { %v3695_v26 = vpop.f32.mrf.mxu0  ;;  %v3476_v41 = vadd.f32 %v12709_v56, %v3170_v62  ;;  %v3173_v31 = vadd.f32 %v12710_v28, %v2835_v58  ;;  %v11002_v62 = vpop.f32.mrf.mxu1  ;;  %v12715_v23 = vld [vmem:[#allocation98_spill] sm:$0xff]  ;;  %v9264_v58 = vld [vmem:[#allocation8 + $0xa0] sm:$0xff]  }
 0x249   : > { %3912 = vst [vmem:[#allocation2 + $0x48] sm:$0xff] %v3880_v22  ;;  %v3878_v25 = vmax.f32 %v3846_v10, 0.0  ;;  %v3849_v7 = vadd.f32 %v10904_v5, %v3810_v30  ;;  %v3808_v27 = vadd.f32 %v3695_v26, %v3470_v6  ;;  %8683 = vmatmul.mubr.bf16.vlgmr.msra.gmra.mxu1 %v4067_v44  ;;  %v12711_v6 = vld [vmem:[#allocation87_spill] sm:$0xff]  ;;  %v12724_v56 = vld [vmem:[#allocation33_spill] sm:$0xff] }
 0x24a   : > { %v8644_v24 = vpop.f32.mrf.mxu0  ;;  %8686 = vmatprep.mubr.bf16.mxu1 %v4068_v59  ;;  %8763 = vmatpush3.bf16.msra.mxu1 %v12704_v34  ;;  %v10996_v42 = vadd.f32 %v12711_v6, %v10924_v46  ;;  %v12713_v10 = vld [vmem:[#allocation95_spill] sm:$0xff]  ;;  %v3940_v11 = vld [vmem:[#allocation2 + $0x17] sm:$0xff]  ;;  %v3479_v36 = vadd.f32 %v12717_v15, %v3173_v31  ;;  %vm12725_vm9 = vnez %v12724_v56  ;;  %v11028_v31 = vpop.f32.mrf.mxu1 }
 0x24b   : > { %3910 = vst [vmem:[#allocation2 + $0x38] sm:$0xff] %v3878_v25  ;;  %v3881_v55 = vmax.f32 %v3849_v7, 0.0  ;;  %v3847_v61 = vadd.f32 %v10904_v5, %v3808_v27  ;;  %v3813_v57 = vadd.f32 %v8644_v24, %v3475_v13  ;;  %8764 = vmatprep.subr.bf16.mxu1 %v9262_v50  ;;  %v2836_v30 = vadd.f32 %v12713_v10, %v12712_v51  ;;  %v12714_v44 = vld [vmem:[#allocation135_spill] sm:$0xff]  ;;  %v12716_v27 = vld [vmem:[#allocation136_spill] sm:$0xff]  ;;  %v12729_v51 = vld [vmem:[#allocation154_spill] sm:$0xff] }
 0x24c   : > { %v3708_v16 = vpop.f32.mrf.mxu0  ;;  %v3171_v8 = vadd.f32 %v12714_v44, %v2833_v38  ;;  %v3943_v13 = vld [vmem:[#allocation2 + $0x2f] sm:$0xff]  ;;  %v2834_v7 = vadd.f32 %v12715_v23, %v2496_v19  ;;  %v12723_v38 = vld [vmem:[#allocation138_spill] sm:$0xff] }
 0x24d   : > { %3913 = vst [vmem:[#allocation2 + $0x50] sm:$0xff] %v3881_v55  ;;  %v3879_v33 = vmax.f32 %v3847_v61, 0.0  ;;  %v3852_v59 = vadd.f32 %v10904_v5, %v3813_v57  ;;  %v3811_v21 = vadd.f32 %v3708_v16, %v3473_v48  ;;  %v4070_v60 = vpack.c.bf16 %v3881_v55, %v3880_v22  ;;  %v12718_v48 = vld [vmem:[#allocation30_spill] sm:$0xff]  ;;  %v9267_v55 = vld [vmem:[#allocation8 + $0xf0] sm:$0xff]   ;;  %v12721_v57 = vld [vmem:[#allocation100_spill] sm:$0xff] }
 0x24e   : > { %v8645_v43 = vpop.f32.mrf.mxu0  ;;  %v3941_v20 = vld [vmem:[#allocation2 + $0x1f] sm:$0xff]  ;;  %v3942_v39 = vld [vmem:[#allocation2 + $0x27] sm:$0xff]  ;;  %8765 = vmatpush3.bf16.msra.mxu1 %v9262_v50  ;;  %v3174_v63 = vadd.f32 %v12716_v27, %v2836_v30  ;;  %vm12719_vm15 = vnez %v12718_v48  ;;  %v3172_v40 = vadd.f32 %v12723_v38, %v2834_v7 }
 0x24f   : > { %3911 = vst [vmem:[#allocation2 + $0x40] sm:$0xff] %v3879_v33  ;;  %v3884_v22 = vmax.f32 %v3852_v59, 0.0  ;;  %v11005_v26 = vadd.f32 %v10904_v5, %v3811_v21  ;;  %v3814_v46 = vadd.f32 %v8645_v43, %v3476_v41  ;;  %v11007_v47 = vpack.c.bf16 %v3941_v20, %v3940_v11  ;;  %8766 = vmatprep.subr.bf16.mxu1 %v9263_v49  ;;  %v12720_v61 = vld [vmem:[#allocation99_spill] sm:$0xff]  ;;  %v12728_v21 = vld [vmem:[#allocation102_spill] sm:$0xff]  ;;  %v9265_v43 = vld [vmem:[#allocation8 + $0x98] sm:$0xff]  }
 0x250   : > { %v3711_v9 = vpop.f32.mrf.mxu0  ;;  %v11011_v35 = vpack.c.bf16 %v3943_v13, %v3942_v39  ;;  %v4069_v50 = vpack.c.bf16 %v3879_v33, %v3878_v25  ;;  %v2839_v29 = vadd.f32 %v12721_v57, %v12720_v61  ;;  %v2500_v25 = vadd.f32 %v12722_v14, %v10967_v54  ;;  %v12726_v41 = vld [vmem:[#allocation151_spill] sm:$0xff]  ;;  %v12727_v54 = vld [vmem:[#allocation101_spill] sm:$0xff]  ;;  %v12734_v23 = vld [vmem:[#allocation106_spill] sm:$0xff] }
 0x251   : > { %3916 = vst [vmem:[#allocation2 + $0x68] sm:$0xff] %v3884_v22  ;;  %v3882_v24 = vmax.f32 %v11005_v26, 0.0  ;;  %v3853_v34 = vadd.f32 %v10904_v5, %v3814_v46  ;;  %v3812_v2 = vadd.f32 %v3711_v9, %v3474_v4  ;;  %8731 = vmatmul.mubr.msk.bf16.vlgmr.msra.gmra.mxu0 %vm12719_vm15, %v11007_v47  ;;  %v3477_v28 = vadd.f32 %v12726_v41, %v3171_v8  ;;  %v12730_v30 = vld [vmem:[#allocation139_spill] sm:$0xff]  ;;  %v12731_v8 = vld [vmem:[#allocation122_spill] sm:$0xff]  ;;  %v12733_v46 = vld [vmem:[#allocation104_spill] sm:$0xff] }
 0x252   : > { %v8648_v19 = vpop.f32.mrf.mxu0  ;;  %8734 = vmatprep.mubr.msk.bf16.mxu0 %vm12725_vm9, %v11011_v35  ;;  %8687 = vmatmul.mubr.bf16.gmra.mxu1 %v4069_v50  ;;  %v2837_v6 = vadd.f32 %v12728_v21, %v12727_v54  ;;  %v3480_v10 = vadd.f32 %v12729_v51, %v3174_v63  ;;  %v3177_v4 = vadd.f32 %v12730_v30, %v2839_v29  ;;  %v12735_v63 = vld [vmem:[#allocation141_spill] sm:$0xff]  ;;  %v9268_v41 = vld [vmem:[#allocation8 + $0x90] sm:$0xff]   ;;  %v12737_v54 = vld [vmem:[#allocation36_spill] sm:$0xff] }
 0x253   : > { %3914 = vst [vmem:[#allocation2 + $0x58] sm:$0xff] %v3882_v24  ;;  %v3885_v16 = vmax.f32 %v3853_v34, 0.0  ;;  %v3851_v33 = vadd.f32 %v10904_v5, %v3812_v2  ;;  %v3817_v59 = vadd.f32 %v8648_v19, %v3479_v36  ;;  %8690 = vmatprep.mubr.bf16.mxu1 %v4070_v60  ;;  %8767 = vmatpush3.bf16.msra.mxu1 %v9263_v49  ;;  %v9269_v49 = vld [vmem:[#allocation8 + $0xe8] sm:$0xff]   ;;  %v12732_v60 = vld [vmem:[#allocation103_spill] sm:$0xff]  ;;  %v11042_v2 = vpop.f32.mrf.mxu1  ;;  %vm12738_vm10 = vnez %v12737_v54 }
 0x254   : > { %v3724_v44 = vpop.f32.mrf.mxu0  ;;  %8768 = vmatprep.subr.bf16.mxu1 %v9264_v58  ;;  %8811 = vmatpush3.bf16.msra.mxu0 %v12731_v8  ;;  %v2840_v13 = vadd.f32 %v12733_v46, %v12732_v60  ;;  %v2838_v7 = vadd.f32 %v12734_v23, %v2500_v25  ;;  %v3478_v27 = vadd.f32 %v10883_v45, %v3172_v40  ;;  %v3944_v15 = vld [vmem:[#allocation2 + $0x37] sm:$0xff]  ;;  %v3947_v14 = vld [vmem:[#allocation2 + $0x4f] sm:$0xff]  ;;  %v12739_v21 = vld [vmem:[#allocation107_spill] sm:$0xff] }
 0x255   : > { %3917 = vst [vmem:[#allocation2 + $0x70] sm:$0xff] %v3885_v16  ;;  %v3883_v11 = vmax.f32 %v3851_v33, 0.0  ;;  %v3856_v20 = vadd.f32 %v10904_v5, %v3817_v59  ;;  %v3815_v39 = vadd.f32 %v3724_v44, %v3477_v28  ;;  %v4072_v26 = vpack.c.bf16 %v3885_v16, %v3884_v22  ;;  %8812 = vmatprep.subr.bf16.mxu0 %v9267_v55  ;;  %v12736_v25 = vld [vmem:[#allocation142_spill] sm:$0xff]  ;;  %v11067_v8 = vpop.f32.mrf.mxu1  ;;  %v12747_v23 = vld [vmem:[#allocation145_spill] sm:$0xff] }
 0x256   : > { %v3175_v9 = vadd.f32 %v12735_v63, %v2837_v6  ;;  %v8649_v50 = vpop.f32.mrf.mxu0  ;;  %v3945_v36 = vld [vmem:[#allocation2 + $0x3f] sm:$0xff]  ;;  %v3946_v34 = vld [vmem:[#allocation2 + $0x47] sm:$0xff]  ;;  %v3178_v45 = vadd.f32 %v12736_v25, %v2840_v13  ;;  %v3483_v28 = vadd.f32 %v10894_v18, %v3177_v4 }
 0x257   : > { %3915 = vst [vmem:[#allocation2 + $0x60] sm:$0xff] %v3883_v11  ;;  %v3888_v61 = vmax.f32 %v3856_v20, 0.0  ;;  %v11045_v22 = vadd.f32 %v10904_v5, %v3815_v39  ;;  %v3818_v57 = vadd.f32 %v8649_v50, %v3480_v10  ;;  %v11047_v29 = vpack.c.bf16 %v3945_v36, %v3944_v15  ;;  %8769 = vmatpush3.bf16.msra.mxu1 %v9264_v58  ;;  %v9270_v58 = vld [vmem:[#allocation8 + $0xe0] sm:$0xff]   ;;  %v12740_v6 = vld [vmem:[#allocation108_spill] sm:$0xff]  ;;  %v12743_v4 = vld [vmem:[#allocation39_spill] sm:$0xff] }
 0x258   : > { %v3727_v38 = vpop.f32.mrf.mxu0  ;;  %v11050_v40 = vpack.c.bf16 %v3947_v14, %v3946_v34  ;;  %v4071_v19 = vpack.c.bf16 %v3883_v11, %v3882_v24  ;;  %8770 = vmatprep.subr.bf16.mxu1 %v9265_v43  ;;  %8813 = vmatpush3.bf16.msra.mxu0 %v9267_v55  ;;  %v2843_v24 = vadd.f32 %v12740_v6, %v12739_v21  ;;  %v12741_v55 = vld [vmem:[#allocation113_spill] sm:$0xff]  ;;  %v12742_v10 = vld [vmem:[#allocation144_spill] sm:$0xff]  ;;  %v12746_v60 = vld [vmem:[#allocation110_spill] sm:$0xff] }
 0x259   : > { %3920 = vst [vmem:[#allocation2 + $0x88] sm:$0xff] %v3888_v61  ;;  %v3886_v16 = vmax.f32 %v11045_v22, 0.0  ;;  %v3857_v33 = vadd.f32 %v10904_v5, %v3818_v57  ;;  %v3816_v59 = vadd.f32 %v3727_v38, %v3478_v27  ;;  %8735 = vmatmul.mubr.msk.bf16.gmra.mxu0 %vm12738_vm10, %v11047_v29  ;;  %8814 = vmatprep.subr.bf16.mxu0 %v9269_v49  ;;  %vm12744_vm13 = vnez %v12743_v4  ;;  %v12749_v36 = vld [vmem:[#allocation112_spill] sm:$0xff]  ;;  %v12750_v22 = vld [vmem:[#allocation114_spill] sm:$0xff] }
 0x25a   : > { %v2504_v51 = vadd.f32 %v12741_v55, %v10970_v17  ;;  %v3176_v18 = vadd.f32 %v12742_v10, %v2838_v7  ;;  %v8652_v30 = vpop.f32.mrf.mxu0  ;;  %8738 = vmatprep.mubr.msk.bf16.mxu0 %vm12744_vm13, %v11050_v40  ;;  %8691 = vmatmul.mubr.bf16.gmra.mxu1 %v4071_v19  ;;  %v3481_v44 = vadd.f32 %v10908_v1, %v3175_v9  ;;  %v12745_v17 = vld [vmem:[#allocation109_spill] sm:$0xff]  ;;  %v9271_v1 = vld [vmem:[#allocation8 + $0x88] sm:$0xff]  }
 0x25b   : > { %3918 = vst [vmem:[#allocation2 + $0x78] sm:$0xff] %v3886_v16  ;;  %v3889_v11 = vmax.f32 %v3857_v33, 0.0  ;;  %v3855_v20 = vadd.f32 %v10904_v5, %v3816_v59  ;;  %v3821_v39 = vadd.f32 %v8652_v30, %v3483_v28  ;;  %8694 = vmatprep.mubr.bf16.mxu1 %v4072_v26  ;;  %8771 = vmatpush3.bf16.msra.mxu1 %v9265_v43  ;;  %v9272_v26 = vld [vmem:[#allocation8 + $0xd8] sm:$0xff]   ;;  %v12748_v43 = vld [vmem:[#allocation111_spill] sm:$0xff]  ;;  %v12751_v14 = vld [vmem:[#allocation146_spill] sm:$0xff]  ;;  %v11080_v28 = vpop.f32.mrf.mxu1 }
 0x25c   : > { %v2841_v46 = vadd.f32 %v12746_v60, %v12745_v17  ;;  %v3484_v13 = vadd.f32 %v10930_v3, %v3178_v45  ;;  %v3181_v7 = vadd.f32 %v12747_v23, %v2843_v24  ;;  %v3740_v27 = vpop.f32.mrf.mxu0  ;;  %8772 = vmatprep.subr.bf16.mxu1 %v9268_v41  ;;  %8815 = vmatpush3.bf16.msra.mxu0 %v9269_v49  ;;  %v3948_v49 = vld [vmem:[#allocation2 + $0x57] sm:$0xff]  ;;  %v3951_v6 = vld [vmem:[#allocation2 + $0x6f] sm:$0xff]  ;;  %v12752_v24 = vld [vmem:[#allocation147_spill] sm:$0xff] }
 0x25d   : > { %3921 = vst [vmem:[#allocation2 + $0x90] sm:$0xff] %v3889_v11  ;;  %v3887_v63 = vmax.f32 %v3855_v20, 0.0  ;;  %v3860_v9 = vadd.f32 %v10904_v5, %v3821_v39  ;;  %v3819_v50 = vadd.f32 %v3740_v27, %v3481_v44  ;;  %v4074_v15 = vpack.c.bf16 %v3889_v11, %v3888_v61  ;;  %8816 = vmatprep.subr.bf16.mxu0 %v9270_v58  ;;  %v12753_v39 = vld [vmem:[#allocation44_spill] sm:$0xff]  ;;  %v12755_v17 = vld [vmem:[#allocation115_spill] sm:$0xff] }
 0x25e   : > { %v2844_v34 = vadd.f32 %v12749_v36, %v12748_v43  ;;  %v2842_v57 = vadd.f32 %v12750_v22, %v2504_v51  ;;  %v3482_v3 = vadd.f32 %v10949_v53, %v3176_v18  ;;  %v3179_v25 = vadd.f32 %v12751_v14, %v2841_v46  ;;  %v8653_v45 = vpop.f32.mrf.mxu0  ;;  %v3949_v38 = vld [vmem:[#allocation2 + $0x5f] sm:$0xff]  ;;  %v3950_v19 = vld [vmem:[#allocation2 + $0x67] sm:$0xff]  ;;  %v9274_v18 = vld [vmem:[#allocation8 + $0x80] sm:$0xff]  }
 0x25f   : > { %3919 = vst [vmem:[#allocation2 + $0x80] sm:$0xff] %v3887_v63  ;;  %v3892_v33 = vmax.f32 %v3860_v9, 0.0  ;;  %v11083_v61 = vadd.f32 %v10904_v5, %v3819_v50  ;;  %v3822_v59 = vadd.f32 %v8653_v45, %v3484_v13  ;;  %v11085_v21 = vpack.c.bf16 %v3949_v38, %v3948_v49  ;;  %8773 = vmatpush3.bf16.msra.mxu1 %v9268_v41  ;;  %v9273_v41 = vld [vmem:[#allocation8 + $0xd0] sm:$0xff]   ;;  %v12756_v60 = vld [vmem:[#allocation116_spill] sm:$0xff]  ;;  %v12758_v13 = vld [vmem:[#allocation149_spill] sm:$0xff] }
 0x260   : > { %v3182_v53 = vadd.f32 %v12752_v24, %v2844_v34  ;;  %v3743_v55 = vpop.f32.mrf.mxu0  ;;  %v11088_v51 = vpack.c.bf16 %v3951_v6, %v3950_v19  ;;  %v4073_v10 = vpack.c.bf16 %v3887_v63, %v3886_v16  ;;  %8817 = vmatpush3.bf16.msra.mxu0 %v9270_v58  ;;  %8774 = vmatprep.subr.bf16.mxu1 %v9271_v1  ;;  %v12757_v58 = vld [vmem:[#allocation121_spill] sm:$0xff]  ;;  %v11105_v63 = vpop.f32.mrf.mxu1  ;;  %v12762_v36 = vld [vmem:[#allocation118_spill] sm:$0xff]  ;;  %v12764_v38 = vld [vmem:[#allocation119_spill] sm:$0xff] }
 0x261   : > { %v3487_v30 = vadd.f32 %v10963_v32, %v3181_v7  ;;  %3924 = vst [vmem:[#allocation2 + $0xa8] sm:$0xff] %v3892_v33  ;;  %v3890_v44 = vmax.f32 %v11083_v61, 0.0  ;;  %v3861_v11 = vadd.f32 %v10904_v5, %v3822_v59  ;;  %v3820_v20 = vadd.f32 %v3743_v55, %v3482_v3  ;;  %8818 = vmatprep.subr.bf16.mxu0 %v9272_v26  ;;  %v12759_v7 = vld [vmem:[#allocation45_spill] sm:$0xff]  ;;  %v12765_v19 = vld [vmem:[#allocation120_spill] sm:$0xff] }
 0x262   : > { %vm12754_vm6 = vnez %v12753_v39  ;;  %v2847_v16 = vadd.f32 %v12756_v60, %v12755_v17  ;;  %v2508_v46 = vadd.f32 %v12757_v58, %v10977_v12  ;;  %v3180_v32 = vadd.f32 %v12758_v13, %v2842_v57  ;;  %v8656_v23 = vpop.f32.mrf.mxu0  ;;  %8695 = vmatmul.mubr.bf16.gmra.mxu1 %v4073_v10  ;;  %v12761_v12 = vld [vmem:[#allocation117_spill] sm:$0xff]  ;;  %v12763_v57 = vld [vmem:[#allocation150_spill] sm:$0xff] }
 0x263   : > { %8739 = vmatmul.mubr.msk.bf16.gmra.mxu0 %vm12754_vm6, %v11085_v21  ;;  %vm12760_vm5 = vnez %v12759_v7  ;;  %v3485_v27 = vadd.f32 %v10984_v0, %v3179_v25  ;;  %3922 = vst [vmem:[#allocation2 + $0x98] sm:$0xff] %v3890_v44  ;;  %v3893_v9 = vmax.f32 %v3861_v11, 0.0  ;;  %v3859_v50 = vadd.f32 %v10904_v5, %v3820_v20  ;;  %8698 = vmatprep.mubr.bf16.mxu1 %v4074_v15  ;;  %v11112_v0 = vld [vmem:[#allocation8 + $0x138] sm:$0xff]   ;;  %v3952_v55 = vld [vmem:[#allocation2 + $0x77] sm:$0xff]  ;;  %v11122_v11 = vpop.f32.mrf.mxu1 }
 0x264   : > { %8742 = vmatprep.mubr.msk.bf16.mxu0 %vm12760_vm5, %v11088_v51  ;;  %v3825_v43 = vadd.f32 %v8656_v23, %v3487_v30  ;;  %8775 = vmatpush3.bf16.msra.mxu1 %v9271_v1  ;;  %v2845_v34 = vadd.f32 %v12762_v36, %v12761_v12  ;;  %v3488_v22 = vadd.f32 %v11002_v62, %v3182_v53  ;;  %v3756_v14 = vpop.f32.mrf.mxu0  ;;  %v9275_v1 = vld [vmem:[#allocation8 + $0xc8] sm:$0xff]   ;;  %v12766_v62 = vld [vmem:[#allocation123_spill] sm:$0xff]  ;;  %v12771_v12 = vld [vmem:[#allocation88_spill] sm:$0xff] }
 0x265   : > { %v3185_v3 = vadd.f32 %v12763_v57, %v2847_v16  ;;  %8819 = vmatpush3.bf16.msra.mxu0 %v9272_v26  ;;  %8776 = vmatprep.subr.bf16.mxu1 %v9274_v18  ;;  %3925 = vst [vmem:[#allocation2 + $0xb0] sm:$0xff] %v3893_v9  ;;  %v11114_v25 = vmax.f32 %v3859_v50, 0.0  ;;  %v3823_v49 = vadd.f32 %v3756_v14, %v3485_v27  ;;  %v12767_v26 = vld [vmem:[#allocation152_spill] sm:$0xff]  ;;  %v12773_v36 = vld [vmem:[#allocation125_spill] sm:$0xff] }
 0x266   : > { %v3864_v45 = vadd.f32 %v10904_v5, %v3825_v43  ;;  %v4076_v15 = vpack.c.bf16 %v3893_v9, %v3892_v33  ;;  %8820 = vmatprep.subr.bf16.mxu0 %v9273_v41  ;;  %v2848_v61 = vadd.f32 %v12765_v19, %v12764_v38  ;;  %v2846_v59 = vadd.f32 %v12766_v62, %v2508_v46  ;;  %v8657_v53 = vpop.f32.mrf.mxu0  ;;  %v3953_v10 = vld [vmem:[#allocation2 + $0x7f] sm:$0xff]  ;;  %v3954_v30 = vld [vmem:[#allocation2 + $0x87] sm:$0xff]  ;;  %v3955_v16 = vld [vmem:[#allocation2 + $0x8f] sm:$0xff] }
 0x267   : > { %v3486_v6 = vadd.f32 %v11028_v31, %v3180_v32  ;;  %v3183_v24 = vadd.f32 %v12767_v26, %v2845_v34  ;;  %3923 = vst [vmem:[#allocation2 + $0xa0] sm:$0xff] %v11114_v25  ;;  %v11126_v20 = vadd.f32 %v10904_v5, %v3823_v49  ;;  %v3826_v17 = vadd.f32 %v8657_v53, %v3488_v22  ;;  %v12768_v31 = vld [vmem:[#allocation153_spill] sm:$0xff]  ;;  %v12774_v22 = vld [vmem:[#allocation155_spill] sm:$0xff]  ;;  %v12780_v53 = vld [vmem:[#allocation156_spill] sm:$0xff] }
 0x268   : > { %v3896_v33 = vmax.f32 %v3864_v45, 0.0  ;;  %v11128_v60 = vpack.c.bf16 %v3953_v10, %v3952_v55  ;;  %8777 = vmatpush3.bf16.msra.mxu1 %v9274_v18  ;;  %v3186_v58 = vadd.f32 %v12768_v31, %v2848_v61  ;;  %v3759_v46 = vpop.f32.mrf.mxu0  ;;  %v11131_v13 = vpack.c.bf16 %v3955_v16, %v3954_v30  ;;  %v12769_v18 = vld [vmem:[#allocation50_spill] sm:$0xff]  ;;  %v9276_v43 = vld [vmem:[#allocation8 + $0xc0] sm:$0xff]   ;;  %v3450_v45 = vpop.f32.mrf.mxu1  ;;  %v12778_v61 = vld [vmem:[#allocation127_spill] sm:$0xff] }
 0x269   : > { %v4075_v32 = vpack.c.bf16 %v11114_v25, %v3890_v44  ;;  %8821 = vmatpush3.bf16.msra.mxu0 %v9273_v41  ;;  %8858 = vmatprep.subr.bf16.mxu1 %v11112_v0  ;;  %v3491_v23 = vadd.f32 %v11042_v2, %v3185_v3  ;;  %v3894_v27 = vmax.f32 %v11126_v20, 0.0  ;;  %v3865_v9 = vadd.f32 %v10904_v5, %v3826_v17  ;;  %v12772_v41 = vld [vmem:[#allocation124_spill] sm:$0xff]  ;;  %v12775_v3 = vld [vmem:[#allocation51_spill] sm:$0xff]  ;;  %v12782_v16 = vld [vmem:[#allocation129_spill] sm:$0xff] }
 0x26a   : > { %3928 = vst [vmem:[#allocation2 + $0xc8] sm:$0xff] %v3896_v33  ;;  %v3824_v50 = vadd.f32 %v3759_v46, %v3486_v6  ;;  %vm12770_vm5 = vnez %v12769_v18  ;;  %8822 = vmatprep.subr.bf16.mxu0 %v9275_v1  ;;  %v2206_v44 = vadd.f32 %v12771_v12, %v10996_v42  ;;  %v2851_v34 = vadd.f32 %v12773_v36, %v12772_v41  ;;  %v8660_v57 = vpop.f32.mrf.mxu0  ;;  %v12777_v42 = vld [vmem:[#allocation126_spill] sm:$0xff]  ;;  %v11157_v17 = vld [vmem:[#allocation8 + $0x178] sm:$0xff]  }
 0x26b   : > { %8743 = vmatmul.mubr.msk.bf16.gmra.mxu0 %vm12770_vm5, %v11128_v60  ;;  %v3184_v2 = vadd.f32 %v12774_v22, %v2846_v59  ;;  %vm12776_vm6 = vnez %v12775_v3  ;;  %8699 = vmatmul.mubr.bf16.gmra.mxu1 %v4075_v32  ;;  %v3489_v14 = vadd.f32 %v11067_v8, %v3183_v24  ;;  %3926 = vst [vmem:[#allocation2 + $0xb8] sm:$0xff] %v3894_v27  ;;  %v3897_v49 = vmax.f32 %v3865_v9, 0.0  ;;  %v12779_v6 = vld [vmem:[#allocation130_spill] sm:$0xff]  ;;  %v12783_v32 = vld [vmem:[#allocation157_spill] sm:$0xff] }
 0x26c   : > { %8746 = vmatprep.mubr.msk.bf16.mxu0 %vm12776_vm6, %v11131_v13  ;;  %v3863_v38 = vadd.f32 %v10904_v5, %v3824_v50  ;;  %v3829_v19 = vadd.f32 %v8660_v57, %v3491_v23  ;;  %8702 = vmatprep.mubr.bf16.mxu1 %v4076_v15  ;;  %v2849_v62 = vadd.f32 %v12778_v61, %v12777_v42  ;;  %v3772_v10 = vpop.f32.mrf.mxu0  ;;  %v12781_v15 = vld [vmem:[#allocation128_spill] sm:$0xff]  ;;  %v3956_v23 = vld [vmem:[#allocation2 + $0x97] sm:$0xff]  ;;  %v8617_v50 = vpop.f32.mrf.mxu1 }
 0x26d   : > { %v2512_v59 = vadd.f32 %v12779_v6, %v2206_v44  ;;  %v3492_v26 = vadd.f32 %v11080_v28, %v3186_v58  ;;  %v3189_v55 = vadd.f32 %v12780_v53, %v2851_v34  ;;  %8823 = vmatpush3.bf16.msra.mxu0 %v9275_v1  ;;  %3929 = vst [vmem:[#allocation2 + $0xd0] sm:$0xff] %v3897_v49  ;;  %v3959_v36 = vld [vmem:[#allocation2 + $0xaf] sm:$0xff]  ;;  %v12784_v34 = vld [vmem:[#allocation131_spill] sm:$0xff] }
 0x26e   : > { %v3895_v8 = vmax.f32 %v3863_v38, 0.0  ;;  %v3868_v24 = vadd.f32 %v10904_v5, %v3829_v19  ;;  %v3827_v30 = vadd.f32 %v3772_v10, %v3489_v14  ;;  %v4078_v20 = vpack.c.bf16 %v3897_v49, %v3896_v33  ;;  %8824 = vmatprep.subr.bf16.mxu0 %v9276_v43  ;;  %v8661_v58 = vpop.f32.mrf.mxu0  ;;  %v3957_v9 = vld [vmem:[#allocation2 + $0x9f] sm:$0xff]  ;;  %v3958_v1 = vld [vmem:[#allocation2 + $0xa7] sm:$0xff] }
 0x26f   : > { %v2852_v31 = vadd.f32 %v12782_v16, %v12781_v15  ;;  %v3490_v46 = vadd.f32 %v11105_v63, %v3184_v2  ;;  %v3187_v28 = vadd.f32 %v12783_v32, %v2849_v62  ;;  %v3830_v33 = vadd.f32 %v8661_v58, %v3492_v26  ;;  %v12785_v61 = vld [vmem:[#allocation52_spill] sm:$0xff] }
 0x270   : > { %3927 = vst [vmem:[#allocation2 + $0xc0] sm:$0xff] %v3895_v8  ;;  %v3900_v12 = vmax.f32 %v3868_v24, 0.0  ;;  %v3866_v44 = vadd.f32 %v10904_v5, %v3827_v30  ;;  %v11164_v41 = vpack.c.bf16 %v3957_v9, %v3956_v23  ;;  %v2850_v22 = vadd.f32 %v12784_v34, %v2512_v59  ;;  %v3775_v63 = vpop.f32.mrf.mxu0 }
 0x271   : > { %v3190_v57 = vadd.f32 %v10890_v37, %v2852_v31  ;;  %v11168_v2 = vpack.c.bf16 %v3959_v36, %v3958_v1  ;;  %v11170_v14 = vpack.c.bf16 %v3895_v8, %v3894_v27  ;;  %8825 = vmatpush3.bf16.msra.mxu0 %v9276_v43  ;;  %v3495_v49 = vadd.f32 %v11122_v11, %v3189_v55  ;;  %v12786_v27 = vld [vmem:[#allocation53_spill] sm:$0xff]  ;;  %v3453_v43 = vpop.f32.mrf.mxu1 }
 0x272   : > { %3932 = vst [vmem:[#allocation2 + $0xe8] sm:$0xff] %v3900_v12  ;;  %v3898_v38 = vmax.f32 %v3866_v44, 0.0  ;;  %v3869_v19 = vadd.f32 %v10904_v5, %v3830_v33  ;;  %v3828_v42 = vadd.f32 %v3775_v63, %v3490_v46  ;;  %8906 = vmatprep.subr.bf16.mxu0 %v11157_v17  ;;  %v3188_v37 = vadd.f32 %v10897_v52, %v2850_v22  ;;  %v8664_v62 = vpop.f32.mrf.mxu0  ;;  %v3960_v15 = vld [vmem:[#allocation2 + $0xb7] sm:$0xff]  ;;  %v5195_v33 = vld [vmem:[#allocation2 + $0x28] sm:$0xff] }
 0x273   : > { %8747 = vmatmul.mubr.msk.bf16.gmra.mxu0 %vm12593_vm3, %v11164_v41  ;;  %vm12787_vm6 = vnez %v12786_v27  ;;  %8703 = vmatmul.mubr.bf16.gmra.mxu1 %v11170_v14  ;;  %v3493_v11 = vadd.f32 %v3450_v45, %v3187_v28  ;;  %v3833_v26 = vadd.f32 %v8664_v62, %v3495_v49  ;;  %v3496_v53 = vadd.f32 %v8617_v50, %v3190_v57  ;;  %v4517_v49 = vld [vmem:[#allocation2 + $0x9] sm:$0xff] }
 0x274   : > { %8750 = vmatprep.mubr.msk.bf16.mxu0 %vm12787_vm6, %v11168_v2  ;;  %3930 = vst [vmem:[#allocation2 + $0xd8] sm:$0xff] %v3898_v38  ;;  %v11183_v6 = vmax.f32 %v3869_v19, 0.0  ;;  %v3867_v59 = vadd.f32 %v10904_v5, %v3828_v42  ;;  %8706 = vmatprep.mubr.bf16.mxu1 %v4078_v20  ;;  %v3788_v55 = vpop.f32.mrf.mxu0  ;;  %v3494_v30 = vadd.f32 %v3453_v43, %v3188_v37  ;;  %v3963_v58 = vld [vmem:[#allocation2 + $0xcf] sm:$0xff] }
 0x275   : > { %v3872_v10 = vadd.f32 %v10904_v5, %v3833_v26  ;;  %v3831_v8 = vadd.f32 %v3788_v55, %v3493_v11  ;;  %v12792_v55 = vld [vmem:[#allocation60_spill] sm:$0xff] }
 0x276   : > { %3933 = vst [vmem:[#allocation2 + $0xf0] sm:$0xff] %v11183_v6  ;;  %v3899_v52 = vmax.f32 %v3867_v59, 0.0  ;;  %v4080_v24 = vpack.c.bf16 %v11183_v6, %v3900_v12  ;;  %v8665_v45 = vpop.f32.mrf.mxu0 }
 0x277   : > { %v3961_v16 = vld [vmem:[#allocation2 + $0xbf] sm:$0xff]  ;;  %v3962_v31 = vld [vmem:[#allocation2 + $0xc7] sm:$0xff]  ;;  %v3904_v46 = vmax.f32 %v3872_v10, 0.0  ;;  %v3870_v32 = vadd.f32 %v10904_v5, %v3831_v8  ;;  %v3834_v20 = vadd.f32 %v8665_v45, %v3496_v53 }
 0x278   : > { %3931 = vst [vmem:[#allocation2 + $0xe0] sm:$0xff] %v3899_v52  ;;  %v11190_v28 = vpack.c.bf16 %v3961_v16, %v3960_v15  ;;  %v3791_v23 = vpop.f32.mrf.mxu0  ;;  %v11192_v9 = vpack.c.bf16 %v3963_v58, %v3962_v31  ;;  %v11194_v1 = vpack.c.bf16 %v3899_v52, %v3898_v38  ;;  %v4518_v38 = vld [vmem:[#allocation2 + $0x11] sm:$0xff]  ;;  %v4519_v52 = vld [vmem:[#allocation2 + $0x19] sm:$0xff]  ;;  %v4520_v10 = vld [vmem:[#allocation2 + $0x21] sm:$0xff] }
 0x279   : > { %3936 = vst [vmem:[#allocation2 + $0x108] sm:$0xff] %v3904_v46  ;;  %v3902_v50 = vmax.f32 %v3870_v32, 0.0  ;;  %v3873_v12 = vadd.f32 %v10904_v5, %v3834_v20  ;;  %v3832_v44 = vadd.f32 %v3791_v23, %v3494_v30  ;;  %v7507_v26 = vpack.c.bf16 %v4518_v38, %v4517_v49  ;;  %v4522_v30 = vld [vmem:[#allocation2 + $0x31] sm:$0xff]  ;;  %v4521_v16 = vld [vmem:[#allocation2 + $0x29] sm:$0xff]  ;;  %v9278_v31 = vld [vmem:[#allocation8 + $0x130] sm:$0xff]  }
 0x27a   : > { %v11224_v15 = vpack.c.bf16 %v4520_v10, %v4519_v52  ;;  %v11229_v32 = vpack.c.bf16 %v4522_v30, %v4521_v16  ;;  %v12794_v20 = vld [vmem:[#allocation13_spill] sm:$0xff]  ;;  %v12796_v23 = vld [vmem:[#allocation63_spill] sm:$0xff] }
 0x27b   : > { %8751 = vmatmul.mubr.msk.bf16.gmra.mxu0 %vm12596_vm14, %v11190_v28  ;;  %8707 = vmatmul.mubr.bf16.gmra.mxu1 %v11194_v1  ;;  %3934 = vst [vmem:[#allocation2 + $0xf8] sm:$0xff] %v3902_v50  ;;  %v3905_v34 = vmax.f32 %v3873_v12, 0.0  ;;  %v3871_v22 = vadd.f32 %v10904_v5, %v3832_v44  ;;  %v3964_v63 = vld [vmem:[#allocation2 + $0xd7] sm:$0xff]  ;;  %v4524_v44 = vld [vmem:[#allocation2 + $0x41] sm:$0xff]  ;;  %v4529_v52 = vld [vmem:[#allocation2 + $0x69] sm:$0xff] }
 0x27c   : > { %8754 = vmatprep.mubr.msk.bf16.mxu0 %vm12560_vm12, %v11192_v9  ;;  %8710 = vmatprep.mubr.bf16.mxu1 %v4080_v24  ;;  %v4523_v12 = vld [vmem:[#allocation2 + $0x39] sm:$0xff]  ;;  %v12799_v38 = vld [vmem:[#allocation65_spill] sm:$0xff] }
 0x27d   : > { %3937 = vst [vmem:[#allocation2 + $0x110] sm:$0xff] %v3905_v34  ;;  %v3903_v57 = vmax.f32 %v3871_v22, 0.0  ;;  %v11205_v19 = vpack.c.bf16 %v3905_v34, %v3904_v46  ;;  %v3967_v62 = vld [vmem:[#allocation2 + $0xef] sm:$0xff]  ;;  %v11241_v22 = vpack.c.bf16 %v4524_v44, %v4523_v12  ;;  %v9283_v49 = vld [vmem:[#allocation8 + $0x170] sm:$0xff]  }
 0x27e   : > { %v4526_v34 = vld [vmem:[#allocation2 + $0x51] sm:$0xff]  ;;  %v9284_v10 = vld [vmem:[#allocation8 + $0x110] sm:$0xff]  }
 0x27f   : > { %v3965_v42 = vld [vmem:[#allocation2 + $0xdf] sm:$0xff]  ;;  %v3966_v37 = vld [vmem:[#allocation2 + $0xe7] sm:$0xff]  ;;  %3935 = vst [vmem:[#allocation2 + $0x100] sm:$0xff] %v3903_v57  ;;  %v11211_v59 = vpack.c.bf16 %v3903_v57, %v3902_v50  ;;  %v4534_v12 = vld [vmem:[#allocation2 + $0x91] sm:$0xff] }
 0x280   : > { %v11207_v11 = vpack.c.bf16 %v3965_v42, %v3964_v63  ;;  %v11209_v43 = vpack.c.bf16 %v3967_v62, %v3966_v37  ;;  %v9279_v50 = vld [vmem:[#allocation8 + $0x128] sm:$0xff]   ;;  %v4525_v57 = vld [vmem:[#allocation2 + $0x49] sm:$0xff]  ;;  %v4528_v37 = vld [vmem:[#allocation2 + $0x61] sm:$0xff] }
 0x281   : > { %v11246_v63 = vpack.c.bf16 %v4526_v34, %v4525_v57  ;;  %v9281_v42 = vld [vmem:[#allocation8 + $0x118] sm:$0xff]   ;;  %v9285_v62 = vld [vmem:[#allocation8 + $0x168] sm:$0xff]   ;;  %v12803_v30 = vld [vmem:[#allocation67_spill] sm:$0xff] }
 0x282   : > { %v3968_v8 = vld [vmem:[#allocation2 + $0xf7] sm:$0xff] }
 0x283   : > { %8755 = vmatmul.mubr.msk.bf16.gmra.mxu0 %vm12571_vm4, %v11207_v11  ;;  %8711 = vmatmul.mubr.bf16.gmra.mxu1 %v11211_v59  ;;  %v4531_v16 = vld [vmem:[#allocation2 + $0x79] sm:$0xff]  ;;  %v9290_v34 = vld [vmem:[#allocation8 + $0x100] sm:$0xff]  }
 0x284   : > { %8758 = vmatprep.mubr.msk.bf16.mxu0 %vm10011_vm7, %v11209_v43  ;;  %8778 = vmatprep.mubr.msk.bf16.mxu1 %vm10040_vm8, %v7507_v26  ;;  %v4530_v26 = vld [vmem:[#allocation2 + $0x71] sm:$0xff] }
 0x285   : > { %v4886_v36 = vld [vmem:[#allocation2 + $0x10f] sm:$0xff] }
 0x286   : > { %v3969_v24 = vld [vmem:[#allocation2 + $0xff] sm:$0xff] }
 0x287   : > { %v11222_v45 = vpack.c.bf16 %v3969_v24, %v3968_v8  ;;  %v11263_v8 = vpack.c.bf16 %v4530_v26, %v4529_v52  ;;  %v12801_v24 = vld [vmem:[#allocation66_spill] sm:$0xff]  ;;  %v4537_v52 = vld [vmem:[#allocation2 + $0xa9] sm:$0xff] }
 0x288   : > { %v4538_v26 = vld [vmem:[#allocation2 + $0xb1] sm:$0xff] }
 0x28b   : > { %8759 = vmatmul.mubr.msk.bf16.gmra.mxu0 %vm12573_vm1, %v11222_v45  ;;  %8779 = vmatmul.mubr.msk.bf16.vlgmr.msra.gmra.mxu1 %vm10063_vm0, %v11224_v15 }
 0x28c   : > { %8826 = vmatprep.mubr.msk.bf16.mxu0 %vm12619_vm11, %v11007_v47  ;;  %8782 = vmatprep.mubr.msk.bf16.mxu1 %vm10070_vm2, %v11229_v32  ;;  %v9280_v47 = vld [vmem:[#allocation8 + $0x120] sm:$0xff]   ;;  %vm12800_vm2 = vnez %v12799_v38 }
 0x28d   : > { %8859 = vmatpush3.bf16.msra.mxu1 %v11112_v0  ;;  %v12797_v0 = vld [vmem:[#allocation64_spill] sm:$0xff] }
 0x28e   : > { %8860 = vmatprep.subr.bf16.mxu1 %v9278_v31  ;;  %vm12798_vm11 = vnez %v12797_v0 }
 0x291   : > { %8861 = vmatpush3.bf16.msra.mxu1 %v9278_v31  ;;  %v4532_v31 = vld [vmem:[#allocation2 + $0x81] sm:$0xff] }
 0x292   : > { %8862 = vmatprep.subr.bf16.mxu1 %v9279_v50  ;;  %v11274_v44 = vpack.c.bf16 %v4532_v31, %v4531_v16  ;;  %v12814_v16 = vld [vmem:[#allocation71_spill] sm:$0xff] }
 0x293   : > { %8827 = vmatmul.mubr.msk.bf16.vlgmr.msra.gmra.mxu0 %vm12719_vm15, %v11011_v35  ;;  %8783 = vmatmul.mubr.msk.bf16.gmra.mxu1 %vm12798_vm11, %v11241_v22  ;;  %v4527_v35 = vld [vmem:[#allocation2 + $0x59] sm:$0xff]  ;;  %vm12804_vm15 = vnez %v12803_v30 }
 0x294   : > { %8830 = vmatprep.mubr.msk.bf16.mxu0 %vm12725_vm9, %v11047_v29  ;;  %8786 = vmatprep.mubr.msk.bf16.mxu1 %vm12800_vm2, %v11246_v63  ;;  %v11258_v29 = vpack.c.bf16 %v4528_v37, %v4527_v35  ;;  %vm12802_vm9 = vnez %v12801_v24  ;;  %v4535_v35 = vld [vmem:[#allocation2 + $0x99] sm:$0xff]  ;;  %v4536_v37 = vld [vmem:[#allocation2 + $0xa1] sm:$0xff] }
 0x295   : > { %8863 = vmatpush3.bf16.msra.mxu1 %v9279_v50  ;;  %8907 = vmatpush3.bf16.msra.mxu0 %v11157_v17  ;;  %v9286_v17 = vld [vmem:[#allocation8 + $0x160] sm:$0xff]   ;;  %v9288_v50 = vld [vmem:[#allocation8 + $0x158] sm:$0xff]   ;;  %v4539_v31 = vld [vmem:[#allocation2 + $0xb9] sm:$0xff] }
 0x296   : > { %8864 = vmatprep.subr.bf16.mxu1 %v9280_v47  ;;  %8908 = vmatprep.subr.bf16.mxu0 %v9283_v49 }
 0x299   : > { %8865 = vmatpush3.bf16.msra.mxu1 %v9280_v47  ;;  %8909 = vmatpush3.bf16.msra.mxu0 %v9283_v49  ;;  %v9289_v47 = vld [vmem:[#allocation8 + $0x150] sm:$0xff]   ;;  %v12807_v49 = vld [vmem:[#allocation68_spill] sm:$0xff] }
 0x29a   : > { %8866 = vmatprep.subr.bf16.mxu1 %v9281_v42  ;;  %8910 = vmatprep.subr.bf16.mxu0 %v9285_v62 }
 0x29b   : > { %8831 = vmatmul.mubr.msk.bf16.gmra.mxu0 %vm12738_vm10, %v11050_v40  ;;  %8787 = vmatmul.mubr.msk.bf16.gmra.mxu1 %vm12802_vm9, %v11258_v29  ;;  %v9287_v40 = vld [vmem:[#allocation8 + $0x108] sm:$0xff]   ;;  %vm12806_vm10 = vnez %v12759_v7 }
 0x29c   : > { %8834 = vmatprep.mubr.msk.bf16.mxu0 %vm12744_vm13, %v11085_v21  ;;  %8790 = vmatprep.mubr.msk.bf16.mxu1 %vm12804_vm15, %v11263_v8  ;;  %v4533_v21 = vld [vmem:[#allocation2 + $0x89] sm:$0xff]  ;;  %vm12805_vm13 = vnez %v12753_v39  ;;  %vm12808_vm15 = vnez %v12807_v49 }
 0x29d   : > { %8867 = vmatpush3.bf16.msra.mxu1 %v9281_v42  ;;  %8911 = vmatpush3.bf16.msra.mxu0 %v9285_v62  ;;  %v11279_v57 = vpack.c.bf16 %v4534_v12, %v4533_v21  ;;  %v12809_v42 = vld [vmem:[#allocation69_spill] sm:$0xff]  ;;  %v9291_v62 = vld [vmem:[#allocation8 + $0x148] sm:$0xff]  }
 0x29e   : > { %8868 = vmatprep.subr.bf16.mxu1 %v9284_v10  ;;  %8912 = vmatprep.subr.bf16.mxu0 %v9286_v17  ;;  %vm12810_vm9 = vnez %v12809_v42  ;;  %v4542_v12 = vld [vmem:[#allocation2 + $0xd1] sm:$0xff] }
 0x2a1   : > { %8869 = vmatpush3.bf16.msra.mxu1 %v9284_v10  ;;  %8913 = vmatpush3.bf16.msra.mxu0 %v9286_v17  ;;  %v11298_v10 = vpack.c.bf16 %v4538_v26, %v4537_v52  ;;  %v9292_v17 = vld [vmem:[#allocation8 + $0x140] sm:$0xff]  }
 0x2a2   : > { %8870 = vmatprep.subr.bf16.mxu1 %v9287_v40  ;;  %8914 = vmatprep.subr.bf16.mxu0 %v9288_v50  ;;  %v4546_v26 = vld [vmem:[#allocation2 + $0xf1] sm:$0xff]  ;;  %v4545_v52 = vld [vmem:[#allocation2 + $0xe9] sm:$0xff] }
 0x2a3   : > { %8835 = vmatmul.mubr.msk.bf16.gmra.mxu0 %vm12805_vm13, %v11088_v51  ;;  %8791 = vmatmul.mubr.msk.bf16.gmra.mxu1 %vm12808_vm15, %v11274_v44  ;;  %v11290_v51 = vld [vmem:[#allocation8 + $0x1b8] sm:$0xff]  }
 0x2a4   : > { %8838 = vmatprep.mubr.msk.bf16.mxu0 %vm12806_vm10, %v11128_v60  ;;  %8794 = vmatprep.mubr.msk.bf16.mxu1 %vm12810_vm9, %v11279_v57  ;;  %v11292_v60 = vpack.c.bf16 %v4536_v37, %v4535_v35  ;;  %vm12811_vm10 = vnez %v12775_v3  ;;  %vm12815_vm9 = vnez %v12814_v16  ;;  %v12818_v35 = vld [vmem:[#allocation73_spill] sm:$0xff]  ;;  %v4543_v37 = vld [vmem:[#allocation2 + $0xd9] sm:$0xff] }
 0x2a5   : > { %8871 = vmatpush3.bf16.msra.mxu1 %v9287_v40  ;;  %8915 = vmatpush3.bf16.msra.mxu0 %v9288_v50  ;;  %v12812_v40 = vld [vmem:[#allocation70_spill] sm:$0xff]  ;;  %v4540_v50 = vld [vmem:[#allocation2 + $0xc1] sm:$0xff] }
 0x2a6   : > { %8872 = vmatprep.subr.bf16.mxu1 %v9290_v34  ;;  %8916 = vmatprep.subr.bf16.mxu0 %v9289_v47  ;;  %vm12813_vm13 = vnez %v12812_v40  ;;  %v11311_v21 = vpack.c.bf16 %v4540_v50, %v4539_v31  ;;  %v12822_v31 = vld [vmem:[#allocation75_spill] sm:$0xff] }
 0x2a7   : > { %v4547_v50 = vld [vmem:[#allocation2 + $0xf9] sm:$0xff] }
 0x2a9   : > { %8873 = vmatpush3.bf16.msra.mxu1 %v9290_v34  ;;  %8917 = vmatpush3.bf16.msra.mxu0 %v9289_v47  ;;  %v4541_v34 = vld [vmem:[#allocation2 + $0xc9] sm:$0xff] }
 0x2aa   : > { %8954 = vmatprep.subr.bf16.mxu1 %v11290_v51  ;;  %8918 = vmatprep.subr.bf16.mxu0 %v9291_v62  ;;  %v12816_v47 = vld [vmem:[#allocation72_spill] sm:$0xff] }
 0x2ab   : > { %8839 = vmatmul.mubr.msk.bf16.gmra.mxu0 %vm12770_vm5, %v11131_v13  ;;  %8795 = vmatmul.mubr.msk.bf16.gmra.mxu1 %vm12813_vm13, %v11292_v60  ;;  %v11309_v13 = vld [vmem:[#allocation8 + $0x1f8] sm:$0xff]   ;;  %vm12819_vm5 = vnez %v12818_v35 }
 0x2ac   : > { %8842 = vmatprep.mubr.msk.bf16.mxu0 %vm12811_vm10, %v11164_v41  ;;  %8798 = vmatprep.mubr.msk.bf16.mxu1 %vm12815_vm9, %v11298_v10  ;;  %v11316_v41 = vpack.c.bf16 %v4542_v12, %v4541_v34  ;;  %vm12817_vm10 = vnez %v12816_v47  ;;  %v4548_v12 = vld [vmem:[#allocation2 + $0x101] sm:$0xff] }
 0x2ad   : > { %8919 = vmatpush3.bf16.msra.mxu0 %v9291_v62  ;;  %v4544_v62 = vld [vmem:[#allocation2 + $0xe1] sm:$0xff] }
 0x2ae   : > { %8920 = vmatprep.subr.bf16.mxu0 %v9292_v17  ;;  %v5194_v34 = vld [vmem:[#allocation2 + $0x20] sm:$0xff] }
 0x2b1   : > { %8921 = vmatpush3.bf16.msra.mxu0 %v9292_v17  ;;  %v11333_v17 = vpack.c.bf16 %v4546_v26, %v4545_v52  ;;  %v4885_v26 = vld [vmem:[#allocation2 + $0x107] sm:$0xff]  ;;  %v5196_v52 = vld [vmem:[#allocation2 + $0x30] sm:$0xff] }
 0x2b2   : > { %9002 = vmatprep.subr.bf16.mxu0 %v11309_v13  ;;  %v11357_v27 = vpack.c.bf16 %v5196_v52, %v5195_v33  ;;  %v9295_v33 = vld [vmem:[#allocation8 + $0x1a8] sm:$0xff]  }
 0x2b3   : > { %8843 = vmatmul.mubr.msk.bf16.gmra.mxu0 %vm12593_vm3, %v11168_v2  ;;  %8799 = vmatmul.mubr.msk.bf16.gmra.mxu1 %vm12817_vm10, %v11311_v21  ;;  %v11328_v2 = vpack.c.bf16 %v4544_v62, %v4543_v37  ;;  %vm12823_vm3 = vnez %v12822_v31  ;;  %v11344_v37 = vpack.c.bf16 %v4548_v12, %v4547_v50  ;;  %v5198_v50 = vld [vmem:[#allocation2 + $0x40] sm:$0xff]  ;;  %v11355_v12 = vpack.c.bf16 %v4886_v36, %v4885_v26  ;;  %v5200_v36 = vld [vmem:[#allocation2 + $0x50] sm:$0xff]  ;;  %v5201_v52 = vld [vmem:[#allocation2 + $0x58] sm:$0xff] }
 0x2b4   : > { %8846 = vmatprep.mubr.msk.bf16.mxu0 %vm12787_vm6, %v11190_v28  ;;  %8802 = vmatprep.mubr.msk.bf16.mxu1 %vm12819_vm5, %v11316_v41  ;;  %v12820_v28 = vld [vmem:[#allocation74_spill] sm:$0xff] }
 0x2b5   : > { %vm12821_vm6 = vnez %v12820_v28 }
 0x2bb   : > { %8847 = vmatmul.mubr.msk.bf16.gmra.mxu0 %vm12596_vm14, %v11192_v9  ;;  %8803 = vmatmul.mubr.msk.bf16.gmra.mxu1 %vm12821_vm6, %v11328_v2  ;;  %v5193_v9 = vld [vmem:[#allocation2 + $0x18] sm:$0xff] }
 0x2bc   : > { %8850 = vmatprep.mubr.msk.bf16.mxu0 %vm12560_vm12, %v11207_v11  ;;  %8806 = vmatprep.mubr.msk.bf16.mxu1 %vm12823_vm3, %v11333_v17  ;;  %v5225_v62 = vpack.c.bf16 %v5194_v34, %v5193_v9  ;;  %v12824_v11 = vld [vmem:[#allocation76_spill] sm:$0xff]  ;;  %v9294_v34 = vld [vmem:[#allocation8 + $0x1b0] sm:$0xff]  }
 0x2bd   : > { %vm12825_vm12 = vnez %v12824_v11  ;;  %v5202_v9 = vld [vmem:[#allocation2 + $0x60] sm:$0xff] }
 0x2c3   : > { %8851 = vmatmul.mubr.msk.bf16.gmra.mxu0 %vm12571_vm4, %v11209_v43  ;;  %8807 = vmatmul.mubr.msk.bf16.gmra.mxu1 %vm12825_vm12, %v11344_v37  ;;  %v5197_v43 = vld [vmem:[#allocation2 + $0x38] sm:$0xff] }
 0x2c4   : > { %8854 = vmatprep.mubr.msk.bf16.mxu0 %vm10011_vm7, %v11222_v45  ;;  %8874 = vmatprep.mubr.bf16.mxu1 %v5225_v62  ;;  %v11362_v45 = vpack.c.bf16 %v5198_v50, %v5197_v43  ;;  %v5199_v62 = vld [vmem:[#allocation2 + $0x48] sm:$0xff]  ;;  %v9296_v50 = vld [vmem:[#allocation8 + $0x1a0] sm:$0xff]   ;;  %v9299_v43 = vld [vmem:[#allocation8 + $0x1f0] sm:$0xff]  }
 0x2c5   : > { %v11370_v26 = vpack.c.bf16 %v5200_v36, %v5199_v62  ;;  %v9301_v36 = vld [vmem:[#allocation8 + $0x1e8] sm:$0xff]  }
 0x2cb   : > { %8855 = vmatmul.mubr.msk.bf16.gmra.mxu0 %vm12573_vm1, %v11355_v12  ;;  %8875 = vmatmul.mubr.bf16.vlgmr.msra.gmra.mxu1 %v11357_v27 }
 0x2cc   : > { %8922 = vmatprep.mubr.msk.bf16.mxu0 %vm10040_vm8, %v11224_v15  ;;  %8878 = vmatprep.mubr.bf16.mxu1 %v11362_v45  ;;  %v11375_v15 = vpack.c.bf16 %v5202_v9, %v5201_v52  ;;  %vm12826_vm8 = vnez %v12796_v23  ;;  %v5203_v9 = vld [vmem:[#allocation2 + $0x68] sm:$0xff]  ;;  %v5205_v52 = vld [vmem:[#allocation2 + $0x78] sm:$0xff] }
 0x2cd   : > { %8955 = vmatpush3.bf16.msra.mxu1 %v11290_v51  ;;  %v9297_v51 = vld [vmem:[#allocation8 + $0x198] sm:$0xff]  }
 0x2ce   : > { %8956 = vmatprep.subr.bf16.mxu1 %v9294_v34 }
 0x2d1   : > { %8957 = vmatpush3.bf16.msra.mxu1 %v9294_v34  ;;  %v5204_v34 = vld [vmem:[#allocation2 + $0x70] sm:$0xff] }
 0x2d2   : > { %8958 = vmatprep.subr.bf16.mxu1 %v9295_v33  ;;  %v11383_v62 = vpack.c.bf16 %v5204_v34, %v5203_v9  ;;  %v9304_v34 = vld [vmem:[#allocation8 + $0x1d8] sm:$0xff]  }
 0x2d3   : > { %8923 = vmatmul.mubr.msk.bf16.vlgmr.msra.gmra.mxu0 %vm10063_vm0, %v11229_v32  ;;  %8879 = vmatmul.mubr.bf16.gmra.mxu1 %v11370_v26  ;;  %v5206_v32 = vld [vmem:[#allocation2 + $0x80] sm:$0xff] }
 0x2d4   : > { %8926 = vmatprep.mubr.msk.bf16.mxu0 %vm12826_vm8, %v11241_v22  ;;  %8882 = vmatprep.mubr.bf16.mxu1 %v11375_v15  ;;  %v9300_v22 = vld [vmem:[#allocation8 + $0x190] sm:$0xff]  }
 0x2d5   : > { %8959 = vmatpush3.bf16.msra.mxu1 %v9295_v33  ;;  %9003 = vmatpush3.bf16.msra.mxu0 %v11309_v13  ;;  %v11388_v33 = vpack.c.bf16 %v5206_v32, %v5205_v52  ;;  %v9302_v13 = vld [vmem:[#allocation8 + $0x1e0] sm:$0xff]   ;;  %v5207_v32 = vld [vmem:[#allocation2 + $0x88] sm:$0xff] }
 0x2d6   : > { %8960 = vmatprep.subr.bf16.mxu1 %v9296_v50  ;;  %9004 = vmatprep.subr.bf16.mxu0 %v9299_v43  ;;  %v9309_v52 = vld [vmem:[#allocation8 + $0x238] sm:$0xff]  }
 0x2d9   : > { %8961 = vmatpush3.bf16.msra.mxu1 %v9296_v50  ;;  %9005 = vmatpush3.bf16.msra.mxu0 %v9299_v43  ;;  %v9303_v50 = vld [vmem:[#allocation8 + $0x188] sm:$0xff]   ;;  %v5208_v43 = vld [vmem:[#allocation2 + $0x90] sm:$0xff] }
 0x2da   : > { %8962 = vmatprep.subr.bf16.mxu1 %v9297_v51  ;;  %9006 = vmatprep.subr.bf16.mxu0 %v9301_v36  ;;  %v11397_v9 = vpack.c.bf16 %v5208_v43, %v5207_v32  ;;  %v5839_v32 = vld [vmem:[#allocation2 + $0x37] sm:$0xff] }
 0x2db   : > { %8927 = vmatmul.mubr.msk.bf16.gmra.mxu0 %vm12798_vm11, %v11246_v63  ;;  %8883 = vmatmul.mubr.bf16.gmra.mxu1 %v11383_v62  ;;  %v11395_v63 = vld [vmem:[#allocation2 + $0x98] sm:$0xff]  ;;  %vm12828_vm11 = vnez %v12803_v30 }
 0x2dc   : > { %8930 = vmatprep.mubr.msk.bf16.mxu0 %vm12800_vm2, %v11258_v29  ;;  %8886 = vmatprep.mubr.bf16.mxu1 %v11388_v33  ;;  %v9306_v29 = vld [vmem:[#allocation8 + $0x180] sm:$0xff]   ;;  %vm12827_vm2 = vnez %v12801_v24 }
 0x2dd   : > { %8963 = vmatpush3.bf16.msra.mxu1 %v9297_v51  ;;  %9007 = vmatpush3.bf16.msra.mxu0 %v9301_v36  ;;  %v5233_v51 = vpack.c.bf16 %v11114_v25, %v11395_v63  ;;  %v9305_v36 = vld [vmem:[#allocation8 + $0x1d0] sm:$0xff]   ;;  %v9308_v25 = vld [vmem:[#allocation8 + $0x1c0] sm:$0xff]  }
 0x2de   : > { %8964 = vmatprep.subr.bf16.mxu1 %v9300_v22  ;;  %9008 = vmatprep.subr.bf16.mxu0 %v9302_v13 }
 0x2e1   : > { %8965 = vmatpush3.bf16.msra.mxu1 %v9300_v22  ;;  %9009 = vmatpush3.bf16.msra.mxu0 %v9302_v13  ;;  %v5212_v22 = vld [vmem:[#allocation2 + $0xb0] sm:$0xff]  ;;  %v9307_v13 = vld [vmem:[#allocation8 + $0x1c8] sm:$0xff]  }
 0x2e2   : > { %8966 = vmatprep.subr.bf16.mxu1 %v9303_v50  ;;  %9010 = vmatprep.subr.bf16.mxu0 %v9304_v34 }
 0x2e3   : > { %8931 = vmatmul.mubr.msk.bf16.gmra.mxu0 %vm12827_vm2, %v11263_v8  ;;  %8887 = vmatmul.mubr.bf16.gmra.mxu1 %v11397_v9  ;;  %v5211_v8 = vld [vmem:[#allocation2 + $0xa8] sm:$0xff] }
 0x2e4   : > { %8934 = vmatprep.mubr.msk.bf16.mxu0 %vm12828_vm11, %v11274_v44  ;;  %8890 = vmatprep.mubr.bf16.mxu1 %v5233_v51  ;;  %v11408_v43 = vpack.c.bf16 %v5212_v22, %v5211_v8  ;;  %vm12829_vm11 = vnez %v12809_v42  ;;  %v5216_v44 = vld [vmem:[#allocation2 + $0xd0] sm:$0xff]  ;;  %v5845_v8 = vld [vmem:[#allocation2 + $0x67] sm:$0xff] }
 0x2e5   : > { %8967 = vmatpush3.bf16.msra.mxu1 %v9303_v50  ;;  %9011 = vmatpush3.bf16.msra.mxu0 %v9304_v34  ;;  %v5215_v50 = vld [vmem:[#allocation2 + $0xc8] sm:$0xff] }
 0x2e6   : > { %8968 = vmatprep.subr.bf16.mxu1 %v9306_v29  ;;  %9012 = vmatprep.subr.bf16.mxu0 %v9305_v36  ;;  %v11418_v34 = vpack.c.bf16 %v5216_v44, %v5215_v50  ;;  %v5842_v51 = vld [vmem:[#allocation2 + $0x4f] sm:$0xff]  ;;  %v5843_v44 = vld [vmem:[#allocation2 + $0x57] sm:$0xff] }
 0x2e9   : > { %8969 = vmatpush3.bf16.msra.mxu1 %v9306_v29  ;;  %9013 = vmatpush3.bf16.msra.mxu0 %v9305_v36 }
 0x2ea   : > { %9050 = vmatprep.subr.bf16.mxu1 %v9309_v52  ;;  %9014 = vmatprep.subr.bf16.mxu0 %v9307_v13 }
 0x2eb   : > { %8935 = vmatmul.mubr.msk.bf16.gmra.mxu0 %vm12808_vm15, %v11279_v57  ;;  %8891 = vmatmul.mubr.bf16.gmra.mxu1 %v11408_v43 }
 0x2ec   : > { %8938 = vmatprep.mubr.msk.bf16.mxu0 %vm12829_vm11, %v11292_v60  ;;  %8894 = vmatprep.mubr.bf16.mxu1 %v11170_v14  ;;  %v11428_v14 = vld [vmem:[#allocation2 + $0xe8] sm:$0xff] }
 0x2ed   : > { %9015 = vmatpush3.bf16.msra.mxu0 %v9307_v13  ;;  %v5238_v57 = vpack.c.bf16 %v11183_v6, %v11428_v14  ;;  %v5837_v60 = vld [vmem:[#allocation2 + $0x27] sm:$0xff]  ;;  %v5844_v13 = vld [vmem:[#allocation2 + $0x5f] sm:$0xff] }
 0x2ee   : > { %9016 = vmatprep.subr.bf16.mxu0 %v9308_v25  ;;  %v5529_v6 = vld [vmem:[#allocation2 + $0x109] sm:$0xff]  ;;  %v7692_v50 = vpack.c.bf16 %v5844_v13, %v5843_v44 }
 0x2f1   : > { %9017 = vmatpush3.bf16.msra.mxu0 %v9308_v25 }
 0x2f3   : > { %8939 = vmatmul.mubr.msk.bf16.gmra.mxu0 %vm12813_vm13, %v11298_v10  ;;  %8895 = vmatmul.mubr.bf16.gmra.mxu1 %v11418_v34  ;;  %v5838_v10 = vld [vmem:[#allocation2 + $0x2f] sm:$0xff] }
 0x2f4   : > { %8942 = vmatprep.mubr.msk.bf16.mxu0 %vm12815_vm9, %v11311_v21  ;;  %8898 = vmatprep.mubr.bf16.mxu1 %v11194_v1  ;;  %v7683_v1 = vpack.c.bf16 %v5838_v10, %v5837_v60  ;;  %v5530_v21 = vld [vmem:[#allocation2 + $0x111] sm:$0xff] }
 0x2fb   : > { %8943 = vmatmul.mubr.msk.bf16.gmra.mxu0 %vm12817_vm10, %v11316_v41  ;;  %8899 = vmatmul.mubr.bf16.gmra.mxu1 %v5238_v57  ;;  %vm12830_vm10 = vnez %v12794_v20  ;;  %v5840_v41 = vld [vmem:[#allocation2 + $0x3f] sm:$0xff]  ;;  %v5846_v57 = vld [vmem:[#allocation2 + $0x6f] sm:$0xff] }
 0x2fc   : > { %8946 = vmatprep.mubr.msk.bf16.mxu0 %vm12819_vm5, %v11328_v2  ;;  %8902 = vmatprep.mubr.bf16.mxu1 %v11211_v59  ;;  %v5841_v59 = vld [vmem:[#allocation2 + $0x47] sm:$0xff]  ;;  %v11448_v2 = vpack.c.bf16 %v5530_v21, %v5529_v6  ;;  %v7686_v29 = vpack.c.bf16 %v5840_v41, %v5839_v32  ;;  %v9311_v20 = vld [vmem:[#allocation8 + $0x228] sm:$0xff]  }
 0x2fd   : > { %v7689_v36 = vpack.c.bf16 %v5842_v51, %v5841_v59  ;;  %v9313_v21 = vld [vmem:[#allocation8 + $0x218] sm:$0xff]   ;;  %v5848_v41 = vld [vmem:[#allocation2 + $0x7f] sm:$0xff]  ;;  %v5847_v51 = vld [vmem:[#allocation2 + $0x77] sm:$0xff] }
 0x303   : > { %8947 = vmatmul.mubr.msk.bf16.gmra.mxu0 %vm12821_vm6, %v11333_v17  ;;  %8903 = vmatmul.mubr.bf16.gmra.mxu1 %v11205_v19  ;;  %v9310_v17 = vld [vmem:[#allocation8 + $0x230] sm:$0xff]  }
 0x304   : > { %8950 = vmatprep.mubr.msk.bf16.mxu0 %vm12823_vm3, %v11344_v37  ;;  %8970 = vmatprep.mubr.msk.bf16.mxu1 %vm12830_vm10, %v7683_v1  ;;  %vm12831_vm10 = vnez %v12718_v48  ;;  %vm12832_vm3 = vnez %v12724_v56  ;;  %v7695_v48 = vpack.c.bf16 %v5846_v57, %v5845_v8  ;;  %v5852_v57 = vld [vmem:[#allocation2 + $0x9f] sm:$0xff] }
 0x309   : > { %v8684_v37 = vpop.f32.mrf.mxu1 }
 0x30b   : > { %8951 = vmatmul.mubr.msk.bf16.gmra.mxu0 %vm12825_vm12, %v11448_v2  ;;  %8971 = vmatmul.mubr.msk.bf16.vlgmr.msra.gmra.mxu1 %vm12831_vm10, %v7686_v29  ;;  %v4181_v19 = vpop.f32.mrf.mxu1  ;;  %vm12834_vm10 = vnez %v12743_v4  ;;  %v7698_v4 = vpack.c.bf16 %v5848_v41, %v5847_v51 }
 0x30c   : > { %9018 = vmatprep.mubr.bf16.mxu0 %v11357_v27  ;;  %8974 = vmatprep.mubr.msk.bf16.mxu1 %vm12832_vm3, %v7689_v36  ;;  %v9312_v27 = vld [vmem:[#allocation8 + $0x220] sm:$0xff]   ;;  %vm12833_vm3 = vnez %v12737_v54  ;;  %v9314_v36 = vld [vmem:[#allocation8 + $0x210] sm:$0xff]  }
 0x30d   : > { %9051 = vmatpush3.bf16.msra.mxu1 %v9309_v52  ;;  %v8685_v22 = vpop.f32.mrf.mxu1 }
 0x30e   : > { %9052 = vmatprep.subr.bf16.mxu1 %v9310_v17 }
 0x30f   : > { %v4184_v25 = vpop.f32.mrf.mxu1 }
 0x311   : > { %9053 = vmatpush3.bf16.msra.mxu1 %v9310_v17  ;;  %v8732_v60 = vpop.f32.mrf.mxu0 }
 0x312   : > { %9054 = vmatprep.subr.bf16.mxu1 %v9311_v20  ;;  %v11459_v56 = vadd.f32 %v8732_v60, %v8684_v37  ;;  %v8688_v52 = vpop.f32.mrf.mxu1  ;;  %v5850_v37 = vld [vmem:[#allocation2 + $0x8f] sm:$0xff] }
 0x313   : > { %9019 = vmatmul.mubr.bf16.vlgmr.msra.gmra.mxu0 %v11362_v45  ;;  %8975 = vmatmul.mubr.msk.bf16.gmra.mxu1 %vm12833_vm3, %v7692_v50  ;;  %v4390_v10 = vpop.f32.mrf.mxu0  ;;  %vm12835_vm3 = vnez %v12753_v39  ;;  %v9315_v50 = vld [vmem:[#allocation8 + $0x208] sm:$0xff]  }
 0x314   : > { %9022 = vmatprep.mubr.bf16.mxu0 %v11370_v26  ;;  %8978 = vmatprep.mubr.msk.bf16.mxu1 %vm12834_vm10, %v7695_v48  ;;  %v11466_v1 = vadd.f32 %v4390_v10, %v4181_v19  ;;  %v4197_v6 = vpop.f32.mrf.mxu1  ;;  %v5849_v26 = vld [vmem:[#allocation2 + $0x87] sm:$0xff]  ;;  %vm12836_vm10 = vnez %v12759_v7 }
 0x315   : > { %9055 = vmatpush3.bf16.msra.mxu1 %v9311_v20  ;;  %v8733_v45 = vpop.f32.mrf.mxu0  ;;  %v7701_v20 = vpack.c.bf16 %v5850_v37, %v5849_v26  ;;  %v5856_v37 = vld [vmem:[#allocation2 + $0xbf] sm:$0xff] }
 0x316   : > { %9056 = vmatprep.subr.bf16.mxu1 %v9312_v27  ;;  %v11468_v59 = vadd.f32 %v8733_v45, %v8685_v22  ;;  %v8689_v32 = vpop.f32.mrf.mxu1  ;;  %v5854_v45 = vld [vmem:[#allocation2 + $0xaf] sm:$0xff] }
 0x317   : > { %v4393_v29 = vpop.f32.mrf.mxu0 }
 0x318   : > { %v11470_v54 = vadd.f32 %v4393_v29, %v4184_v25  ;;  %v4200_v17 = vpop.f32.mrf.mxu1 }
 0x319   : > { %9057 = vmatpush3.bf16.msra.mxu1 %v9312_v27  ;;  %v8736_v19 = vpop.f32.mrf.mxu0 }
 0x31a   : > { %9058 = vmatprep.subr.bf16.mxu1 %v9313_v21  ;;  %v11473_v13 = vadd.f32 %v8736_v19, %v8688_v52  ;;  %v8692_v22 = vpop.f32.mrf.mxu1  ;;  %v5851_v52 = vld [vmem:[#allocation2 + $0x97] sm:$0xff] }
 0x31b   : > { %9023 = vmatmul.mubr.bf16.gmra.mxu0 %v11375_v15  ;;  %8979 = vmatmul.mubr.msk.bf16.gmra.mxu1 %vm12835_vm3, %v7698_v4  ;;  %v4406_v8 = vpop.f32.mrf.mxu0  ;;  %v7704_v7 = vpack.c.bf16 %v5852_v57, %v5851_v52  ;;  %vm12837_vm3 = vnez %v12769_v18 }
 0x31c   : > { %9026 = vmatprep.mubr.bf16.mxu0 %v11383_v62  ;;  %8982 = vmatprep.mubr.msk.bf16.mxu1 %vm12836_vm10, %v7701_v20  ;;  %v11480_v25 = vadd.f32 %v4406_v8, %v4197_v6  ;;  %v4213_v44 = vpop.f32.mrf.mxu1  ;;  %v5853_v62 = vld [vmem:[#allocation2 + $0xa7] sm:$0xff]  ;;  %v9316_v6 = vld [vmem:[#allocation8 + $0x200] sm:$0xff]   ;;  %vm12838_vm10 = vnez %v12775_v3 }
 0x31d   : > { %9059 = vmatpush3.bf16.msra.mxu1 %v9313_v21  ;;  %v8737_v15 = vpop.f32.mrf.mxu0  ;;  %v7707_v41 = vpack.c.bf16 %v5854_v45, %v5853_v62 }
 0x31e   : > { %9060 = vmatprep.subr.bf16.mxu1 %v9314_v36  ;;  %v11482_v27 = vadd.f32 %v8737_v15, %v8689_v32  ;;  %v8693_v60 = vpop.f32.mrf.mxu1 }
 0x31f   : > { %v4409_v48 = vpop.f32.mrf.mxu0 }
 0x320   : > { %v11484_v39 = vadd.f32 %v4409_v48, %v4200_v17  ;;  %v4216_v10 = vpop.f32.mrf.mxu1  ;;  %v6190_v17 = vld [vmem:[#allocation2 + $0xa0] sm:$0xff] }
 0x321   : > { %9061 = vmatpush3.bf16.msra.mxu1 %v9314_v36  ;;  %v6214_v18 = vpack.c.bf16 %v6190_v17, %v11395_v63  ;;  %v12840_v63 = vld [vmem:[#allocation53_spill] sm:$0xff] }
 0x322   : > { %9062 = vmatprep.subr.bf16.mxu1 %v9315_v50  ;;  %v8696_v32 = vpop.f32.mrf.mxu1 }
 0x323   : > { %v8740_v21 = vpop.f32.mrf.mxu0  ;;  %9027 = vmatmul.mubr.bf16.gmra.mxu0 %v11388_v33  ;;  %8983 = vmatmul.mubr.msk.bf16.gmra.mxu1 %vm12837_vm3, %v7704_v7  ;;  %vm12839_vm3 = vnez %v12785_v61 }
 0x324   : > { %v11487_v26 = vadd.f32 %v8740_v21, %v8692_v22  ;;  %9030 = vmatprep.mubr.bf16.mxu0 %v11397_v9  ;;  %8986 = vmatprep.mubr.msk.bf16.mxu1 %vm12838_vm10, %v7707_v41  ;;  %v4229_v4 = vpop.f32.mrf.mxu1  ;;  %v5857_v9 = vld [vmem:[#allocation2 + $0xc7] sm:$0xff]  ;;  %v5855_v22 = vld [vmem:[#allocation2 + $0xb7] sm:$0xff]  ;;  %vm12841_vm10 = vnez %v12840_v63 }
 0x325   : > { %v4422_v29 = vpop.f32.mrf.mxu0  ;;  %9063 = vmatpush3.bf16.msra.mxu1 %v9315_v50  ;;  %v7710_v50 = vpack.c.bf16 %v5856_v37, %v5855_v22  ;;  %v6193_v41 = vld [vmem:[#allocation2 + $0xb8] sm:$0xff] }
 0x326   : > { %v11494_v51 = vadd.f32 %v4422_v29, %v4213_v44  ;;  %9064 = vmatprep.subr.bf16.mxu1 %v9316_v6  ;;  %v8697_v19 = vpop.f32.mrf.mxu1  ;;  %v5858_v44 = vld [vmem:[#allocation2 + $0xcf] sm:$0xff]  ;;  %v5861_v29 = vld [vmem:[#allocation2 + $0xe7] sm:$0xff] }
 0x327   : > { %v8741_v33 = vpop.f32.mrf.mxu0  ;;  %v7713_v57 = vpack.c.bf16 %v5858_v44, %v5857_v9 }
 0x328   : > { %v11496_v36 = vadd.f32 %v8741_v33, %v8693_v60  ;;  %v4232_v3 = vpop.f32.mrf.mxu1  ;;  %v5859_v33 = vld [vmem:[#allocation2 + $0xd7] sm:$0xff] }
 0x329   : > { %v4425_v20 = vpop.f32.mrf.mxu0  ;;  %9065 = vmatpush3.bf16.msra.mxu1 %v9316_v6  ;;  %v5860_v6 = vld [vmem:[#allocation2 + $0xdf] sm:$0xff] }
 0x32a   : > { %v11499_v8 = vadd.f32 %v4425_v20, %v4216_v10  ;;  %v6194_v10 = vld [vmem:[#allocation2 + $0xc0] sm:$0xff]  ;;  %v7716_v9 = vpack.c.bf16 %v5860_v6, %v5859_v33  ;;  %v5862_v20 = vld [vmem:[#allocation2 + $0xef] sm:$0xff] }
 0x32b   : > { %v8744_v15 = vpop.f32.mrf.mxu0  ;;  %9031 = vmatmul.mubr.bf16.gmra.mxu0 %v6214_v18  ;;  %v8700_v60 = vpop.f32.mrf.mxu1  ;;  %8987 = vmatmul.mubr.msk.bf16.gmra.mxu1 %vm12839_vm3, %v7710_v50  ;;  %v6216_v17 = vpack.c.bf16 %v6194_v10, %v6193_v41  ;;  %v6200_v10 = vld [vmem:[#allocation2 + $0xf0] sm:$0xff]  ;;  %v6202_v50 = vld [vmem:[#allocation2 + $0x100] sm:$0xff] }
 0x32c   : > { %v11501_v62 = vadd.f32 %v8744_v15, %v8696_v32  ;;  %9034 = vmatprep.mubr.bf16.mxu0 %v11408_v43  ;;  %8990 = vmatprep.mubr.msk.bf16.mxu1 %vm12841_vm10, %v7713_v57  ;;  %v12843_v15 = vld [vmem:[#allocation55_spill] sm:$0xff]  ;;  %v6219_v33 = vpack.c.bf16 %v6200_v10, %v11428_v14  ;;  %v6201_v10 = vld [vmem:[#allocation2 + $0xf8] sm:$0xff] }
 0x32d   : > { %v4438_v48 = vpop.f32.mrf.mxu0  ;;  %v4245_v7 = vpop.f32.mrf.mxu1  ;;  %vm12844_vm3 = vnez %v12843_v15  ;;  %v6198_v57 = vld [vmem:[#allocation2 + $0xe0] sm:$0xff]  ;;  %v6204_v15 = vld [vmem:[#allocation2 + $0x110] sm:$0xff] }
 0x32e   : > { %v11508_v52 = vadd.f32 %v4438_v48, %v4229_v4  ;;  %v7719_v4 = vpack.c.bf16 %v5862_v20, %v5861_v29 }
 0x32f   : > { %v8745_v45 = vpop.f32.mrf.mxu0  ;;  %v8701_v32 = vpop.f32.mrf.mxu1 }
 0x330   : > { %v11510_v21 = vadd.f32 %v8745_v45, %v8697_v19  ;;  %v5864_v45 = vld [vmem:[#allocation2 + $0xff] sm:$0xff] }
 0x331   : > { %v4441_v43 = vpop.f32.mrf.mxu0  ;;  %v4248_v37 = vpop.f32.mrf.mxu1 }
 0x332   : > { %v11512_v61 = vadd.f32 %v4441_v43, %v4232_v3  ;;  %v5863_v43 = vld [vmem:[#allocation2 + $0xf7] sm:$0xff] }
 0x333   : > { %v8748_v18 = vpop.f32.mrf.mxu0  ;;  %9035 = vmatmul.mubr.bf16.gmra.mxu0 %v6216_v17  ;;  %v8704_v19 = vpop.f32.mrf.mxu1  ;;  %8991 = vmatmul.mubr.msk.bf16.gmra.mxu1 %vm12596_vm14, %v7716_v9  ;;  %v7722_v20 = vpack.c.bf16 %v5864_v45, %v5863_v43  ;;  %vm12845_vm14 = vnez %v12792_v55 }
 0x334   : > { %v11514_v22 = vadd.f32 %v8748_v18, %v8700_v60  ;;  %9038 = vmatprep.mubr.bf16.mxu0 %v11418_v34  ;;  %8994 = vmatprep.mubr.msk.bf16.mxu1 %vm12844_vm3, %v7719_v4  ;;  %v6197_v60 = vld [vmem:[#allocation2 + $0xd8] sm:$0xff] }
 0x335   : > { %v4454_v44 = vpop.f32.mrf.mxu0  ;;  %v4261_v48 = vpop.f32.mrf.mxu1  ;;  %v6218_v29 = vpack.c.bf16 %v6198_v57, %v6197_v60  ;;  %v5867_v57 = vld [vmem:[#allocation2 + $0x117] sm:$0xff] }
 0x336   : > { %v11521_v3 = vadd.f32 %v4454_v44, %v4245_v7  ;;  %v6482_v60 = vld [vmem:[#allocation2 + $0x31] sm:$0xff] }
 0x337   : > { %v8749_v63 = vpop.f32.mrf.mxu0  ;;  %v8705_v41 = vpop.f32.mrf.mxu1 }
 0x338   : > { %v11523_v6 = vadd.f32 %v8749_v63, %v8701_v32  ;;  %v5868_v63 = vld [vmem:[#allocation2 + $0x11f] sm:$0xff] }
 0x339   : > { %v4457_v34 = vpop.f32.mrf.mxu0  ;;  %v4264_v9 = vpop.f32.mrf.mxu1 }
 0x33a   : > { %v11525_v17 = vadd.f32 %v4457_v34, %v4248_v37  ;;  %v6220_v34 = vpack.c.bf16 %v6202_v50, %v6201_v10  ;;  %v6483_v10 = vld [vmem:[#allocation2 + $0x39] sm:$0xff] }
 0x33b   : > { %v8752_v7 = vpop.f32.mrf.mxu0  ;;  %9039 = vmatmul.mubr.bf16.gmra.mxu0 %v6218_v29  ;;  %v8708_v4 = vpop.f32.mrf.mxu1  ;;  %8995 = vmatmul.mubr.msk.bf16.gmra.mxu1 %vm12571_vm4, %v7722_v20  ;;  %v6203_v29 = vld [vmem:[#allocation2 + $0x108] sm:$0xff] }
 0x33c   : > { %v11528_v18 = vadd.f32 %v8752_v7, %v8704_v19  ;;  %9042 = vmatprep.mubr.bf16.mxu0 %v6219_v33  ;;  %8998 = vmatprep.mubr.msk.bf16.mxu1 %vm10011_vm7, %v11355_v12  ;;  %v6221_v53 = vpack.c.bf16 %v6204_v15, %v6203_v29  ;;  %v6481_v33 = vld [vmem:[#allocation2 + $0x29] sm:$0xff]  ;;  %vm12846_vm7 = vnez %v12797_v0 }
 0x33d   : > { %v4470_v32 = vpop.f32.mrf.mxu0  ;;  %v4277_v14 = vpop.f32.mrf.mxu1  ;;  %v7747_v7 = vpack.c.bf16 %v6482_v60, %v6481_v33  ;;  %v6485_v33 = vld [vmem:[#allocation2 + $0x49] sm:$0xff] }
 0x33e   : > { %v11535_v37 = vadd.f32 %v4470_v32, %v4261_v48  ;;  %v7728_v48 = vpack.c.bf16 %v5868_v63, %v5867_v57  ;;  %v9318_v57 = vld [vmem:[#allocation2 + $0x8] sm:$0xff] }
 0x33f   : > { %v8753_v44 = vpop.f32.mrf.mxu0  ;;  %v8709_v45 = vpop.f32.mrf.mxu1  ;;  %v6222_v63 = vpack.c.bf16 %v9318_v57, %v9318_v57 }
 0x340   : > { %v11537_v19 = vadd.f32 %v8753_v44, %v8705_v41 }
 0x341   : > { %v4473_v5 = vpop.f32.mrf.mxu0  ;;  %v4280_v12 = vpop.f32.mrf.mxu1 }
 0x342   : > { %v11539_v43 = vadd.f32 %v4473_v5, %v4264_v9  ;;  %v6484_v5 = vld [vmem:[#allocation2 + $0x41] sm:$0xff] }
 0x343   : > { %v8756_v20 = vpop.f32.mrf.mxu0  ;;  %9043 = vmatmul.mubr.bf16.gmra.mxu0 %v6220_v34  ;;  %v8712_v41 = vpop.f32.mrf.mxu1  ;;  %8999 = vmatmul.mubr.msk.bf16.gmra.mxu1 %vm12573_vm1, %v7728_v48  ;;  %v6486_v34 = vld [vmem:[#allocation2 + $0x51] sm:$0xff]  ;;  %v7750_v48 = vpack.c.bf16 %v6484_v5, %v6483_v10  ;;  %v6488_v5 = vld [vmem:[#allocation2 + $0x61] sm:$0xff] }
 0x344   : > { %v11541_v32 = vadd.f32 %v8756_v20, %v8708_v4  ;;  %9046 = vmatprep.mubr.bf16.mxu0 %v6221_v53  ;;  %9066 = vmatprep.mubr.msk.bf16.mxu1 %vm12845_vm14, %v7747_v7 }
 0x345   : > { %v4486_v44 = vpop.f32.mrf.mxu0  ;;  %v4293_v50 = vpop.f32.mrf.mxu1 }
 0x346   : > { %v11547_v9 = vadd.f32 %v4486_v44, %v4277_v14  ;;  %v7753_v14 = vpack.c.bf16 %v6486_v34, %v6485_v33 }
 0x347   : > { %v8757_v15 = vpop.f32.mrf.mxu0  ;;  %v8713_v4 = vpop.f32.mrf.mxu1 }
 0x348   : > { %v11549_v60 = vadd.f32 %v8757_v15, %v8709_v45 }
 0x349   : > { %v4489_v29 = vpop.f32.mrf.mxu0  ;;  %v4296_v46 = vpop.f32.mrf.mxu1 }
 0x34a   : > { %v11551_v53 = vadd.f32 %v4489_v29, %v4280_v12  ;;  %v6490_v29 = vld [vmem:[#allocation2 + $0x71] sm:$0xff] }
 0x34b   : > { %v8760_v55 = vpop.f32.mrf.mxu0  ;;  %9047 = vmatmul.mubr.bf16.gmra.mxu0 %v6222_v63  ;;  %v8780_v7 = vpop.f32.mrf.mxu1  ;;  %9067 = vmatmul.mubr.msk.bf16.vlgmr.msra.gmra.mxu1 %vm10063_vm0, %v7750_v48  ;;  %v6487_v63 = vld [vmem:[#allocation2 + $0x59] sm:$0xff]  ;;  %vm12848_vm0 = vnez %v12803_v30 }
 0x34c   : > { %v11553_v20 = vadd.f32 %v8760_v55, %v8712_v41  ;;  %v4825_v45 = vadd.f32 %v8780_v7, %v11459_v56  ;;  %9070 = vmatprep.mubr.msk.bf16.mxu1 %vm12826_vm8, %v7753_v14  ;;  %v7756_v23 = vpack.c.bf16 %v6488_v5, %v6487_v63  ;;  %v6489_v55 = vld [vmem:[#allocation2 + $0x69] sm:$0xff]  ;;  %vm12847_vm8 = vnez %v12799_v38  ;;  %v6492_v5 = vld [vmem:[#allocation2 + $0x81] sm:$0xff] }
 0x34d   : > { %v4502_v44 = vpop.f32.mrf.mxu0  ;;  %v4696_v15 = vpop.f32.mrf.mxu1  ;;  %v7759_v7 = vpack.c.bf16 %v6490_v29, %v6489_v55  ;;  %v6494_v29 = vld [vmem:[#allocation2 + $0x91] sm:$0xff] }
 0x34e   : > { %v11560_v12 = vadd.f32 %v4502_v44, %v4293_v50  ;;  %v4823_v10 = vadd.f32 %v4696_v15, %v11466_v1 }
 0x34f   : > { %v8761_v57 = vpop.f32.mrf.mxu0  ;;  %v8781_v34 = vpop.f32.mrf.mxu1 }
 0x350   : > { %v11563_v41 = vadd.f32 %v8761_v57, %v8713_v4  ;;  %v4826_v48 = vadd.f32 %v8781_v34, %v11468_v59 }
 0x351   : > { %v4505_v58 = vpop.f32.mrf.mxu0  ;;  %v4699_v56 = vpop.f32.mrf.mxu1 }
 0x352   : > { %v11566_v33 = vadd.f32 %v4505_v58, %v4296_v46  ;;  %v4824_v14 = vadd.f32 %v4699_v56, %v11470_v54  ;;  %v6491_v54 = vld [vmem:[#allocation2 + $0x79] sm:$0xff] }
 0x353   : > { %v8828_v50 = vpop.f32.mrf.mxu0  ;;  %v8784_v1 = vpop.f32.mrf.mxu1  ;;  %9071 = vmatmul.mubr.msk.bf16.gmra.mxu1 %vm12846_vm7, %v7756_v23  ;;  %v7762_v38 = vpack.c.bf16 %v6492_v5, %v6491_v54  ;;  %v6493_v23 = vld [vmem:[#allocation2 + $0x89] sm:$0xff]  ;;  %v6498_v5 = vld [vmem:[#allocation2 + $0xb1] sm:$0xff] }
 0x354   : > { %v11569_v44 = vadd.f32 %v8828_v50, %v4825_v45  ;;  %v4829_v15 = vadd.f32 %v8784_v1, %v11473_v13  ;;  %9074 = vmatprep.mubr.msk.bf16.mxu1 %vm12847_vm8, %v7759_v7  ;;  %v7765_v50 = vpack.c.bf16 %v6494_v29, %v6493_v23 }
 0x355   : > { %v5034_v4 = vpop.f32.mrf.mxu0  ;;  %v4712_v46 = vpop.f32.mrf.mxu1 }
 0x356   : > { %v11576_v59 = vadd.f32 %v5034_v4, %v4823_v10  ;;  %v4827_v63 = vadd.f32 %v4712_v46, %v11480_v25 }
 0x357   : > { %v8829_v57 = vpop.f32.mrf.mxu0  ;;  %v8785_v34 = vpop.f32.mrf.mxu1 }
 0x358   : > { %v11579_v45 = vadd.f32 %v8829_v57, %v4826_v48  ;;  %v4830_v58 = vadd.f32 %v8785_v34, %v11482_v27  ;;  %v6496_v57 = vld [vmem:[#allocation2 + $0xa1] sm:$0xff] }
 0x359   : > { %v5037_v0 = vpop.f32.mrf.mxu0  ;;  %v4715_v13 = vpop.f32.mrf.mxu1 }
 0x35a   : > { %v11582_v56 = vadd.f32 %v5037_v0, %v4824_v14  ;;  %v4828_v55 = vadd.f32 %v4715_v13, %v11484_v39  ;;  %v6495_v39 = vld [vmem:[#allocation2 + $0x99] sm:$0xff]  ;;  %v6497_v0 = vld [vmem:[#allocation2 + $0xa9] sm:$0xff] }
 0x35b   : > { %v8832_v10 = vpop.f32.mrf.mxu0  ;;  %v8788_v25 = vpop.f32.mrf.mxu1  ;;  %9075 = vmatmul.mubr.msk.bf16.gmra.mxu1 %vm12827_vm2, %v7762_v38  ;;  %v7768_v30 = vpack.c.bf16 %v6496_v57, %v6495_v39  ;;  %v7771_v38 = vpack.c.bf16 %v6498_v5, %v6497_v0  ;;  %vm12849_vm2 = vnez %v12816_v47 }
 0x35c   : > { %v11585_v7 = vadd.f32 %v8832_v10, %v4829_v15  ;;  %v4833_v1 = vadd.f32 %v8788_v25, %v11487_v26  ;;  %9078 = vmatprep.mubr.msk.bf16.mxu1 %vm12848_vm0, %v7765_v50 }
 0x35d   : > { %v5050_v48 = vpop.f32.mrf.mxu0  ;;  %v4728_v14 = vpop.f32.mrf.mxu1 }
 0x35e   : > { %v11592_v27 = vadd.f32 %v5050_v48, %v4827_v63  ;;  %v4831_v46 = vadd.f32 %v4728_v14, %v11494_v51  ;;  %v6500_v48 = vld [vmem:[#allocation2 + $0xc1] sm:$0xff] }
 0x35f   : > { %v8833_v4 = vpop.f32.mrf.mxu0  ;;  %v8789_v54 = vpop.f32.mrf.mxu1 }
 0x360   : > { %v11595_v15 = vadd.f32 %v8833_v4, %v4830_v58  ;;  %v4834_v34 = vadd.f32 %v8789_v54, %v11496_v36  ;;  %v6502_v4 = vld [vmem:[#allocation2 + $0xd1] sm:$0xff]  ;;  %v6501_v54 = vld [vmem:[#allocation2 + $0xc9] sm:$0xff] }
 0x361   : > { %v5053_v24 = vpop.f32.mrf.mxu0  ;;  %v4731_v26 = vpop.f32.mrf.mxu1 }
 0x362   : > { %v11598_v29 = vadd.f32 %v5053_v24, %v4828_v55  ;;  %v4832_v13 = vadd.f32 %v4731_v26, %v11499_v8  ;;  %v6499_v8 = vld [vmem:[#allocation2 + $0xb9] sm:$0xff]  ;;  %v7777_v24 = vpack.c.bf16 %v6502_v4, %v6501_v54 }
 0x363   : > { %v8836_v63 = vpop.f32.mrf.mxu0  ;;  %v8792_v51 = vpop.f32.mrf.mxu1  ;;  %9079 = vmatmul.mubr.msk.bf16.gmra.mxu1 %vm12808_vm15, %v7768_v30  ;;  %v7774_v42 = vpack.c.bf16 %v6500_v48, %v6499_v8  ;;  %v6505_v8 = vld [vmem:[#allocation2 + $0xe9] sm:$0xff] }
 0x364   : > { %v11601_v23 = vadd.f32 %v8836_v63, %v4833_v1  ;;  %v4837_v10 = vadd.f32 %v8792_v51, %v11501_v62  ;;  %9082 = vmatprep.mubr.msk.bf16.mxu1 %vm12829_vm11, %v7771_v38  ;;  %v6504_v38 = vld [vmem:[#allocation2 + $0xe1] sm:$0xff] }
 0x365   : > { %v5066_v58 = vpop.f32.mrf.mxu0  ;;  %v4744_v55 = vpop.f32.mrf.mxu1 }
 0x366   : > { %v11608_v36 = vadd.f32 %v5066_v58, %v4831_v46  ;;  %v4835_v25 = vadd.f32 %v4744_v55, %v11508_v52 }
 0x367   : > { %v8837_v50 = vpop.f32.mrf.mxu0  ;;  %v8793_v14 = vpop.f32.mrf.mxu1 }
 0x368   : > { %v11611_v1 = vadd.f32 %v8837_v50, %v4834_v34  ;;  %v4838_v39 = vadd.f32 %v8793_v14, %v11510_v21 }
 0x369   : > { %v5069_v49 = vpop.f32.mrf.mxu0  ;;  %v4747_v62 = vpop.f32.mrf.mxu1 }
 0x36a   : > { %v11614_v57 = vadd.f32 %v5069_v49, %v4832_v13  ;;  %v4836_v5 = vadd.f32 %v4747_v62, %v11512_v61  ;;  %v6503_v61 = vld [vmem:[#allocation2 + $0xd9] sm:$0xff] }
 0x36b   : > { %v8840_v46 = vpop.f32.mrf.mxu0  ;;  %v8796_v52 = vpop.f32.mrf.mxu1  ;;  %9083 = vmatmul.mubr.msk.bf16.gmra.mxu1 %vm12813_vm13, %v7774_v42  ;;  %v7780_v16 = vpack.c.bf16 %v6504_v38, %v6503_v61  ;;  %v6512_v38 = vld [vmem:[#allocation2 + $0x121] sm:$0xff] }
 0x36c   : > { %v11617_v26 = vadd.f32 %v8840_v46, %v4837_v10  ;;  %v4841_v30 = vadd.f32 %v8796_v52, %v11514_v22  ;;  %9086 = vmatprep.mubr.msk.bf16.mxu1 %vm12815_vm9, %v7777_v24  ;;  %v6506_v10 = vld [vmem:[#allocation2 + $0xf1] sm:$0xff]  ;;  %v6508_v46 = vld [vmem:[#allocation2 + $0x101] sm:$0xff] }
 0x36d   : > { %v5082_v34 = vpop.f32.mrf.mxu0  ;;  %v4760_v0 = vpop.f32.mrf.mxu1  ;;  %v7783_v14 = vpack.c.bf16 %v6506_v10, %v6505_v8 }
 0x36e   : > { %v11624_v21 = vadd.f32 %v5082_v34, %v4835_v25  ;;  %v4839_v13 = vadd.f32 %v4760_v0, %v11521_v3 }
 0x36f   : > { %v8841_v63 = vpop.f32.mrf.mxu0  ;;  %v8797_v58 = vpop.f32.mrf.mxu1 }
 0x370   : > { %v11627_v51 = vadd.f32 %v8841_v63, %v4838_v39  ;;  %v4842_v55 = vadd.f32 %v8797_v58, %v11523_v6 }
 0x371   : > { %v5085_v40 = vpop.f32.mrf.mxu0  ;;  %v4763_v22 = vpop.f32.mrf.mxu1 }
 0x372   : > { %v11630_v50 = vadd.f32 %v5085_v40, %v4836_v5  ;;  %v4840_v48 = vadd.f32 %v4763_v22, %v11525_v17  ;;  %v6507_v17 = vld [vmem:[#allocation2 + $0xf9] sm:$0xff] }
 0x373   : > { %v8844_v25 = vpop.f32.mrf.mxu0  ;;  %v8800_v3 = vpop.f32.mrf.mxu1  ;;  %9087 = vmatmul.mubr.msk.bf16.gmra.mxu1 %vm12849_vm2, %v7780_v16 }
 0x374   : > { %v11633_v4 = vadd.f32 %v8844_v25, %v4841_v30  ;;  %v4845_v39 = vadd.f32 %v8800_v3, %v11528_v18  ;;  %9090 = vmatprep.mubr.msk.bf16.mxu1 %vm12819_vm5, %v7783_v14  ;;  %v7786_v30 = vpack.c.bf16 %v6508_v46, %v6507_v17  ;;  %vm12850_vm5 = vnez %v12822_v31 }
 0x375   : > { %v5098_v49 = vpop.f32.mrf.mxu0  ;;  %v4776_v62 = vpop.f32.mrf.mxu1 }
 0x376   : > { %v11640_v6 = vadd.f32 %v5098_v49, %v4839_v13  ;;  %v4843_v54 = vadd.f32 %v4776_v62, %v11535_v37 }
 0x377   : > { %v8845_v42 = vpop.f32.mrf.mxu0  ;;  %v8801_v24 = vpop.f32.mrf.mxu1 }
 0x378   : > { %v11643_v5 = vadd.f32 %v8845_v42, %v4842_v55  ;;  %v4846_v47 = vadd.f32 %v8801_v24, %v11537_v19  ;;  %v6511_v19 = vld [vmem:[#allocation2 + $0x119] sm:$0xff] }
 0x379   : > { %v5101_v52 = vpop.f32.mrf.mxu0  ;;  %v4779_v18 = vpop.f32.mrf.mxu1  ;;  %v7792_v28 = vpack.c.bf16 %v6512_v38, %v6511_v19 }
 0x37a   : > { %v11646_v34 = vadd.f32 %v5101_v52, %v4840_v48  ;;  %v4844_v0 = vadd.f32 %v4779_v18, %v11539_v43 }
 0x37b   : > { %v8848_v35 = vpop.f32.mrf.mxu0  ;;  %v8804_v13 = vpop.f32.mrf.mxu1  ;;  %9091 = vmatmul.mubr.msk.bf16.gmra.mxu1 %vm12821_vm6, %v7786_v30 }
 0x37c   : > { %v11649_v63 = vadd.f32 %v8848_v35, %v4845_v39  ;;  %v4849_v61 = vadd.f32 %v8804_v13, %v11541_v32  ;;  %9094 = vmatprep.mubr.msk.bf16.mxu1 %vm12850_vm5, %v11448_v2 }
 0x37d   : > { %v5114_v37 = vpop.f32.mrf.mxu0  ;;  %v4792_v10 = vpop.f32.mrf.mxu1 }
 0x37e   : > { %v11657_v58 = vadd.f32 %v5114_v37, %v4843_v54  ;;  %v4847_v43 = vadd.f32 %v4792_v10, %v11547_v9 }
 0x37f   : > { %v8849_v40 = vpop.f32.mrf.mxu0  ;;  %v8805_v22 = vpop.f32.mrf.mxu1 }
 0x380   : > { %v11660_v55 = vadd.f32 %v8849_v40, %v4846_v47  ;;  %v4850_v8 = vadd.f32 %v8805_v22, %v11549_v60 }
 0x381   : > { %v5117_v16 = vpop.f32.mrf.mxu0  ;;  %v4795_v25 = vpop.f32.mrf.mxu1 }
 0x382   : > { %v11663_v32 = vadd.f32 %v5117_v16, %v4844_v0  ;;  %v4848_v2 = vadd.f32 %v4795_v25, %v11551_v53 }
 0x383   : > { %v8852_v31 = vpop.f32.mrf.mxu0  ;;  %v8808_v14 = vpop.f32.mrf.mxu1  ;;  %9095 = vmatmul.mubr.msk.bf16.gmra.mxu1 %vm12825_vm12, %v7792_v28 }
 0x384   : > { %v11666_v48 = vadd.f32 %v8852_v31, %v4849_v61  ;;  %v4853_v3 = vadd.f32 %v8808_v14, %v11553_v20 }
 0x385   : > { %v5130_v9 = vpop.f32.mrf.mxu0  ;;  %v4808_v39 = vpop.f32.mrf.mxu1 }
 0x386   : > { %v11671_v49 = vadd.f32 %v5130_v9, %v4847_v43  ;;  %v4851_v60 = vadd.f32 %v4808_v39, %v11560_v12 }
 0x387   : > { %v8853_v62 = vpop.f32.mrf.mxu0  ;;  %v8809_v54 = vpop.f32.mrf.mxu1 }
 0x388   : > { %v11674_v42 = vadd.f32 %v8853_v62, %v4850_v8  ;;  %v4854_v53 = vadd.f32 %v8809_v54, %v11563_v41 }
 0x389   : > { %v5133_v17 = vpop.f32.mrf.mxu0  ;;  %v4811_v24 = vpop.f32.mrf.mxu1 }
 0x38a   : > { %v11677_v46 = vadd.f32 %v5133_v17, %v4848_v2  ;;  %v4852_v52 = vadd.f32 %v4811_v24, %v11566_v33 }
 0x38b   : > { %v8856_v11 = vpop.f32.mrf.mxu0  ;;  %v8876_v20 = vpop.f32.mrf.mxu1 }
 0x38c   : > { %v11680_v47 = vadd.f32 %v8856_v11, %v4853_v3  ;;  %v11683_v30 = vadd.f32 %v8876_v20, %v11569_v44 }
 0x38d   : > { %v5146_v18 = vpop.f32.mrf.mxu0  ;;  %v5340_v35 = vpop.f32.mrf.mxu1 }
 0x38e   : > { %v11685_v12 = vadd.f32 %v5146_v18, %v4851_v60  ;;  %v11688_v13 = vadd.f32 %v5340_v35, %v11576_v59 }
 0x38f   : > { %v8857_v0 = vpop.f32.mrf.mxu0  ;;  %v8877_v37 = vpop.f32.mrf.mxu1 }
 0x390   : > { %v11690_v41 = vadd.f32 %v8857_v0, %v4854_v53  ;;  %v11693_v33 = vadd.f32 %v8877_v37, %v11579_v45 }
 0x391   : > { %v5149_v61 = vpop.f32.mrf.mxu0  ;;  %v5343_v38 = vpop.f32.mrf.mxu1 }
 0x392   : > { %v11695_v19 = vadd.f32 %v5149_v61, %v4852_v52  ;;  %v11700_v44 = vadd.f32 %v5343_v38, %v11582_v56 }
 0x393   : > { %v11697_v10 = vpop.f32.mrf.mxu0  ;;  %v8880_v40 = vpop.f32.mrf.mxu1 }
 0x394   : > { %v11705_v59 = vadd.f32 %v8880_v40, %v11585_v7 }
 0x395   : > { %v11702_v43 = vpop.f32.mrf.mxu0  ;;  %v5356_v22 = vpop.f32.mrf.mxu1 }
 0x396   : > { %v11710_v45 = vadd.f32 %v5356_v22, %v11592_v27 }
 0x397   : > { %v11707_v28 = vpop.f32.mrf.mxu0  ;;  %v8881_v16 = vpop.f32.mrf.mxu1 }
 0x398   : > { %v11715_v25 = vadd.f32 %v8881_v16, %v11595_v15 }
 0x399   : > { %v11712_v8 = vpop.f32.mrf.mxu0  ;;  %v5359_v56 = vpop.f32.mrf.mxu1 }
 0x39a   : > { %v11720_v2 = vadd.f32 %v5359_v56, %v11598_v29 }
 0x39b   : > { %v11717_v31 = vpop.f32.mrf.mxu0  ;;  %v8884_v7 = vpop.f32.mrf.mxu1 }
 0x39c   : > { %v11725_v9 = vadd.f32 %v8884_v7, %v11601_v23 }
 0x39d   : > { %v11722_v14 = vpop.f32.mrf.mxu0  ;;  %v5372_v27 = vpop.f32.mrf.mxu1 }
 0x39e   : > { %v11730_v39 = vadd.f32 %v5372_v27, %v11608_v36 }
 0x39f   : > { %v11727_v3 = vpop.f32.mrf.mxu0  ;;  %v8885_v15 = vpop.f32.mrf.mxu1 }
 0x3a0   : > { %v11735_v60 = vadd.f32 %v8885_v15, %v11611_v1 }
 0x3a1   : > { %v11732_v62 = vpop.f32.mrf.mxu0  ;;  %v5375_v29 = vpop.f32.mrf.mxu1 }
 0x3a2   : > { %v11740_v17 = vadd.f32 %v5375_v29, %v11614_v57 }
 0x3a3   : > { %v11737_v54 = vpop.f32.mrf.mxu0  ;;  %v8888_v23 = vpop.f32.mrf.mxu1 }
 0x3a4   : > { %v11745_v24 = vadd.f32 %v8888_v23, %v11617_v26 }
 0x3a5   : > { %v11742_v53 = vpop.f32.mrf.mxu0  ;;  %v5388_v36 = vpop.f32.mrf.mxu1 }
 0x3a6   : > { %v11750_v52 = vadd.f32 %v5388_v36, %v11624_v21 }
 0x3a7   : > { %v11747_v11 = vpop.f32.mrf.mxu0  ;;  %v8889_v1 = vpop.f32.mrf.mxu1 }
 0x3a8   : > { %v11755_v18 = vadd.f32 %v8889_v1, %v11627_v51 }
 0x3a9   : > { %v11752_v20 = vpop.f32.mrf.mxu0  ;;  %v5391_v57 = vpop.f32.mrf.mxu1 }
 0x3aa   : > { %12851 = vst [vmem:[#allocation78_spill] sm:$0xff] %v11755_v18  ;;  %v11760_v0 = vadd.f32 %v5391_v57, %v11630_v50 }
 0x3ab   : > { %v11757_v35 = vpop.f32.mrf.mxu0  ;;  %v8892_v26 = vpop.f32.mrf.mxu1 }
 0x3ac   : > { %12852 = vst [vmem:[#allocation79_spill] sm:$0xff] %v11760_v0  ;;  %v11765_v61 = vadd.f32 %v8892_v26, %v11633_v4 }
 0x3ad   : > { %v11762_v37 = vpop.f32.mrf.mxu0  ;;  %v5404_v21 = vpop.f32.mrf.mxu1 }
 0x3ae   : > { %12853 = vst [vmem:[#allocation80_spill] sm:$0xff] %v11765_v61  ;;  %v11770_v40 = vadd.f32 %v5404_v21, %v11640_v6 }
 0x3af   : > { %v11767_v38 = vpop.f32.mrf.mxu0  ;;  %v8893_v51 = vpop.f32.mrf.mxu1 }
 0x3b0   : > { %12854 = vst [vmem:[#allocation77_spill] sm:$0xff] %v11767_v38  ;;  %12855 = vst [vmem:[#allocation81_spill] sm:$0xff] %v11770_v40  ;;  %v11775_v16 = vadd.f32 %v8893_v51, %v11643_v5 }
 0x3b1   : > { %v11772_v22 = vpop.f32.mrf.mxu0  ;;  %v5407_v50 = vpop.f32.mrf.mxu1 }
 0x3b2   : > { %12856 = vst [vmem:[#allocation82_spill] sm:$0xff] %v11772_v22  ;;  %12857 = vst [vmem:[#allocation83_spill] sm:$0xff] %v11775_v16  ;;  %v11780_v7 = vadd.f32 %v5407_v50, %v11646_v34 }
 0x3b3   : > { %v11777_v56 = vpop.f32.mrf.mxu0  ;;  %v8896_v4 = vpop.f32.mrf.mxu1 }
 0x3b4   : > { %12858 = vst [vmem:[#allocation84_spill] sm:$0xff] %v11777_v56  ;;  %12859 = vst [vmem:[#allocation85_spill] sm:$0xff] %v11780_v7  ;;  %v11785_v15 = vadd.f32 %v8896_v4, %v11649_v63 }
 0x3b5   : > { %v11782_v27 = vpop.f32.mrf.mxu0  ;;  %v5420_v6 = vpop.f32.mrf.mxu1 }
 0x3b6   : > { %12860 = vst [vmem:[#allocation89_spill] sm:$0xff] %v11782_v27  ;;  %12861 = vst [vmem:[#allocation132_spill] sm:$0xff] %v11785_v15  ;;  %v11790_v23 = vadd.f32 %v5420_v6, %v11657_v58 }
 0x3b7   : > { %v11787_v29 = vpop.f32.mrf.mxu0  ;;  %v8897_v5 = vpop.f32.mrf.mxu1 }
 0x3b8   : > { %12862 = vst [vmem:[#allocation137_spill] sm:$0xff] %v11787_v29  ;;  %12863 = vst [vmem:[#allocation86_spill] sm:$0xff] %v11790_v23  ;;  %v11795_v1 = vadd.f32 %v8897_v5, %v11660_v55 }
 0x3b9   : > { %v11792_v36 = vpop.f32.mrf.mxu0  ;;  %v5423_v34 = vpop.f32.mrf.mxu1 }
 0x3ba   : > { %12864 = vst [vmem:[#allocation90_spill] sm:$0xff] %v11792_v36  ;;  %12865 = vst [vmem:[#allocation91_spill] sm:$0xff] %v11795_v1  ;;  %v11800_v26 = vadd.f32 %v5423_v34, %v11663_v32 }
 0x3bb   : > { %v11797_v57 = vpop.f32.mrf.mxu0  ;;  %v8900_v63 = vpop.f32.mrf.mxu1 }
 0x3bc   : > { %12866 = vst [vmem:[#allocation133_spill] sm:$0xff] %v11797_v57  ;;  %12867 = vst [vmem:[#allocation96_spill] sm:$0xff] %v11800_v26  ;;  %v11805_v51 = vadd.f32 %v8900_v63, %v11666_v48 }
 0x3bd   : > { %v11802_v21 = vpop.f32.mrf.mxu0  ;;  %v5436_v58 = vpop.f32.mrf.mxu1 }
 0x3be   : > { %12868 = vst [vmem:[#allocation140_spill] sm:$0xff] %v11802_v21  ;;  %12869 = vst [vmem:[#allocation92_spill] sm:$0xff] %v11805_v51  ;;  %v11810_v4 = vadd.f32 %v5436_v58, %v11671_v49 }
 0x3bf   : > { %v11807_v50 = vpop.f32.mrf.mxu0  ;;  %v8901_v55 = vpop.f32.mrf.mxu1 }
 0x3c0   : > { %12870 = vst [vmem:[#allocation93_spill] sm:$0xff] %v11807_v50  ;;  %12871 = vst [vmem:[#allocation97_spill] sm:$0xff] %v11810_v4  ;;  %v11815_v5 = vadd.f32 %v8901_v55, %v11674_v42 }
 0x3c1   : > { %v11812_v6 = vpop.f32.mrf.mxu0  ;;  %v5439_v32 = vpop.f32.mrf.mxu1 }
 0x3c2   : > { %12872 = vst [vmem:[#allocation143_spill] sm:$0xff] %v11812_v6  ;;  %12873 = vst [vmem:[#allocation134_spill] sm:$0xff] %v11815_v5  ;;  %v11820_v26 = vadd.f32 %v5439_v32, %v11677_v46 }
 0x3c3   : > { %v11817_v34 = vpop.f32.mrf.mxu0  ;;  %v8904_v48 = vpop.f32.mrf.mxu1 }
 0x3c4   : > { %12874 = vst [vmem:[#allocation87_spill] sm:$0xff] %v11817_v34  ;;  %12875 = vst [vmem:[#allocation94_spill] sm:$0xff] %v11820_v26  ;;  %v11825_v51 = vadd.f32 %v8904_v48, %v11680_v47 }
 0x3c5   : > { %v11822_v63 = vpop.f32.mrf.mxu0  ;;  %v5452_v49 = vpop.f32.mrf.mxu1 }
 0x3c6   : > { %12876 = vst [vmem:[#allocation95_spill] sm:$0xff] %v11822_v63  ;;  %12877 = vst [vmem:[#allocation135_spill] sm:$0xff] %v11825_v51  ;;  %v11830_v4 = vadd.f32 %v5452_v49, %v11685_v12 }
 0x3c7   : > { %v11827_v58 = vpop.f32.mrf.mxu0  ;;  %v8905_v42 = vpop.f32.mrf.mxu1 }
 0x3c8   : > { %12878 = vst [vmem:[#allocation98_spill] sm:$0xff] %v11827_v58  ;;  %12879 = vst [vmem:[#allocation136_spill] sm:$0xff] %v11830_v4  ;;  %v11835_v5 = vadd.f32 %v8905_v42, %v11690_v41 }
 0x3c9   : > { %v11832_v55 = vpop.f32.mrf.mxu0  ;;  %v5455_v46 = vpop.f32.mrf.mxu1 }
 0x3ca   : > { %12880 = vst [vmem:[#allocation148_spill] sm:$0xff] %v11832_v55  ;;  %12881 = vst [vmem:[#allocation30_spill] sm:$0xff] %v11835_v5  ;;  %v11840_v26 = vadd.f32 %v5455_v46, %v11695_v19 }
 0x3cb   : > { %v11837_v32 = vpop.f32.mrf.mxu0  ;;  %v8972_v47 = vpop.f32.mrf.mxu1 }
 0x3cc   : > { %12882 = vst [vmem:[#allocation99_spill] sm:$0xff] %v11837_v32  ;;  %12883 = vst [vmem:[#allocation100_spill] sm:$0xff] %v11840_v26 }
 0x3cd   : > { %v11842_v48 = vpop.f32.mrf.mxu0  ;;  %v6016_v51 = vpop.f32.mrf.mxu1 }
 0x3ce   : > { %12884 = vst [vmem:[#allocation105_spill] sm:$0xff] %v11842_v48 }
 0x3cf   : > { %v11844_v58 = vpop.f32.mrf.mxu0  ;;  %v8973_v12 = vpop.f32.mrf.mxu1 }
 0x3d0   : > { %12885 = vst [vmem:[#allocation138_spill] sm:$0xff] %v11844_v58 }
 0x3d1   : > { %v11846_v49 = vpop.f32.mrf.mxu0  ;;  %v6019_v4 = vpop.f32.mrf.mxu1 }
 0x3d2   : > { %12886 = vst [vmem:[#allocation33_spill] sm:$0xff] %v11846_v49 }
 0x3d3   : > { %v9020_v55 = vpop.f32.mrf.mxu0  ;;  %v11848_v63 = vpop.f32.mrf.mxu1 }
 0x3d5   : > { %v6322_v41 = vpop.f32.mrf.mxu0  ;;  %v11850_v42 = vpop.f32.mrf.mxu1 }
 0x3d7   : > { %v9021_v5 = vpop.f32.mrf.mxu0  ;;  %v11852_v32 = vpop.f32.mrf.mxu1 }
 0x3d9   : > { %v6325_v19 = vpop.f32.mrf.mxu0  ;;  %v11854_v46 = vpop.f32.mrf.mxu1 }
 0x3db   : > { %v11856_v26 = vpop.f32.mrf.mxu0  ;;  %v11858_v48 = vpop.f32.mrf.mxu1 }
 0x3dd   : > { %v11860_v58 = vpop.f32.mrf.mxu0  ;;  %v11862_v49 = vpop.f32.mrf.mxu1 }
 0x3df   : > { %v11864_v34 = vpop.f32.mrf.mxu1  ;;  %v11866_v6 = vpop.f32.mrf.mxu0 }
 0x3e1   : > { %v11868_v50 = vpop.f32.mrf.mxu1  ;;  %v11872_v21 = vpop.f32.mrf.mxu0 }
 0x3e3   : > { %v11870_v1 = vpop.f32.mrf.mxu1  ;;  %v11878_v15 = vpop.f32.mrf.mxu0 }
 0x3e5   : > { %v11874_v23 = vpop.f32.mrf.mxu1  ;;  %v11884_v29 = vpop.f32.mrf.mxu0 }
 0x3e6   : > { %12887 = vst [vmem:[#allocation151_spill] sm:$0xff] %v11874_v23 }
 0x3e7   : > { %v11876_v57 = vpop.f32.mrf.mxu1  ;;  %v11890_v40 = vpop.f32.mrf.mxu0 }
 0x3e8   : > { %12888 = vst [vmem:[#allocation101_spill] sm:$0xff] %v11876_v57 }
 0x3e9   : > { %v11880_v36 = vpop.f32.mrf.mxu1  ;;  %v11896_v22 = vpop.f32.mrf.mxu0 }
 0x3ea   : > { %12889 = vst [vmem:[#allocation102_spill] sm:$0xff] %v11880_v36 }
 0x3eb   : > { %v11882_v7 = vpop.f32.mrf.mxu1  ;;  %v11902_v36 = vpop.f32.mrf.mxu0 }
 0x3ec   : > { %12890 = vst [vmem:[#allocation154_spill] sm:$0xff] %v11882_v7  ;;  %12897 = vst [vmem:[#allocation142_spill] sm:$0xff] %v11902_v36 }
 0x3ed   : > { %v11886_v16 = vpop.f32.mrf.mxu1 }
 0x3ee   : > { %12891 = vst [vmem:[#allocation139_spill] sm:$0xff] %v11886_v16  ;;  %v11908_v16 = vpop.f32.mrf.mxu0 }
 0x3ef   : > { %v11888_v27 = vpop.f32.mrf.mxu1  ;;  %12900 = vst [vmem:[#allocation108_spill] sm:$0xff] %v11908_v16 }
 0x3f0   : > { %12892 = vst [vmem:[#allocation122_spill] sm:$0xff] %v11888_v27 }
 0x3f1   : > { %v11892_v56 = vpop.f32.mrf.mxu1 }
 0x3f2   : > { %12893 = vst [vmem:[#allocation103_spill] sm:$0xff] %v11892_v56  ;;  %v11914_v56 = vpop.f32.mrf.mxu0 }
 0x3f3   : > { %v11894_v61 = vpop.f32.mrf.mxu1  ;;  %12903 = vst [vmem:[#allocation39_spill] sm:$0xff] %v11914_v56 }
 0x3f4   : > { %12894 = vst [vmem:[#allocation104_spill] sm:$0xff] %v11894_v61 }
 0x3f5   : > { %v11898_v57 = vpop.f32.mrf.mxu1 }
 0x3f6   : > { %12895 = vst [vmem:[#allocation106_spill] sm:$0xff] %v11898_v57  ;;  %v11920_v57 = vpop.f32.mrf.mxu0 }
 0x3f7   : > { %v11900_v0 = vpop.f32.mrf.mxu1  ;;  %12906 = vst [vmem:[#allocation145_spill] sm:$0xff] %v11920_v57 }
 0x3f8   : > { %12896 = vst [vmem:[#allocation141_spill] sm:$0xff] %v11900_v0 }
 0x3f9   : > { %v11904_v7 = vpop.f32.mrf.mxu1 }
 0x3fa   : > { %12898 = vst [vmem:[#allocation36_spill] sm:$0xff] %v11904_v7  ;;  %v5807_v7 = vadd.f32 %v11697_v10, %v11683_v30  ;;  %v11939_v30 = vld [vmem:[%s12224_s4] ss:$0 sm:$0xff]  ;;  %v5806_v10 = vadd.f32 %v11712_v8, %v11700_v44 }
 0x3fb   : > { %v11906_v23 = vpop.f32.mrf.mxu1 }
 0x3fc   : > { %12899 = vst [vmem:[#allocation107_spill] sm:$0xff] %v11906_v23  ;;  %v6145_v16 = vadd.f32 %v8972_v47, %v5807_v7 }
 0x3fd   : > { %v11910_v27 = vpop.f32.mrf.mxu1 }
 0x3fe   : > { %12901 = vst [vmem:[#allocation113_spill] sm:$0xff] %v11910_v27  ;;  %v5805_v27 = vadd.f32 %v11702_v43, %v11688_v13 }
 0x3ff   : > { %v11912_v38 = vpop.f32.mrf.mxu1 }
 0x400   : > { %12902 = vst [vmem:[#allocation144_spill] sm:$0xff] %v11912_v38  ;;  %v11930_v38 = vpop.f32.mrf.mxu0  ;;  %v6143_v57 = vadd.f32 %v6016_v51, %v5805_v27 }
 0x401   : > { %v11916_v61 = vpop.f32.mrf.mxu1 }
 0x402   : > { %12904 = vst [vmem:[#allocation109_spill] sm:$0xff] %v11916_v61  ;;  %v6451_v61 = vadd.f32 %v9020_v55, %v6145_v16  ;;  %v6449_v13 = vadd.f32 %v6322_v41, %v6143_v57  ;;  %v11943_v7 = vpop.f32.mrf.mxu0  ;;  %v6144_v16 = vadd.f32 %v6019_v4, %v5806_v10  ;;  %v5809_v55 = vadd.f32 %v11722_v14, %v11710_v45  ;;  %v12909_v57 = vld [vmem:[#allocation16_spill] sm:$0xff] }
 0x403   : > { %v11918_v18 = vpop.f32.mrf.mxu1 }
 0x404   : > { %12905 = vst [vmem:[#allocation110_spill] sm:$0xff] %v11918_v18  ;;  %v5808_v18 = vadd.f32 %v11707_v28, %v11693_v33  ;;  %v6450_v8 = vadd.f32 %v6325_v19, %v6144_v16  ;;  %v5810_v19 = vadd.f32 %v11732_v62, %v11720_v2  ;;  %v5815_v62 = vadd.f32 %v11737_v54, %v11725_v9 }
 0x405   : > { %v11922_v0 = vpop.f32.mrf.mxu1 }
 0x406   : > { %v6146_v43 = vadd.f32 %v8973_v12, %v5808_v18  ;;  %v11951_v18 = vpop.f32.mrf.mxu0  ;;  %v6153_v9 = vadd.f32 %v11858_v48, %v5815_v62 }
 0x407   : > { %v11926_v23 = vpop.f32.mrf.mxu1 }
 0x408   : > { %12907 = vst [vmem:[#allocation111_spill] sm:$0xff] %v11926_v23  ;;  %v6452_v28 = vadd.f32 %v9021_v5, %v6146_v43  ;;  %v6147_v5 = vadd.f32 %v11850_v42, %v5809_v55  ;;  %v5813_v55 = vadd.f32 %v11742_v53, %v11730_v39  ;;  %v6459_v39 = vadd.f32 %v11878_v15, %v6153_v9 }
 0x409   : > { %v11932_v56 = vpop.f32.mrf.mxu1 }
 0x40a   : > { %12908 = vst [vmem:[#allocation112_spill] sm:$0xff] %v11932_v56  ;;  %v5811_v56 = vadd.f32 %v11717_v31, %v11705_v59  ;;  %v6453_v10 = vadd.f32 %v11860_v58, %v6147_v5  ;;  %v6151_v53 = vadd.f32 %v11862_v49, %v5813_v55 }
 0x40b   : > { %v9068_v36 = vpop.f32.mrf.mxu1 }
 0x40c   : > { %v6789_v47 = vadd.f32 %v9068_v36, %v6451_v61  ;;  %v6149_v23 = vadd.f32 %v11848_v63, %v5811_v56  ;;  %v5812_v36 = vadd.f32 %v11727_v3, %v11715_v25  ;;  %v12910_v56 = vld [vmem:[#allocation14_spill] sm:$0xff]  ;;  %v11965_v25 = vpop.f32.mrf.mxu0 }
 0x40d   : > { %v6660_v33 = vpop.f32.mrf.mxu1 }
 0x40e   : > { %v6828_v27 = vadd.f32 %v11939_v30, %v6789_v47  ;;  %v6787_v51 = vadd.f32 %v6660_v33, %v6449_v13  ;;  %v6455_v4 = vadd.f32 %v11856_v26, %v6149_v23  ;;  %v6150_v13 = vadd.f32 %v11852_v32, %v5812_v36  ;;  %v12911_v23 = vld [vmem:[#allocation17_spill] sm:$0xff]  ;;  %v12914_v36 = vld [vmem:[#allocation18_spill] sm:$0xff] }
 0x40f   : > { %v9069_v44 = vpop.f32.mrf.mxu1  ;;  %v6148_v32 = vadd.f32 %v11854_v46, %v5810_v19 }
 0x410   : > { %v6860_v61 = vadd.f32 %v6828_v27, %v12909_v57  ;;  %v6826_v59 = vadd.f32 %v11939_v30, %v6787_v51  ;;  %v6790_v31 = vadd.f32 %v9069_v44, %v6452_v28  ;;  %v6456_v58 = vadd.f32 %v11866_v6, %v6150_v13  ;;  %v12912_v28 = vld [vmem:[#allocation15_spill] sm:$0xff]  ;;  %v11985_v6 = vpop.f32.mrf.mxu0 }
 0x411   : > { %v6663_v45 = vpop.f32.mrf.mxu1  ;;  %v6454_v44 = vadd.f32 %v11872_v21, %v6148_v32  ;;  %v12916_v13 = vld [vmem:[#allocation19_spill] sm:$0xff] }
 0x412   : > { %v6892_v14 = vmax.f32 %v6860_v61, 0.0  ;;  %v6858_v63 = vadd.f32 %v6826_v59, %v12910_v56  ;;  %v6829_v12 = vadd.f32 %v11939_v30, %v6790_v31  ;;  %v6788_v41 = vadd.f32 %v6663_v45, %v6450_v8  ;;  %v12913_v8 = vld [vmem:[#allocation20_spill] sm:$0xff]  ;;  %v12001_v15 = vpop.f32.mrf.mxu0 }
 0x413   : > { %v9072_v43 = vpop.f32.mrf.mxu1  ;;  %v5816_v31 = vadd.f32 %v11747_v11, %v11735_v60  ;;  %v6457_v56 = vadd.f32 %v11884_v29, %v6151_v53 }
 0x414   : > { %6924 = vst [vmem:[%s11969_s11 + $0x10] sm:$0xff] %v6892_v14  ;;  %v6890_v3 = vmax.f32 %v6858_v63, 0.0  ;;  %v6861_v26 = vadd.f32 %v6829_v12, %v12911_v23  ;;  %v6827_v42 = vadd.f32 %v11939_v30, %v6788_v41  ;;  %v6793_v2 = vadd.f32 %v9072_v43, %v6455_v4  ;;  %v12915_v63 = vld [vmem:[#allocation21_spill] sm:$0xff] }
 0x415   : > { %v6676_v47 = vpop.f32.mrf.mxu1  ;;  %v5814_v14 = vadd.f32 %v11752_v20, %v11740_v17  ;;  %v6154_v60 = vadd.f32 %v11864_v34, %v5816_v31 }
 0x416   : > { %6922 = vst [vmem:[%s11969_s11] sm:$0xff] %v6890_v3  ;;  %v6893_v33 = vmax.f32 %v6861_v26, 0.0  ;;  %v6859_v16 = vadd.f32 %v6827_v42, %v12912_v28  ;;  %v6832_v27 = vadd.f32 %v11939_v30, %v6793_v2  ;;  %v6791_v51 = vadd.f32 %v6676_v47, %v6453_v10  ;;  %v12917_v2 = vld [vmem:[#allocation24_spill] sm:$0xff]  ;;  %v12918_v47 = vld [vmem:[#allocation78_spill] sm:$0xff] }
 0x417   : > { %v9073_v54 = vpop.f32.mrf.mxu1  ;;  %v5819_v10 = vadd.f32 %v11757_v35, %v11745_v24  ;;  %v6460_v17 = vadd.f32 %v11890_v40, %v6154_v60  ;;  %v6152_v20 = vadd.f32 %v11868_v50, %v5814_v14  ;;  %v5817_v26 = vadd.f32 %v11762_v37, %v11750_v52  ;;  %v12017_v40 = vpop.f32.mrf.mxu0  ;;  %v12921_v37 = vld [vmem:[#allocation151_spill] sm:$0xff]  ;;  %v12929_v14 = vld [vmem:[#allocation84_spill] sm:$0xff] }
 0x418   : > { %6925 = vst [vmem:[%s11969_s11 + $0x18] sm:$0xff] %v6893_v33  ;;  %v6891_v46 = vmax.f32 %v6859_v16, 0.0  ;;  %v6864_v57 = vadd.f32 %v6832_v27, %v12913_v8  ;;  %v6830_v61 = vadd.f32 %v11939_v30, %v6791_v51  ;;  %v6794_v59 = vadd.f32 %v9073_v54, %v6456_v58  ;;  %v12919_v33 = vld [vmem:[#allocation77_spill] sm:$0xff]  ;;  %v12920_v16 = vld [vmem:[#allocation142_spill] sm:$0xff]  ;;  %v12923_v54 = vld [vmem:[#allocation79_spill] sm:$0xff] }
 0x419   : > { %v6679_v21 = vpop.f32.mrf.mxu1  ;;  %v6458_v42 = vadd.f32 %v11896_v22, %v6152_v20  ;;  %v6157_v24 = vadd.f32 %v11870_v1, %v5819_v10  ;;  %v5820_v28 = vadd.f32 %v12919_v33, %v12918_v47  ;;  %v6155_v22 = vadd.f32 %v12921_v37, %v5817_v26  ;;  %v12922_v51 = vld [vmem:[#allocation22_spill] sm:$0xff]  ;;  %v12033_v53 = vpop.f32.mrf.mxu0  ;;  %v12930_v60 = vld [vmem:[#allocation39_spill] sm:$0xff]  ;;  %v12939_v47 = vld [vmem:[#allocation137_spill] sm:$0xff] }
 0x41a   : > { %6923 = vst [vmem:[%s11969_s11 + $0x8] sm:$0xff] %v6891_v46  ;;  %v6896_v48 = vmax.f32 %v6864_v57, 0.0  ;;  %v6862_v4 = vadd.f32 %v6830_v61, %v12914_v36  ;;  %v6833_v5 = vadd.f32 %v11939_v30, %v6794_v59  ;;  %v6792_v45 = vadd.f32 %v6679_v21, %v6454_v44  ;;  %v12924_v46 = vld [vmem:[#allocation82_spill] sm:$0xff]  ;;  %v12925_v57 = vld [vmem:[#allocation108_spill] sm:$0xff]  ;;  %v12926_v59 = vld [vmem:[#allocation101_spill] sm:$0xff] }
 0x41b   : > { %v9076_v11 = vpop.f32.mrf.mxu1  ;;  %v6463_v52 = vadd.f32 %v12920_v16, %v6157_v24  ;;  %v5818_v8 = vadd.f32 %v12924_v46, %v12923_v54  ;;  %v6461_v61 = vadd.f32 %v12925_v57, %v6155_v22  ;;  %v6158_v31 = vadd.f32 %v12926_v59, %v5820_v28  ;;  %v12049_v24 = vpop.f32.mrf.mxu0  ;;  %v12940_v16 = vld [vmem:[#allocation139_spill] sm:$0xff] }
 0x41c   : > { %6928 = vst [vmem:[%s11969_s11 + $0x30] sm:$0xff] %v6896_v48  ;;  %v6894_v49 = vmax.f32 %v6862_v4, 0.0  ;;  %v6865_v12 = vadd.f32 %v6833_v5, %v12915_v63  ;;  %v6831_v41 = vadd.f32 %v11939_v30, %v6792_v45  ;;  %v6797_v19 = vadd.f32 %v9076_v11, %v6459_v39  ;;  %v12927_v48 = vld [vmem:[#allocation25_spill] sm:$0xff]  ;;  %v12928_v45 = vld [vmem:[#allocation80_spill] sm:$0xff] }
 0x41d   : > { %v6692_v29 = vpop.f32.mrf.mxu1  ;;  %v6464_v11 = vadd.f32 %v12930_v60, %v6158_v31  ;;  %v12945_v31 = vld [vmem:[#allocation29_spill] sm:$0xff] }
 0x41e   : > { %6926 = vst [vmem:[%s11969_s11 + $0x20] sm:$0xff] %v6894_v49  ;;  %v6897_v34 = vmax.f32 %v6865_v12, 0.0  ;;  %v6863_v43 = vadd.f32 %v6831_v41, %v12916_v13  ;;  %v6836_v3 = vadd.f32 %v11939_v30, %v6797_v19  ;;  %v6795_v23 = vadd.f32 %v6692_v29, %v6457_v56  ;;  %v12931_v49 = vld [vmem:[#allocation102_spill] sm:$0xff]  ;;  %v12932_v19 = vld [vmem:[#allocation23_spill] sm:$0xff]  ;;  %v12933_v29 = vld [vmem:[#allocation81_spill] sm:$0xff] }
 0x41f   : > { %v9077_v35 = vpop.f32.mrf.mxu1  ;;  %v5823_v56 = vadd.f32 %v12929_v14, %v12928_v45  ;;  %v6156_v63 = vadd.f32 %v12931_v49, %v5818_v8  ;;  %v12944_v8 = vld [vmem:[#allocation122_spill] sm:$0xff]  ;;  %v12948_v14 = vld [vmem:[#allocation103_spill] sm:$0xff] }
 0x420   : > { %6929 = vst [vmem:[%s11969_s11 + $0x38] sm:$0xff] %v6897_v34  ;;  %v6895_v50 = vmax.f32 %v6863_v43, 0.0  ;;  %v6868_v62 = vadd.f32 %v6836_v3, %v12917_v2  ;;  %v6834_v58 = vadd.f32 %v11939_v30, %v6795_v23  ;;  %v6798_v32 = vadd.f32 %v9077_v35, %v6460_v17  ;;  %v12934_v34 = vld [vmem:[#allocation89_spill] sm:$0xff]  ;;  %v12936_v23 = vld [vmem:[#allocation154_spill] sm:$0xff] }
 0x421   : > { %v6695_v27 = vpop.f32.mrf.mxu1  ;;  %v5821_v13 = vadd.f32 %v12934_v34, %v12933_v29  ;;  %v12935_v43 = vld [vmem:[#allocation145_spill] sm:$0xff]  ;;  %v6161_v26 = vadd.f32 %v12936_v23, %v5823_v56 }
 0x422   : > { %6927 = vst [vmem:[%s11969_s11 + $0x28] sm:$0xff] %v6895_v50  ;;  %v6900_v1 = vmax.f32 %v6868_v62, 0.0  ;;  %v6866_v55 = vadd.f32 %v6834_v58, %v12922_v51  ;;  %v6837_v44 = vadd.f32 %v11939_v30, %v6798_v32  ;;  %v6796_v9 = vadd.f32 %v6695_v27, %v6458_v42  ;;  %v12937_v50 = vld [vmem:[#allocation28_spill] sm:$0xff]  ;;  %v12938_v32 = vld [vmem:[#allocation83_spill] sm:$0xff]  ;;  %v12941_v27 = vld [vmem:[#allocation26_spill] sm:$0xff] }
 0x423   : > { %v9080_v39 = vpop.f32.mrf.mxu1  ;;  %v6462_v3 = vadd.f32 %v12935_v43, %v6156_v63  ;;  %v5824_v33 = vadd.f32 %v12939_v47, %v12938_v32  ;;  %v6467_v28 = vadd.f32 %v11930_v38, %v6161_v26  ;;  %v12065_v38 = vpop.f32.mrf.mxu0  ;;  %v12953_v43 = vld [vmem:[#allocation34_spill] sm:$0xff]  ;;  %v12957_v47 = vld [vmem:[#allocation31_spill] sm:$0xff] }
 0x424   : > { %6932 = vst [vmem:[%s11969_s11 + $0x50] sm:$0xff] %v6900_v1  ;;  %v6898_v21 = vmax.f32 %v6866_v55, 0.0  ;;  %v6869_v36 = vadd.f32 %v6837_v44, %v12927_v48  ;;  %v6835_v4 = vadd.f32 %v11939_v30, %v6796_v9  ;;  %v6801_v5 = vadd.f32 %v9080_v39, %v6463_v52  ;;  %v12942_v44 = vld [vmem:[#allocation85_spill] sm:$0xff]  ;;  %v12943_v9 = vld [vmem:[#allocation90_spill] sm:$0xff] }
 0x425   : > { %v6708_v12 = vpop.f32.mrf.mxu1  ;;  %v6159_v52 = vadd.f32 %v12940_v16, %v5821_v13  ;;  %v5822_v54 = vadd.f32 %v12943_v9, %v12942_v44  ;;  %v6162_v57 = vadd.f32 %v12944_v8, %v5824_v33  ;;  %v12961_v9 = vld [vmem:[#allocation35_spill] sm:$0xff] }
 0x426   : > { %6930 = vst [vmem:[%s11969_s11 + $0x40] sm:$0xff] %v6898_v21  ;;  %v6901_v41 = vmax.f32 %v6869_v36, 0.0  ;;  %v6867_v10 = vadd.f32 %v6835_v4, %v12932_v19  ;;  %v6840_v17 = vadd.f32 %v11939_v30, %v6801_v5  ;;  %v6799_v20 = vadd.f32 %v6708_v12, %v6461_v61  ;;  %v12946_v36 = vld [vmem:[#allocation132_spill] sm:$0xff]  ;;  %v12947_v4 = vld [vmem:[#allocation133_spill] sm:$0xff] }
 0x427   : > { %v9081_v42 = vpop.f32.mrf.mxu1  ;;  %v6465_v46 = vadd.f32 %v11943_v7, %v6159_v52  ;;  %v5827_v5 = vadd.f32 %v12947_v4, %v12946_v36  ;;  %v6468_v45 = vadd.f32 %v11951_v18, %v6162_v57  ;;  %v6160_v7 = vadd.f32 %v12948_v14, %v5822_v54  ;;  %v12951_v19 = vld [vmem:[#allocation140_spill] sm:$0xff]  ;;  %v12081_v18 = vpop.f32.mrf.mxu0  ;;  %v12966_v14 = vld [vmem:[#allocation97_spill] sm:$0xff] }
 0x428   : > { %6933 = vst [vmem:[%s11969_s11 + $0x58] sm:$0xff] %v6901_v41  ;;  %v6899_v35 = vmax.f32 %v6867_v10, 0.0  ;;  %v6872_v2 = vadd.f32 %v6840_v17, %v12937_v50  ;;  %v6838_v62 = vadd.f32 %v11939_v30, %v6799_v20  ;;  %v6802_v58 = vadd.f32 %v9081_v42, %v6464_v11  ;;  %v12949_v11 = vld [vmem:[#allocation27_spill] sm:$0xff]  ;;  %v12950_v41 = vld [vmem:[#allocation86_spill] sm:$0xff]  ;;  %v12952_v20 = vld [vmem:[#allocation104_spill] sm:$0xff] }
 0x429   : > { %v6711_v37 = vpop.f32.mrf.mxu1  ;;  %v5825_v10 = vadd.f32 %v12951_v19, %v12950_v41  ;;  %v6466_v17 = vadd.f32 %v11965_v25, %v6160_v7  ;;  %v6165_v29 = vadd.f32 %v12952_v20, %v5827_v5  ;;  %v12954_v42 = vld [vmem:[#allocation91_spill] sm:$0xff]  ;;  %v12958_v52 = vld [vmem:[#allocation96_spill] sm:$0xff]  ;;  %v12970_v20 = vld [vmem:[#allocation134_spill] sm:$0xff] }
 0x42a   : > { %6931 = vst [vmem:[%s11969_s11 + $0x48] sm:$0xff] %v6899_v35  ;;  %v6904_v22 = vmax.f32 %v6872_v2, 0.0  ;;  %v6870_v1 = vadd.f32 %v6838_v62, %v12941_v27  ;;  %v6841_v51 = vadd.f32 %v11939_v30, %v6802_v58  ;;  %v6800_v55 = vadd.f32 %v6711_v37, %v6462_v3  ;;  %v12955_v35 = vld [vmem:[#allocation93_spill] sm:$0xff]  ;;  %v12956_v62 = vld [vmem:[#allocation106_spill] sm:$0xff]  ;;  %v12959_v37 = vld [vmem:[#allocation143_spill] sm:$0xff] }
 0x42b   : > { %v9084_v61 = vpop.f32.mrf.mxu1  ;;  %v5828_v50 = vadd.f32 %v12955_v35, %v12954_v42  ;;  %v6471_v2 = vadd.f32 %v11985_v6, %v6165_v29  ;;  %v6163_v25 = vadd.f32 %v12956_v62, %v5825_v10  ;;  %v6421_v6 = vpop.f32.mrf.mxu0  ;;  %v12962_v57 = vld [vmem:[#allocation92_spill] sm:$0xff]  ;;  %v12967_v7 = vld [vmem:[#allocation95_spill] sm:$0xff]  ;;  %v12971_v29 = vld [vmem:[#allocation98_spill] sm:$0xff] }
 0x42c   : > { %6936 = vst [vmem:[%s11969_s11 + $0x70] sm:$0xff] %v6904_v22  ;;  %v6902_v59 = vmax.f32 %v6870_v1, 0.0  ;;  %v6873_v39 = vadd.f32 %v6841_v51, %v12945_v31  ;;  %v6839_v21 = vadd.f32 %v11939_v30, %v6800_v55  ;;  %v6805_v48 = vadd.f32 %v9084_v61, %v6467_v28  ;;  %v12960_v1 = vld [vmem:[#allocation141_spill] sm:$0xff]  ;;  %v12963_v61 = vld [vmem:[#allocation87_spill] sm:$0xff]  ;;  %v12965_v36 = vld [vmem:[#allocation32_spill] sm:$0xff] }
 0x42d   : > { %v6724_v56 = vpop.f32.mrf.mxu1  ;;  %v5826_v22 = vadd.f32 %v12959_v37, %v12958_v52  ;;  %v6469_v27 = vadd.f32 %v12001_v15, %v6163_v25  ;;  %v6166_v51 = vadd.f32 %v12960_v1, %v5828_v50  ;;  %v12969_v41 = vld [vmem:[#allocation40_spill] sm:$0xff]  ;;  %v12979_v1 = vld [vmem:[#allocation99_spill] sm:$0xff] }
 0x42e   : > { %6934 = vst [vmem:[%s11969_s11 + $0x60] sm:$0xff] %v6902_v59  ;;  %v6905_v60 = vmax.f32 %v6873_v39, 0.0  ;;  %v6871_v49 = vadd.f32 %v6839_v21, %v12949_v11  ;;  %v6844_v63 = vadd.f32 %v11939_v30, %v6805_v48  ;;  %v6803_v12 = vadd.f32 %v6724_v56, %v6465_v46  ;;  %v12964_v39 = vld [vmem:[#allocation36_spill] sm:$0xff]  ;;  %v12968_v11 = vld [vmem:[#allocation107_spill] sm:$0xff] }
 0x42f   : > { %v9085_v34 = vpop.f32.mrf.mxu1  ;;  %v5831_v59 = vadd.f32 %v12963_v61, %v12962_v57  ;;  %v6472_v31 = vadd.f32 %v12017_v40, %v6166_v51  ;;  %v6164_v21 = vadd.f32 %v12964_v39, %v5826_v22  ;;  %v5829_v56 = vadd.f32 %v12967_v7, %v12966_v14  ;;  %v9048_v40 = vpop.f32.mrf.mxu0  ;;  %v12975_v62 = vld [vmem:[#allocation148_spill] sm:$0xff] }
 0x430   : > { %6937 = vst [vmem:[%s11969_s11 + $0x78] sm:$0xff] %v6905_v60  ;;  %v6903_v13 = vmax.f32 %v6871_v49, 0.0  ;;  %v6876_v3 = vadd.f32 %v6844_v63, %v12953_v43  ;;  %v6842_v23 = vadd.f32 %v11939_v30, %v6803_v12  ;;  %v6806_v26 = vadd.f32 %v9085_v34, %v6468_v45  ;;  %v12972_v43 = vld [vmem:[#allocation113_spill] sm:$0xff] }
 0x431   : > { %v6727_v58 = vpop.f32.mrf.mxu1  ;;  %v6470_v60 = vadd.f32 %v12033_v53, %v6164_v21  ;;  %v6169_v49 = vadd.f32 %v12968_v11, %v5831_v59  ;;  %v5832_v34 = vadd.f32 %v12971_v29, %v12970_v20  ;;  %v12982_v59 = vld [vmem:[#allocation136_spill] sm:$0xff]  ;;  %v12990_v29 = vld [vmem:[#allocation33_spill] sm:$0xff] }
 0x432   : > { %6935 = vst [vmem:[%s11969_s11 + $0x68] sm:$0xff] %v6903_v13  ;;  %v6908_v32 = vmax.f32 %v6876_v3, 0.0  ;;  %v6874_v33 = vadd.f32 %v6842_v23, %v12957_v47  ;;  %v6845_v28 = vadd.f32 %v11939_v30, %v6806_v26  ;;  %v6804_v16 = vadd.f32 %v6727_v58, %v6466_v17  ;;  %v12973_v26 = vld [vmem:[#allocation37_spill] sm:$0xff]  ;;  %v12989_v20 = vld [vmem:[#allocation100_spill] sm:$0xff] }
 0x433   : > { %v9088_v55 = vpop.f32.mrf.mxu1  ;;  %v6475_v13 = vadd.f32 %v12049_v24, %v6169_v49  ;;  %v6167_v3 = vadd.f32 %v12972_v43, %v5829_v56  ;;  %v6434_v24 = vpop.f32.mrf.mxu0  ;;  %v12986_v56 = vld [vmem:[#allocation30_spill] sm:$0xff] }
 0x434   : > { %6940 = vst [vmem:[%s11969_s11 + $0x90] sm:$0xff] %v6908_v32  ;;  %v6906_v44 = vmax.f32 %v6874_v33, 0.0  ;;  %v6877_v54 = vadd.f32 %v6845_v28, %v12961_v9  ;;  %v6843_v46 = vadd.f32 %v11939_v30, %v6804_v16  ;;  %v6809_v8 = vadd.f32 %v9088_v55, %v6471_v2  ;;  %v12974_v2 = vld [vmem:[#allocation94_spill] sm:$0xff]  ;;  %v12976_v32 = vld [vmem:[#allocation144_spill] sm:$0xff]  ;;  %v12977_v16 = vld [vmem:[#allocation41_spill] sm:$0xff] }
 0x435   : > { %v6740_v15 = vpop.f32.mrf.mxu1  ;;  %v5830_v25 = vadd.f32 %v12975_v62, %v12974_v2  ;;  %v6473_v58 = vadd.f32 %v12065_v38, %v6167_v3  ;;  %v6170_v47 = vadd.f32 %v12976_v32, %v5832_v34  ;;  %v5834_v34 = vadd.f32 %v12990_v29, %v12989_v20  ;;  %v12994_v32 = vld [vmem:[#allocation43_spill] sm:$0xff] }
 0x436   : > { %6938 = vst [vmem:[%s11969_s11 + $0x80] sm:$0xff] %v6906_v44  ;;  %v6909_v48 = vmax.f32 %v6877_v54, 0.0  ;;  %v6875_v4 = vadd.f32 %v6843_v46, %v12965_v36  ;;  %v6848_v5 = vadd.f32 %v11939_v30, %v6809_v8  ;;  %v6807_v45 = vadd.f32 %v6740_v15, %v6469_v27  ;;  %v12978_v27 = vld [vmem:[#allocation135_spill] sm:$0xff]  ;;  %v12980_v44 = vld [vmem:[#allocation109_spill] sm:$0xff]  ;;  %v12981_v46 = vld [vmem:[#allocation38_spill] sm:$0xff] }
 0x437   : > { %v9089_v63 = vpop.f32.mrf.mxu1  ;;  %v5835_v51 = vadd.f32 %v12979_v1, %v12978_v27  ;;  %v6476_v55 = vadd.f32 %v12081_v18, %v6170_v47  ;;  %v6168_v9 = vadd.f32 %v12980_v44, %v5830_v25  ;;  %v12984_v15 = vld [vmem:[#allocation110_spill] sm:$0xff]  ;;  %v12996_v44 = vld [vmem:[#allocation48_spill] sm:$0xff] }
 0x438   : > { %6941 = vst [vmem:[%s11969_s11 + $0x98] sm:$0xff] %v6909_v48  ;;  %v6907_v12 = vmax.f32 %v6875_v4, 0.0  ;;  %v6880_v19 = vadd.f32 %v6848_v5, %v12969_v41  ;;  %v6846_v10 = vadd.f32 %v11939_v30, %v6807_v45  ;;  %v6810_v17 = vadd.f32 %v9089_v63, %v6472_v31  ;;  %v12983_v31 = vld [vmem:[#allocation105_spill] sm:$0xff]  ;;  %v9049_v4 = vpop.f32.mrf.mxu0  ;;  %v12985_v5 = vld [vmem:[#allocation46_spill] sm:$0xff] }
 0x439   : > { %v6743_v53 = vpop.f32.mrf.mxu1  ;;  %v5833_v39 = vadd.f32 %v12983_v31, %v12982_v59  ;;  %v6474_v21 = vadd.f32 %v6421_v6, %v6168_v9  ;;  %v6173_v48 = vadd.f32 %v12984_v15, %v5835_v51  ;;  %v12988_v41 = vld [vmem:[#allocation42_spill] sm:$0xff]  ;;  %v12998_v31 = vld [vmem:[#allocation49_spill] sm:$0xff] }
 0x43a   : > { %6939 = vst [vmem:[%s11969_s11 + $0x88] sm:$0xff] %v6907_v12  ;;  %v6912_v23 = vmax.f32 %v6880_v19, 0.0  ;;  %v6878_v42 = vadd.f32 %v6846_v10, %v12973_v26  ;;  %v6849_v35 = vadd.f32 %v11939_v30, %v6810_v17  ;;  %v6808_v50 = vadd.f32 %v6743_v53, %v6470_v60  ;;  %v12987_v60 = vld [vmem:[#allocation138_spill] sm:$0xff] }
 0x43b   : > { %v9092_v33 = vpop.f32.mrf.mxu1  ;;  %v5836_v11 = vadd.f32 %v12987_v60, %v12986_v56  ;;  %v6171_v49 = vadd.f32 %v11922_v0, %v5833_v39  ;;  %v6479_v63 = vadd.f32 %v9048_v40, %v6173_v48  ;;  %v12992_v40 = vld [vmem:[#allocation47_spill] sm:$0xff] }
 0x43c   : > { %6944 = vst [vmem:[%s11969_s11 + $0xb0] sm:$0xff] %v6912_v23  ;;  %v6910_v28 = vmax.f32 %v6878_v42, 0.0  ;;  %v6881_v52 = vadd.f32 %v6849_v35, %v12977_v16  ;;  %v6847_v37 = vadd.f32 %v11939_v30, %v6808_v50  ;;  %v6813_v22 = vadd.f32 %v9092_v33, %v6475_v13  ;;  %v12991_v13 = vld [vmem:[#allocation111_spill] sm:$0xff]  ;;  %v6437_v23 = vpop.f32.mrf.mxu0  ;;  %v12993_v50 = vld [vmem:[#allocation112_spill] sm:$0xff] }
 0x43d   : > { %v6756_v38 = vpop.f32.mrf.mxu1  ;;  %v6174_v43 = vadd.f32 %v12991_v13, %v5836_v11  ;;  %v6477_v3 = vadd.f32 %v6434_v24, %v6171_v49  ;;  %v6172_v2 = vadd.f32 %v12993_v50, %v5834_v34 }
 0x43e   : > { %6942 = vst [vmem:[%s11969_s11 + $0xa0] sm:$0xff] %v6910_v28  ;;  %v6913_v54 = vmax.f32 %v6881_v52, 0.0  ;;  %v6879_v8 = vadd.f32 %v6847_v37, %v12981_v46  ;;  %v6852_v57 = vadd.f32 %v11939_v30, %v6813_v22  ;;  %v6811_v61 = vadd.f32 %v6756_v38, %v6473_v58  ;;  %v12995_v37 = vld [vmem:[#allocation59_spill] sm:$0xff] }
 0x43f   : > { %v9093_v36 = vpop.f32.mrf.mxu1  ;;  %v6480_v62 = vadd.f32 %v9049_v4, %v6174_v43  ;;  %v6478_v28 = vadd.f32 %v6437_v23, %v6172_v2 }
 0x440   : > { %6945 = vst [vmem:[%s11969_s11 + $0xb8] sm:$0xff] %v6913_v54  ;;  %v6911_v18 = vmax.f32 %v6879_v8, 0.0  ;;  %v6884_v45 = vadd.f32 %v6852_v57, %v12985_v5  ;;  %v6850_v14 = vadd.f32 %v11939_v30, %v6811_v61  ;;  %v6814_v7 = vadd.f32 %v9093_v36, %v6476_v55  ;;  %v12997_v8 = vld [vmem:[#allocation61_spill] sm:$0xff] }
 0x441   : > { %v6759_v12 = vpop.f32.mrf.mxu1 }
 0x442   : > { %6943 = vst [vmem:[%s11969_s11 + $0xa8] sm:$0xff] %v6911_v18  ;;  %v6916_v6 = vmax.f32 %v6884_v45, 0.0  ;;  %v6882_v19 = vadd.f32 %v6850_v14, %v12988_v41  ;;  %v6853_v10 = vadd.f32 %v11939_v30, %v6814_v7  ;;  %v6812_v17 = vadd.f32 %v6759_v12, %v6474_v21 }
 0x443   : > { %v9096_v53 = vpop.f32.mrf.mxu1 }
 0x444   : > { %6948 = vst [vmem:[%s11969_s11 + $0xd0] sm:$0xff] %v6916_v6  ;;  %v6914_v0 = vmax.f32 %v6882_v19, 0.0  ;;  %v6885_v26 = vadd.f32 %v6853_v10, %v12992_v40  ;;  %v6851_v42 = vadd.f32 %v11939_v30, %v6812_v17  ;;  %v6817_v35 = vadd.f32 %v9096_v53, %v6479_v63 }
 0x445   : > { %v6772_v25 = vpop.f32.mrf.mxu1 }
 0x446   : > { %6946 = vst [vmem:[%s11969_s11 + $0xc0] sm:$0xff] %v6914_v0  ;;  %v6917_v58 = vmax.f32 %v6885_v26, 0.0  ;;  %v6883_v47 = vadd.f32 %v6851_v42, %v12994_v32  ;;  %v6856_v33 = vadd.f32 %v11939_v30, %v6817_v35  ;;  %v6815_v24 = vadd.f32 %v6772_v25, %v6477_v3 }
 0x447   : > { %v9097_v16 = vpop.f32.mrf.mxu1 }
 0x448   : > { %6949 = vst [vmem:[%s11969_s11 + $0xd8] sm:$0xff] %v6917_v58  ;;  %v6915_v52 = vmax.f32 %v6883_v47, 0.0  ;;  %v6888_v22 = vadd.f32 %v6856_v33, %v12995_v37  ;;  %v6854_v27 = vadd.f32 %v11939_v30, %v6815_v24  ;;  %v6818_v1 = vadd.f32 %v9097_v16, %v6480_v62 }
 0x449   : > { %v6775_v51 = vpop.f32.mrf.mxu1 }
 0x44a   : > { %6947 = vst [vmem:[%s11969_s11 + $0xc8] sm:$0xff] %v6915_v52  ;;  %v6920_v55 = vmax.f32 %v6888_v22, 0.0  ;;  %v6886_v9 = vadd.f32 %v6854_v27, %v12996_v44  ;;  %v6857_v38 = vadd.f32 %v11939_v30, %v6818_v1  ;;  %v6816_v54 = vadd.f32 %v6775_v51, %v6478_v28 }
 0x44c   : > { %6952 = vst [vmem:[%s11969_s11 + $0xf0] sm:$0xff] %v6920_v55  ;;  %v6918_v46 = vmax.f32 %v6886_v9, 0.0  ;;  %v6889_v57 = vadd.f32 %v6857_v38, %v12997_v8  ;;  %v6855_v61 = vadd.f32 %v11939_v30, %v6816_v54 }
 0x44e   : > { %6950 = vst [vmem:[%s11969_s11 + $0xe0] sm:$0xff] %v6918_v46  ;;  %v6921_v59 = vmax.f32 %v6889_v57, 0.0  ;;  %v6887_v39 = vadd.f32 %v6855_v61, %v12998_v31 }
 0x450   : > { %6953 = vst [vmem:[%s11969_s11 + $0xf8] sm:$0xff] %v6921_v59  ;;  %v6919_v21 = vmax.f32 %v6887_v39, 0.0 }
 0x452   : > { %6951 = vst [vmem:[%s11969_s11 + $0xe8] sm:$0xff] %v6919_v21 }
 0x453   : > { %9412 = shalt.err (!%p9409_p9)
}
 0x454   : > { %s9413_s30 = scalar_lea.hbm %s12173_s9, 4096  ;;  %s9417_s8 = scalar_lea.hbm %s12225_s5, 8192 }
 0x455   : > { %p9414_p13 = scmp.ne.s32.totalorder %s12173_s9, %s9413_s30  ;;  %p9418_p4 = scmp.lt.s32.totalorder %s12173_s9, %s12225_s5 }
 0x456   : > { %p9419_p8 = scmp.lt.s32.totalorder %s9417_s8, %s9413_s30 }
 0x457   : > { %p9415_p5 = pnand %p9414_p13, %p12999_p10 }
 0x458   : > { %p9420_p3 = por %p9419_p8, %p9418_p4 }
 0x459   : > { %p9416_p0 = pneg %p9415_p5 }
 0x45b   : > { %p9421_p11 = pnand %p9420_p3, %p9416_p0 }
 0x45d   : > { %9424 = shalt.err (!%p9421_p11)
}
 0x45e   : > { %s9480_s12 = smov 128   ;;  %s9481_s6 = smov 8  }
 0x45f   : > { %9108 = dma.vmem_to_hbm [thread:$0]  (%p12999_p10), %s12175_s28, 4096, %s12173_s9, %s6955_s13, %s9480_s12, %s9480_s12, %s9481_s6  }
 0x460 PF: > { %s6983_s7 = sand.u32 1, %s9455_s18   ;;  %p13000_p1 = scmp.ne.s32.totalorder %s12411_s25, 0 }
 0x461   : > { %p13001_p2 = scmp.ge.s32.totalorder %s9467_s21, 2  ;;  %s6984_s22 = scalar_lea.sflag [#allocation5], %s6983_s7 }
 0x463   : > { %p9122_p6 = pnand %p13001_p2, %p13000_p1 }
 0x465   : > { %p9123_p12 = pneg %p9122_p6 }
 0x467   : > { %9450 = dma.done.wait (%p9123_p12), %s6984_s22, 4096  }
 0x468   : > { %9452 = vsyncadd (%p9123_p12), %s6984_s22, 4294963200  ;;  %p19_p7 = scmp.ge.s32.totalorder %s9584_s15, 4   ;;  %s13002_s18 = smov %s9459_s19 }
 0x469   : > { %s13003_s19 = smov %s9463_s20  ;;  %s13004_s20 = smov %s9600_s27 }
 0x46a   : > { %s13005_s21 = smov %s9584_s15  ;;  %21 = sbr.rel (!%p19_p7) target bundleno = 6 (0x6), region = 109 }
 0x46f   :  { %6989 = vsyncpa [#allocation4], 1 }
 0x470   :  { %6991 = vsyncpa [#allocation4 + $0x1], 1 }
 0x471   :  { %6992 = vsyncpa [#allocation7], 1 }
 0x472   :  { %6993 = vsyncpa [#allocation5], 1 }
 0x473   :  { %6995 = vsyncpa [#allocation5 + $0x1], 1 }

</bundles_post_ra>
